<compile_context>
chip_gen: v5e
topology: v5e:2x2
jax: 0.10.0
libtpu: 0.0.40
codegen_flags: <defaults>
</compile_context>

<pallas_src>
import jax
import jax.numpy as jnp
from jax.experimental import pallas as pl
from jax.experimental.pallas import tpu as pltpu


_LANE = 128          # lane width: feature dims padded to a multiple of this
_MAX_TILE = 512      # upper bound on node tiles in the tiled path


# ----------------------------------------------------------------------------
# small helpers
# ----------------------------------------------------------------------------
def _round_up(x, m=_LANE):
    return ((x + m - 1) // m) * m


def _pad2(arr, rows, cols):
    return jnp.pad(arr, ((0, rows - arr.shape[0]), (0, cols - arr.shape[1])))


def _pick_tile(dim, cap=_MAX_TILE):
    """Largest multiple of 128 that divides `dim` (dim % 128 == 0) and <= cap."""
    best, t = 128, 128
    while t <= min(dim, cap):
        if dim % t == 0:
            best = t
        t += 128
    return best


def _vmem_capacity_bytes():
    try:
        info = pltpu.get_tpu_info()
        cap = getattr(info, "vmem_capacity_bytes", None)
        if cap:
            return int(cap)
    except Exception:
        pass
    return 64 * 2 ** 20   # conservative default: v7x per-TensorCore VMEM


def _fused_vmem_need(n, fin_pads, fout_pads, fmax_act):
    bf16, f32 = 2, 4
    need = bf16 * n * n                                   # resident A / A_norm scratch
    need += f32 * n * n + 2 * bf16 * n * n                # normalization temporaries
    need += 2 * bf16 * n * fin_pads[0]                    # X input (double buffered)
    need += sum(2 * bf16 * fi * fo for fi, fo in zip(fin_pads, fout_pads))  # weights
    need += sum(2 * f32 * fo for fo in fout_pads)         # biases
    need += 2 * bf16 * n * fmax_act                       # activation ping/pong
    need += 2 * f32 * n * fout_pads[-1]                   # output (double buffered)
    need += 2 * f32 * n * max(fout_pads)                  # per-layer f32 Xw / Y temporaries
    return need


# ============================================================================
# Path 1: fully fused forward (normalization + all layers in one pallas_call)
# ============================================================================
def _make_fused_kernel(num_layers, fin_pads, fout_pads):
    def kernel(*refs):
        a_hbm = refs[0]                                   # (n, n) bf16, HBM (pl.ANY)
        x_ref = refs[1]                                   # (n, fin_pads[0]) bf16
        w_refs = refs[2:2 + num_layers]                   # (fin_p, fout_p) bf16 each
        b_refs = refs[2 + num_layers:2 + 2 * num_layers]  # (1, fout_p) f32 each
        o_ref = refs[2 + 2 * num_layers]                  # (n, fout_pads[-1]) f32
        a_vmem, h0, h1, dma_sem = refs[2 + 2 * num_layers + 1:]

        # --- bring A into VMEM once (single-buffered: grid=(1,) -> no pipelining) ---
        cp = pltpu.make_async_copy(a_hbm, a_vmem, dma_sem)
        cp.start()
        cp.wait()

        n = a_vmem.shape[0]
        ab = a_vmem[...]                                              # bf16 (n, n)
        # degrees of A_hat = A + I (rowsum >= 1, no inf guard needed)
        rs = jnp.sum(ab, axis=1, keepdims=True, dtype=jnp.float32) + 1.0   # (n, 1)
        cs = jnp.sum(ab, axis=0, keepdims=True, dtype=jnp.float32) + 1.0   # (1, n)
        d_col = jax.lax.rsqrt(rs).astype(jnp.bfloat16)
        d_row = jax.lax.rsqrt(cs).astype(jnp.bfloat16)
        # A + I via a diagonal select (no f32 eye, no N x N transpose: A symmetric)
        rows = jax.lax.broadcasted_iota(jnp.int32, (n, n), 0)
        cols = jax.lax.broadcasted_iota(jnp.int32, (n, n), 1)
        a_hat = jnp.where(rows == cols, ab + 1.0, ab)
        # in-place: A buffer becomes bf16 A_norm, resident for all layers
        a_vmem[...] = d_col * a_hat * d_row

        # --- unrolled layer loop: activations never round-trip HBM -------------
        # TODO(synk): nn.Dropout is identity in eval mode; training-mode dropout
        # (pltpu.prng_random_bits mask) intentionally omitted.
        bufs = (h0, h1)
        for layer in range(num_layers):
            f_in_p, f_out_p = fin_pads[layer], fout_pads[layer]
            if layer == 0:
                h_in = x_ref[...]
            else:
                h_in = bufs[(layer - 1) % 2][:, :f_in_p]
            # nn.Linear: Xw = h @ W^T + b   (bf16 MXU operands, f32 accumulate)
            xw = jnp.dot(h_in, w_refs[layer][...],
                         preferred_element_type=jnp.float32) + b_refs[layer][...]
            # aggregation: ReLU(A_norm @ Xw)
            y = jnp.dot(a_vmem[...], xw.astype(jnp.bfloat16),
                        preferred_element_type=jnp.float32)
            y = jnp.maximum(y, 0.0)
            if layer == num_layers - 1:
                o_ref[...] = y.astype(o_ref.dtype)
            else:
                bufs[layer % 2][:, :f_out_p] = y.astype(jnp.bfloat16)
    return kernel


def gcn_forward_fused(a, x, weights, biases):
    """Whole GCN forward in a single pallas_call (A must fit in VMEM)."""
    n, f_in = x.shape
    num_layers = len(weights)
    f_out_last = weights[-1].shape[0]
    fin_pads = [_round_up(w.shape[1]) for w in weights]
    fout_pads = [_round_up(w.shape[0]) for w in weights]
    fmax_act = max(fout_pads[:-1] + [_LANE])       # widest intermediate activation

    # bf16 operands: halves HBM->VMEM DMA of A and feeds the MXU natively.
    a_bf = a.astype(jnp.bfloat16)
    x_p = _pad2(x.astype(jnp.float32), n, fin_pads[0]).astype(jnp.bfloat16)
    w_ps = [_pad2(w.T.astype(jnp.float32), fin_pads[l], fout_pads[l]).astype(jnp.bfloat16)
            for l, w in enumerate(weights)]
    b_ps = [jnp.pad(b.astype(jnp.float32), (0, fout_pads[l] - b.shape[0]))
            .reshape(1, fout_pads[l]) for l, b in enumerate(biases)]

    in_specs = [pl.BlockSpec(memory_space=pl.ANY),                 # A stays in HBM
                pl.BlockSpec((n, fin_pads[0]), lambda i: (0, 0))]
    for l in range(num_layers):
        in_specs.append(pl.BlockSpec((fin_pads[l], fout_pads[l]), lambda i: (0, 0)))
    for l in range(num_layers):
        in_specs.append(pl.BlockSpec((1, fout_pads[l]), lambda i: (0, 0)))

    # generation-aware VMEM budget (v7x has 64 MiB/TC, v5e/v6e 128 MiB)
    need = _fused_vmem_need(n, fin_pads, fout_pads, fmax_act)
    cap = _vmem_capacity_bytes()
    vmem_limit = max(32 * 2 ** 20, min(int(need * 1.25), int(0.85 * cap)))

    out = pl.pallas_call(
        _make_fused_kernel(num_layers, fin_pads, fout_pads),
        out_shape=jax.ShapeDtypeStruct((n, fout_pads[-1]), jnp.float32),
        grid=(1,),
        in_specs=in_specs,
        out_specs=pl.BlockSpec((n, fout_pads[-1]), lambda i: (0, 0)),
        scratch_shapes=[
            pltpu.VMEM((n, n), jnp.bfloat16),        # A, then A_norm (resident)
            pltpu.VMEM((n, fmax_act), jnp.bfloat16),  # activation ping
            pltpu.VMEM((n, fmax_act), jnp.bfloat16),  # activation pong
            pltpu.SemaphoreType.DMA,                  # for the single A DMA
        ],
        compiler_params=pltpu.CompilerParams(
            dimension_semantics=("arbitrary",), vmem_limit_bytes=vmem_limit),
    )(a_bf, x_p, *w_ps, *b_ps)
    return out[:, :f_out_last].astype(x.dtype)


# ============================================================================
# Path 2: tiled kernels for large graphs (A_norm never materialized; the raw
# bf16 adjacency is the only N^2 stream and is read once per layer)
# ============================================================================
def _degree_kernel(a_ref, d_ref):
    """d = rsqrt(colsum(A) + 1) as a lane-dense (1, N) row (colsum == rowsum
    for the symmetric adjacencies GCNs use); accumulated over row tiles."""
    k = pl.program_id(1)

    @pl.when(k == 0)
    def _():
        d_ref[...] = jnp.ones_like(d_ref)        # +1 for the added self loop

    d_ref[...] += jnp.sum(a_ref[...].astype(jnp.float32), axis=0, keepdims=True)

    @pl.when(k == pl.num_programs(1) - 1)
    def _():
        d_ref[...] = jax.lax.rsqrt(d_ref[...])   # rowsum >= 1 -> no inf guard


def compute_inv_sqrt_degree(a_bf, *, tile):
    n = a_bf.shape[0]
    g = n // tile
    return pl.pallas_call(
        _degree_kernel,
        out_shape=jax.ShapeDtypeStruct((1, n), jnp.float32),
        grid=(g, g),
        in_specs=[pl.BlockSpec((tile, tile), lambda j, k: (k, j))],
        out_specs=pl.BlockSpec((1, tile), lambda j, k: (0, j)),
        compiler_params=pltpu.CompilerParams(
            dimension_semantics=("parallel", "arbitrary")),
    )(a_bf)


def _linear_scale_kernel(x_ref, wt_ref, b_ref, d_ref, o_ref, acc_ref):
    """Z = d ⊙ (X @ W^T + b): the left D^-1/2 is folded into the linear."""
    k = pl.program_id(2)

    @pl.when(k == 0)
    def _():
        acc_ref[...] = jnp.zeros_like(acc_ref)

    acc_ref[...] += jnp.dot(x_ref[...], wt_ref[...],
                            preferred_element_type=jnp.float32)

    @pl.when(k == pl.num_programs(2) - 1)
    def _():
        o_ref[...] = ((acc_ref[...] + b_ref[...]) * d_ref[...]).astype(o_ref.dtype)


def linear_scaled(x_p, wt_p, b_p, d_col, *, tm, tn, tk):
    n = x_p.shape[0]
    f_in, f_out = wt_p.shape
    return pl.pallas_call(
        _linear_scale_kernel,
        out_shape=jax.ShapeDtypeStruct((n, f_out), jnp.bfloat16),
        grid=(n // tm, f_out // tn, f_in // tk),
        in_specs=[
            pl.BlockSpec((tm, tk), lambda i, j, k: (i, k)),
            pl.BlockSpec((tk, tn), lambda i, j, k: (k, j)),
            pl.BlockSpec((1, tn), lambda i, j, k: (0, j)),
            pl.BlockSpec((tm, 1), lambda i, j, k: (i, 0)),
        ],
        out_specs=pl.BlockSpec((tm, tn), lambda i, j, k: (i, j)),
        scratch_shapes=[pltpu.VMEM((tm, tn), jnp.float32)],
        compiler_params=pltpu.CompilerParams(
            dimension_semantics=("parallel", "parallel", "arbitrary")),
    )(x_p, wt_p, b_p, d_col)


def _agg_relu_kernel(a_ref, z_ref, d_ref, o_ref, acc_ref):
    """Y = ReLU(d ⊙ (A @ Z + Z)) == ReLU(D (A+I) D Xw) with Z = d ⊙ Xw.

    The raw bf16 adjacency tile feeds the MXU directly; the self-loop (+I)
    is the `+ Z[i]` term added on the diagonal block (requires tm == tk).
    """
    i = pl.program_id(0)
    k = pl.program_id(2)

    @pl.when(k == 0)
    def _():
        acc_ref[...] = jnp.zeros_like(acc_ref)

    acc_ref[...] += jnp.dot(a_ref[...], z_ref[...],
                            preferred_element_type=jnp.float32)

    @pl.when(i == k)                           # diagonal block: self-loop term
    def _():
        acc_ref[...] += z_ref[...].astype(jnp.float32)

    @pl.when(k == pl.num_programs(2) - 1)
    def _():
        o_ref[...] = jnp.maximum(d_ref[...] * acc_ref[...], 0.0).astype(o_ref.dtype)


def aggregate_relu(a_bf, z, d_col, *, tm, tn, tk):
    assert tm == tk, "self-loop handling requires equal row/reduction node tiles"
    n = a_bf.shape[0]
    f_out = z.shape[1]
    extra = {}
    if hasattr(pl, "CostEstimate"):
        extra["cost_estimate"] = pl.CostEstimate(
            flops=2 * n * n * f_out, transcendentals=0,
            bytes_accessed=2 * n * n + 2 * 2 * n * f_out)
    return pl.pallas_call(
        _agg_relu_kernel,
        out_shape=jax.ShapeDtypeStruct((n, f_out), jnp.bfloat16),
        grid=(n // tm, f_out // tn, n // tk),
        in_specs=[
            pl.BlockSpec((tm, tk), lambda i, j, k: (i, k)),
            pl.BlockSpec((tk, tn), lambda i, j, k: (k, j)),
            pl.BlockSpec((tm, 1), lambda i, j, k: (i, 0)),
        ],
        out_specs=pl.BlockSpec((tm, tn), lambda i, j, k: (i, j)),
        scratch_shapes=[pltpu.VMEM((tm, tn), jnp.float32)],
        compiler_params=pltpu.CompilerParams(
            dimension_semantics=("parallel", "parallel", "arbitrary")),
        **extra,
    )(a_bf, z, d_col)


def gcn_forward_tiled(a, x, weights, biases):
    """Tiled GCN forward: scales to N where (N, N) does not fit in VMEM and
    gives v7x's two TensorCores parallel grid work."""
    n, f_in = x.shape
    f_out_last = weights[-1].shape[0]
    n_pad = _round_up(n)
    node_tile = _pick_tile(n_pad, _MAX_TILE)

    a_bf = a.astype(jnp.bfloat16)
    if n_pad != n:
        a_bf = jnp.pad(a_bf, ((0, n_pad - n), (0, n_pad - n)))

    d_row = compute_inv_sqrt_degree(a_bf, tile=node_tile)      # (1, n_pad)
    d_col = d_row.reshape(n_pad, 1)

    h = _pad2(x.astype(jnp.float32), n_pad, _round_up(f_in)).astype(jnp.bfloat16)
    for w, b in zip(weights, biases):
        f_i_p = _round_up(w.shape[1])
        f_o_p = _round_up(w.shape[0])
        wt_p = _pad2(w.T.astype(jnp.float32), f_i_p, f_o_p).astype(jnp.bfloat16)
        b_p = jnp.pad(b.astype(jnp.float32), (0, f_o_p - b.shape[0])).reshape(1, f_o_p)
        tn = _pick_tile(f_o_p, _MAX_TILE)      # == f_o_p for typical GCN widths
        tk_lin = _pick_tile(f_i_p, _MAX_TILE)
        z = linear_scaled(h, wt_p, b_p, d_col, tm=node_tile, tn=tn, tk=tk_lin)
        h = aggregate_relu(a_bf, z, d_col, tm=node_tile, tn=tn, tk=node_tile)
    return h[:n, :f_out_last].astype(x.dtype)


def gcn_forward(a, x, weights, biases):
    """Dispatch: fused single-call path when A comfortably fits in VMEM,
    otherwise the tiled path (also the better choice on v7x's 2 TCs)."""
    n = a.shape[0]
    fin_pads = [_round_up(w.shape[1]) for w in weights]
    fout_pads = [_round_up(w.shape[0]) for w in weights]
    fmax_act = max(fout_pads[:-1] + [_LANE])
    need = _fused_vmem_need(n, fin_pads, fout_pads, fmax_act)
    if need <= int(0.6 * _vmem_capacity_bytes()):
        return gcn_forward_fused(a, x, weights, biases)
    return gcn_forward_tiled(a, x, weights, biases)


# ----------------------------------------------------------------------------
# Pure-JAX reference (f32) + deterministic parameter init
# ----------------------------------------------------------------------------
def gcn_reference(a, x, weights, biases):
    n = a.shape[0]
    a_hat = a.astype(jnp.float32) + jnp.eye(n, dtype=jnp.float32)
    rowsum = jnp.sum(a_hat, axis=1)
    d = jnp.where(rowsum > 0.0, jax.lax.rsqrt(rowsum), 0.0)
    a_norm = (a_hat * d[None, :]).T * d[None, :]       # (A_hat D)^T D
    h = x.astype(jnp.float32)
    for w, b in zip(weights, biases):
        xw = h @ w.T.astype(jnp.float32) + b.astype(jnp.float32)
        h = jnp.maximum(a_norm @ xw, 0.0)
    return h


def init_params(key, emb_dim, layer_sizes):
    sizes = [emb_dim] + list(layer_sizes)
    weights, biases = [], []
    for k in range(len(layer_sizes)):
        f_in, f_out = sizes[k], sizes[k + 1]
        key, kw, kb = jax.random.split(key, 3)
        bound = 1.0 / jnp.sqrt(f_in)
        weights.append(jax.random.uniform(kw, (f_out, f_in), jnp.float32, -bound, bound))
        biases.append(jax.random.uniform(kb, (f_out,), jnp.float32, -bound, bound))
    return weights, biases


def _assert_close(name, out, ref, rtol=4e-2, atol=2e-2):
    err = float(jnp.max(jnp.abs(out - ref) - rtol * jnp.abs(ref)))
    assert err < atol, (name, err)


if __name__ == "__main__":
    N = 256
    EMB_DIM = 32
    LAYER_SIZES = [16, 8]

    key = jax.random.PRNGKey(0)
    key, ka, kx = jax.random.split(key, 3)

    # Random symmetric binary adjacency, no self loops (kernels add I).
    a_rand = (jax.random.uniform(ka, (N, N)) < 0.05).astype(jnp.float32)
    a = jnp.maximum(a_rand, a_rand.T)
    a = a * (1.0 - jnp.eye(N, dtype=jnp.float32))

    x = jax.random.normal(kx, (N, EMB_DIM), dtype=jnp.float32)
    weights, biases = init_params(key, EMB_DIM, LAYER_SIZES)

    ref = gcn_reference(a, x, weights, biases)
    out_fused = jax.block_until_ready(gcn_forward_fused(a, x, weights, biases))
    out_tiled = jax.block_until_ready(gcn_forward_tiled(a, x, weights, biases))
    out_auto = jax.block_until_ready(gcn_forward(a, x, weights, biases))

    assert out_fused.shape == (N, LAYER_SIZES[-1]), out_fused.shape
    assert out_tiled.shape == (N, LAYER_SIZES[-1]), out_tiled.shape
    assert bool(jnp.all(jnp.isfinite(out_fused)))
    assert bool(jnp.all(jnp.isfinite(out_tiled)))
    _assert_close("fused", out_fused, ref)
    _assert_close("tiled", out_tiled, ref)
    _assert_close("auto", out_auto, ref)
    print("KERNEL_OK")
</pallas_src>

<mosaic_0001>
module attributes {stable_mosaic.version = 11 : i64} {
  func.func @kernel(%arg0: i32, %arg1: memref<256x256xbf16, #tpu.memory_space<any>>, %arg2: memref<256x128xbf16, #tpu.memory_space<vmem>>, %arg3: memref<128x128xbf16, #tpu.memory_space<vmem>>, %arg4: memref<128x128xbf16, #tpu.memory_space<vmem>>, %arg5: memref<1x128xf32, #tpu.memory_space<vmem>>, %arg6: memref<1x128xf32, #tpu.memory_space<vmem>>, %arg7: memref<256x128xf32, #tpu.memory_space<vmem>>, %arg8: memref<256x256xbf16, #tpu.memory_space<vmem>>, %arg9: memref<256x128xbf16, #tpu.memory_space<vmem>>, %arg10: memref<256x128xbf16, #tpu.memory_space<vmem>>, %arg11: memref<!tpu.dma_semaphore, #tpu.memory_space<semaphore_mem>>) attributes {dimension_semantics = [#tpu.dimension_semantics<arbitrary>], iteration_bounds = array<i64: 1>, scalar_prefetch = 0 : i64, scratch_operands = 4 : i64, tpu.core_type = #tpu.core_type<tc>, window_params = [{}, {pipeline_mode = #tpu.pipeline_mode<synchronous>, transform_indices = @transform_1, window_bounds = array<i64: 256, 128>}, {pipeline_mode = #tpu.pipeline_mode<synchronous>, transform_indices = @transform_2, window_bounds = array<i64: 128, 128>}, {pipeline_mode = #tpu.pipeline_mode<synchronous>, transform_indices = @transform_3, window_bounds = array<i64: 128, 128>}, {pipeline_mode = #tpu.pipeline_mode<synchronous>, transform_indices = @transform_4, window_bounds = array<i64: 1, 128>}, {pipeline_mode = #tpu.pipeline_mode<synchronous>, transform_indices = @transform_5, window_bounds = array<i64: 1, 128>}, {pipeline_mode = #tpu.pipeline_mode<synchronous>, transform_indices = @transform_6, window_bounds = array<i64: 256, 128>}]} {
    tpu.enqueue_dma source(%arg1 : memref<256x256xbf16, #tpu.memory_space<any>>) target(%arg8 : memref<256x256xbf16, #tpu.memory_space<vmem>>) target_semaphore(%arg11 : memref<!tpu.dma_semaphore, #tpu.memory_space<semaphore_mem>>)
    tpu.wait_dma2 semaphore(%arg11 : memref<!tpu.dma_semaphore, #tpu.memory_space<semaphore_mem>>) src(%arg1 : memref<256x256xbf16, #tpu.memory_space<any>>) dst(%arg8 : memref<256x256xbf16, #tpu.memory_space<vmem>>)
    %c0 = arith.constant 0 : index
    %c0_0 = arith.constant 0 : index
    %0 = vector.load %arg8[%c0, %c0_0] : memref<256x256xbf16, #tpu.memory_space<vmem>>, vector<256x256xbf16>
    %1 = arith.extf %0 : vector<256x256xbf16> to vector<256x256xf32>
    %cst = arith.constant dense<0.000000e+00> : vector<256xf32>
    %2 = vector.multi_reduction <add>, %1, %cst [1] : vector<256x256xf32> to vector<256xf32>
    %3 = vector.shape_cast %2 : vector<256xf32> to vector<256x1xf32>
    %cst_1 = arith.constant 1.000000e+00 : f32
    %4 = vector.broadcast %cst_1 : f32 to vector<256x1xf32>
    %5 = arith.addf %3, %4 : vector<256x1xf32>
    %6 = arith.extf %0 : vector<256x256xbf16> to vector<256x256xf32>
    %cst_2 = arith.constant dense<0.000000e+00> : vector<256xf32>
    %7 = vector.multi_reduction <add>, %6, %cst_2 [0] : vector<256x256xf32> to vector<256xf32>
    %8 = vector.shape_cast %7 : vector<256xf32> to vector<1x256xf32>
    %cst_3 = arith.constant 1.000000e+00 : f32
    %9 = vector.broadcast %cst_3 : f32 to vector<1x256xf32>
    %10 = arith.addf %8, %9 : vector<1x256xf32>
    %11 = math.rsqrt %5 : vector<256x1xf32>
    %12 = arith.truncf %11 : vector<256x1xf32> to vector<256x1xbf16>
    %13 = math.rsqrt %10 : vector<1x256xf32>
    %14 = arith.truncf %13 : vector<1x256xf32> to vector<1x256xbf16>
    %15 = tpu.iota {dimensions = array<i32: 0>} : vector<256x256xi32>
    %16 = tpu.iota {dimensions = array<i32: 1>} : vector<256x256xi32>
    %17 = arith.cmpi eq, %15, %16 : vector<256x256xi32>
    %cst_4 = arith.constant 1.000000e+00 : bf16
    %18 = vector.broadcast %cst_4 : bf16 to vector<256x256xbf16>
    %19 = arith.addf %0, %18 : vector<256x256xbf16>
    %20 = arith.select %17, %19, %0 : vector<256x256xi1>, vector<256x256xbf16>
    %21 = vector.broadcast %12 : vector<256x1xbf16> to vector<256x256xbf16>
    %22 = arith.mulf %21, %20 : vector<256x256xbf16>
    %23 = vector.broadcast %14 : vector<1x256xbf16> to vector<256x256xbf16>
    %24 = arith.mulf %22, %23 : vector<256x256xbf16>
    %c0_5 = arith.constant 0 : index
    %c0_6 = arith.constant 0 : index
    %25 = vector.load %arg8[%c0_5, %c0_6] : memref<256x256xbf16, #tpu.memory_space<vmem>>, vector<256x256xbf16>
    tpu.vector_store %arg8[%c0_5, %c0_6], %24 {strides = array<i32>} : memref<256x256xbf16, #tpu.memory_space<vmem>>, vector<256x256xbf16>,
    %c0_7 = arith.constant 0 : index
    %c0_8 = arith.constant 0 : index
    %26 = vector.load %arg2[%c0_7, %c0_8] : memref<256x128xbf16, #tpu.memory_space<vmem>>, vector<256x128xbf16>
    %c0_9 = arith.constant 0 : index
    %c0_10 = arith.constant 0 : index
    %27 = vector.load %arg3[%c0_9, %c0_10] : memref<128x128xbf16, #tpu.memory_space<vmem>>, vector<128x128xbf16>
    %cst_11 = arith.constant dense<0.000000e+00> : vector<256x128xf32>
    %28 = tpu.matmul %26, %27, %cst_11 {dimension_numbers = #tpu.dot_dimension_numbers<[1], [0], [0], [1], [0, 0, 1, 1], [], []>} : vector<256x128xbf16>, vector<128x128xbf16>, vector<256x128xf32> -> vector<256x128xf32>
    %c0_12 = arith.constant 0 : index
    %c0_13 = arith.constant 0 : index
    %29 = vector.load %arg5[%c0_12, %c0_13] : memref<1x128xf32, #tpu.memory_space<vmem>>, vector<1x128xf32>
    %30 = vector.broadcast %29 : vector<1x128xf32> to vector<256x128xf32>
    %31 = arith.addf %28, %30 : vector<256x128xf32>
    %c0_14 = arith.constant 0 : index
    %c0_15 = arith.constant 0 : index
    %32 = vector.load %arg8[%c0_14, %c0_15] : memref<256x256xbf16, #tpu.memory_space<vmem>>, vector<256x256xbf16>
    %33 = arith.truncf %31 : vector<256x128xf32> to vector<256x128xbf16>
    %cst_16 = arith.constant dense<0.000000e+00> : vector<256x128xf32>
    %34 = tpu.matmul %32, %33, %cst_16 {dimension_numbers = #tpu.dot_dimension_numbers<[1], [0], [0], [1], [0, 0, 1, 1], [], []>} : vector<256x256xbf16>, vector<256x128xbf16>, vector<256x128xf32> -> vector<256x128xf32>
    %cst_17 = arith.constant 0.000000e+00 : f32
    %35 = vector.broadcast %cst_17 : f32 to vector<256x128xf32>
    %36 = arith.maximumf %34, %35 : vector<256x128xf32>
    %37 = arith.truncf %36 : vector<256x128xf32> to vector<256x128xbf16>
    %c0_18 = arith.constant 0 : index
    %c0_19 = arith.constant 0 : index
    %38 = vector.load %arg9[%c0_18, %c0_19] : memref<256x128xbf16, #tpu.memory_space<vmem>>, vector<256x128xbf16>
    tpu.vector_store %arg9[%c0_18, %c0_19], %37 {strides = array<i32>} : memref<256x128xbf16, #tpu.memory_space<vmem>>, vector<256x128xbf16>,
    %c0_20 = arith.constant 0 : index
    %c0_21 = arith.constant 0 : index
    %39 = vector.load %arg9[%c0_20, %c0_21] : memref<256x128xbf16, #tpu.memory_space<vmem>>, vector<256x128xbf16>
    %c0_22 = arith.constant 0 : index
    %c0_23 = arith.constant 0 : index
    %40 = vector.load %arg4[%c0_22, %c0_23] : memref<128x128xbf16, #tpu.memory_space<vmem>>, vector<128x128xbf16>
    %cst_24 = arith.constant dense<0.000000e+00> : vector<256x128xf32>
    %41 = tpu.matmul %39, %40, %cst_24 {dimension_numbers = #tpu.dot_dimension_numbers<[1], [0], [0], [1], [0, 0, 1, 1], [], []>} : vector<256x128xbf16>, vector<128x128xbf16>, vector<256x128xf32> -> vector<256x128xf32>
    %c0_25 = arith.constant 0 : index
    %c0_26 = arith.constant 0 : index
    %42 = vector.load %arg6[%c0_25, %c0_26] : memref<1x128xf32, #tpu.memory_space<vmem>>, vector<1x128xf32>
    %43 = vector.broadcast %42 : vector<1x128xf32> to vector<256x128xf32>
    %44 = arith.addf %41, %43 : vector<256x128xf32>
    %c0_27 = arith.constant 0 : index
    %c0_28 = arith.constant 0 : index
    %45 = vector.load %arg8[%c0_27, %c0_28] : memref<256x256xbf16, #tpu.memory_space<vmem>>, vector<256x256xbf16>
    %46 = arith.truncf %44 : vector<256x128xf32> to vector<256x128xbf16>
    %cst_29 = arith.constant dense<0.000000e+00> : vector<256x128xf32>
    %47 = tpu.matmul %45, %46, %cst_29 {dimension_numbers = #tpu.dot_dimension_numbers<[1], [0], [0], [1], [0, 0, 1, 1], [], []>} : vector<256x256xbf16>, vector<256x128xbf16>, vector<256x128xf32> -> vector<256x128xf32>
    %cst_30 = arith.constant 0.000000e+00 : f32
    %48 = vector.broadcast %cst_30 : f32 to vector<256x128xf32>
    %49 = arith.maximumf %47, %48 : vector<256x128xf32>
    %c0_31 = arith.constant 0 : index
    %c0_32 = arith.constant 0 : index
    %50 = vector.load %arg7[%c0_31, %c0_32] : memref<256x128xf32, #tpu.memory_space<vmem>>, vector<256x128xf32>
    tpu.vector_store %arg7[%c0_31, %c0_32], %49 {strides = array<i32>} : memref<256x128xf32, #tpu.memory_space<vmem>>, vector<256x128xf32>,
    return
  }
  func.func @transform_1(%arg0: i32) -> (i32, i32) {
    %c0_i32 = arith.constant 0 : i32
    %c0_i32_0 = arith.constant 0 : i32
    %c0_i32_1 = arith.constant 0 : i32
    return %c0_i32, %c0_i32_0 : i32, i32
  }
  func.func @transform_2(%arg0: i32) -> (i32, i32) {
    %c0_i32 = arith.constant 0 : i32
    %c0_i32_0 = arith.constant 0 : i32
    %c0_i32_1 = arith.constant 0 : i32
    return %c0_i32, %c0_i32_0 : i32, i32
  }
  func.func @transform_3(%arg0: i32) -> (i32, i32) {
    %c0_i32 = arith.constant 0 : i32
    %c0_i32_0 = arith.constant 0 : i32
    %c0_i32_1 = arith.constant 0 : i32
    return %c0_i32, %c0_i32_0 : i32, i32
  }
  func.func @transform_4(%arg0: i32) -> (i32, i32) {
    %c0_i32 = arith.constant 0 : i32
    %c0_i32_0 = arith.constant 0 : i32
    %c0_i32_1 = arith.constant 0 : i32
    return %c0_i32, %c0_i32_0 : i32, i32
  }
  func.func @transform_5(%arg0: i32) -> (i32, i32) {
    %c0_i32 = arith.constant 0 : i32
    %c0_i32_0 = arith.constant 0 : i32
    %c0_i32_1 = arith.constant 0 : i32
    return %c0_i32, %c0_i32_0 : i32, i32
  }
  func.func @transform_6(%arg0: i32) -> (i32, i32) {
    %c0_i32 = arith.constant 0 : i32
    %c0_i32_0 = arith.constant 0 : i32
    %c0_i32_1 = arith.constant 0 : i32
    return %c0_i32, %c0_i32_0 : i32, i32
  }
}

</mosaic_0001>

<bundles_post_ra>
// kernel: tpu_custom_call.1
= control target key start
LH: loop header
LB: loop body
LE: loop exit
PB: predicated region body
PF: predicated region fallthrough
CT: control target
= control target key end

     0   :  { %11 = vsyncpa [#allocation7], 0  ;;  %s5525_s0 = inlined_call_operand.hbm [shape: bf16[256,256], index: 0, kind: input, shape index: {}]   ;;  %s5526_s1 = inlined_call_operand.hbm [shape: bf16[256,128], index: 1, kind: input, shape index: {}]   ;;  %s5527_s2 = inlined_call_operand.hbm [shape: bf16[128,128], index: 2, kind: input, shape index: {}]   ;;  %s5528_s3 = inlined_call_operand.hbm [shape: bf16[128,128], index: 3, kind: input, shape index: {}]   ;;  %s5529_s4 = inlined_call_operand.vmem [shape: f32[1,128], index: 4, kind: input, shape index: {}]   ;;  %s5530_s5 = inlined_call_operand.vmem [shape: f32[1,128], index: 5, kind: input, shape index: {}]   ;;  %s5531_s6 = inlined_call_operand.hbm [shape: f32[256,128], index: 6, kind: output, shape index: {}]  }
   0x1   :  { %12 = vsyncpa [#allocation10], 0 }
   0x2   :  { %13 = vsyncpa [#allocation8], 0  ;;  %s31_s23 = sshll.u32 %s5527_s2, 4  ;;  %s3840_s24 = smov [#allocation9]   ;;  %s32_s23 = int_to_ptr.hbm [resolvable:$true] %s31_s23 }
   0x3   :  { %s33_s25 = sshll.u32 %s3840_s24, 4  ;;  %s18_s28 = sshll.u32 %s5526_s1, 4  ;;  %s34_s25 = int_to_ptr.vmem [resolvable:$true] %s33_s25  ;;  %s19_s28 = int_to_ptr.hbm [resolvable:$true] %s18_s28 }
   0x4   :  { %s3841_s29 = smov 64   ;;  %s3842_s30 = smov 4  }
   0x5   :  { %39 = dma.hbm_to_vmem [thread:$0]  %s32_s23, 1024, %s34_s25, [#allocation10], %s3841_s29, %s3841_s29, %s3842_s30  }
   0x6   :  { %s3843_s7 = smov [#allocation6]   ;;  %s44_s11 = sshll.u32 %s5528_s3, 4  ;;  %s45_s11 = int_to_ptr.hbm [resolvable:$true] %s44_s11 }
   0x7   :  { %s20_s8 = sshll.u32 %s3843_s7, 4  ;;  %s3844_s2 = smov [#allocation11]   ;;  %s21_s8 = int_to_ptr.vmem [resolvable:$true] %s20_s8 }
   0x8   :  { %26 = dma.hbm_to_vmem [thread:$0]  %s19_s28, 2048, %s21_s8, [#allocation7], %s3841_s29, %s3841_s29, %s3842_s30  }
   0x9   :  { %s46_s12 = sshll.u32 %s3844_s2, 4  ;;  %s47_s12 = int_to_ptr.vmem [resolvable:$true] %s46_s12 }
   0xa   :  { %52 = dma.hbm_to_vmem [thread:$0]  %s45_s11, 1024, %s47_s12, [#allocation10], %s3841_s29, %s3841_s29, %s3842_s30  }
   0xb   :  { %3832 = dma.done.wait [#allocation7], 2048  }
   0xc   :  { %3833 = vsyncadd [#allocation7], 4294965248 }
   0xd   :  { %3834 = dma.done.wait [#allocation10], 2048  }
   0xe   :  { %3835 = vsyncadd [#allocation10], 4294965248  ;;  %s76_s14 = sshll.u32 %s5525_s0, 4  ;;  %s3845_s15 = smov [#allocation2]   ;;  %s77_s14 = int_to_ptr.hbm [resolvable:$true] %s76_s14 }
   0xf   :  { %s78_s16 = sshll.u32 %s3845_s15, 4  ;;  %s79_s16 = int_to_ptr.vmem [resolvable:$true] %s78_s16 }
  0x10   :  { %81 = dma.hbm_to_vmem [thread:$0]  %s77_s14, 4096, %s79_s16, [#allocation5] }
  0x11   :  { %3836 = dma.done.wait [#allocation5], 4096 }
  0x12   :  { %3837 = vsyncadd [#allocation5], 4294963200  ;;  %v3405_v0 = vld [vmem:[#allocation9 + $0x38] sm:$0xff]  ;;  %v3404_v1 = vld [vmem:[#allocation9 + $0x30] sm:$0xff]  ;;  %vm3846_vm3 = vmmov 0   ;;  %s2913_s21 = sshll.u32 %s5531_s6, 4  ;;  %s2914_s21 = int_to_ptr.hbm [resolvable:$true] %s2913_s21 }
  0x13   :  { %1601 = vmatpush.bf16.msra.mxu0 %v3405_v0  ;;  %3589 = vmatpush.bf16.msra.mxu2 %v3405_v0  ;;  %v3403_v2 = vld [vmem:[#allocation9 + $0x28] sm:$0xff]  ;;  %v3402_v3 = vld [vmem:[#allocation9 + $0x20] sm:$0xff]  ;;  %v3401_v4 = vld [vmem:[#allocation9 + $0x18] sm:$0xff]  ;;  %s3848_s22 = smov 128   ;;  %s3849_s23 = smov 8  }
  0x14   :  { %v3400_v5 = vld [vmem:[#allocation9 + $0x10] sm:$0xff]  ;;  %v3399_v6 = vld [vmem:[#allocation9 + $0x8] sm:$0xff]  ;;  %v3398_v7 = vld [vmem:[#allocation9] sm:$0xff] }
  0x15   :  { %v3382_v8 = vld [vmem:[#allocation6] sm:$0xff]  ;;  %v3383_v10 = vld [vmem:[#allocation6 + $0x8] sm:$0xff]  ;;  %v3384_v12 = vld [vmem:[#allocation6 + $0x10] sm:$0xff] }
  0x16   :  { %v3390_v9 = vld [vmem:[#allocation6 + $0x40] sm:$0xff]  ;;  %v3391_v11 = vld [vmem:[#allocation6 + $0x48] sm:$0xff]  ;;  %v3392_v13 = vld [vmem:[#allocation6 + $0x50] sm:$0xff] }
  0x17   :  { %1602 = vmatpush.bf16.msra.mxu0 %v3404_v1  ;;  %3590 = vmatpush.bf16.msra.mxu2 %v3404_v1  ;;  %v3385_v14 = vld [vmem:[#allocation6 + $0x18] sm:$0xff]  ;;  %v3897_v16 = vld [vmem:[#allocation2] sm:$0xff]  ;;  %v3905_v24 = vld [vmem:[#allocation2 + $0x8] sm:$0xff] }
  0x18   :  { %v3393_v15 = vld [vmem:[#allocation6 + $0x58] sm:$0xff]  ;;  %v3386_v17 = vld [vmem:[#allocation6 + $0x20] sm:$0xff]  ;;  %v118_v19 = vunpack.c.l.bf16 %v3897_v16  ;;  %v119_v20 = vunpack.c.h.bf16 %v3897_v16  ;;  %v120_v25 = vunpack.c.l.bf16 %v3905_v24  ;;  %v121_v26 = vunpack.c.h.bf16 %v3905_v24  ;;  %v3917_v32 = vld [vmem:[#allocation2 + $0x10] sm:$0xff] }
  0x19   :  { %v3394_v18 = vld [vmem:[#allocation6 + $0x60] sm:$0xff]  ;;  %v3387_v33 = vld [vmem:[#allocation6 + $0x28] sm:$0xff]  ;;  %v122_v35 = vunpack.c.l.bf16 %v3917_v32  ;;  %v123_v36 = vunpack.c.h.bf16 %v3917_v32  ;;  %v3933_v43 = vld [vmem:[#allocation2 + $0x18] sm:$0xff] }
  0x1a   :  { %v182_v21 = vadd.f32 %v119_v20, %v118_v19  ;;  %v3901_v22 = vadd.f32 1.0, %v118_v19  ;;  %v3903_v23 = vadd.f32 1.0, %v119_v20  ;;  %v3911_v28 = vadd.f32 1.0, %v120_v25  ;;  %v3395_v34 = vld [vmem:[#allocation6 + $0x68] sm:$0xff]  ;;  %v3921_v38 = vld [vmem:[#allocation2 + $0x80] sm:$0xff]  ;;  %v3388_v56 = vld [vmem:[#allocation6 + $0x30] sm:$0xff] }
  0x1b   :  { %1603 = vmatpush.bf16.msra.mxu0 %v3403_v2  ;;  %3591 = vmatpush.bf16.msra.mxu2 %v3403_v2  ;;  %v3913_v29 = vadd.f32 1.0, %v121_v26  ;;  %v185_v30 = vadd.f32 %v121_v26, %v120_v25  ;;  %v188_v37 = vadd.f32 %v123_v36, %v122_v35  ;;  %v3924_v39 = vunpack.c.l.bf16 %v3921_v38  ;;  %v103_v44 = vld [vmem:[#allocation2 + $0x88] sm:$0xff]  ;;  %v3396_v57 = vld [vmem:[#allocation6 + $0x70] sm:$0xff]  ;;  %v90_v58 = vld [vmem:[#allocation2 + $0x20] sm:$0xff] }
  0x1c   :  { %183 = vadd.xlane.f32.xlu0 %v182_v21  ;;  %v3927_v40 = vunpack.c.h.bf16 %v3921_v38  ;;  %v3929_v41 = vadd.f32 1.0, %v122_v35  ;;  %v3931_v42 = vadd.f32 1.0, %v123_v36  ;;  %v124_v47 = vunpack.c.l.bf16 %v3933_v43  ;;  %v97_v46 = vld [vmem:[#allocation2 + $0x58] sm:$0xff] }
  0x1d   :  { %189 = vadd.xlane.f32.xlu1 %v188_v37  ;;  %v125_v48 = vunpack.c.h.bf16 %v3933_v43  ;;  %v3941_v49 = vunpack.c.l.bf16 %v103_v44  ;;  %v3943_v50 = vunpack.c.h.bf16 %v103_v44  ;;  %v126_v59 = vunpack.c.l.bf16 %v90_v58 }
  0x1e   :  { %v230_v45 = vadd.f32 %v3927_v40, %v3924_v39  ;;  %v3945_v52 = vadd.f32 1.0, %v124_v47  ;;  %v127_v60 = vunpack.c.h.bf16 %v90_v58  ;;  %v310_v1 = vadd.f32 %v120_v25, %v118_v19 }
  0x1f   :  { %1604 = vmatpush.bf16.msra.mxu0 %v3402_v3  ;;  %3592 = vmatpush.bf16.msra.mxu2 %v3402_v3  ;;  %v191_v51 = vadd.f32 %v125_v48, %v124_v47  ;;  %v3947_v53 = vadd.f32 1.0, %v125_v48  ;;  %v233_v55 = vadd.f32 %v3943_v50, %v3941_v49  ;;  %v3953_v62 = vadd.f32 1.0, %v126_v59  ;;  %v104_v3 = vld [vmem:[#allocation2 + $0x90] sm:$0xff] }
  0x20   :  { %231 = vadd.xlane.f32.xlu2 %v230_v45  ;;  %5580 = vst [vmem:[#allocation21_spill] sm:$0xff] %v3945_v52  ;;  %v194_v61 = vadd.f32 %v127_v60, %v126_v59  ;;  %v3955_v63 = vadd.f32 1.0, %v127_v60  ;;  %v347_v2 = vadd.f32 %v121_v26, %v119_v20  ;;  %v311_v19 = vadd.f32 %v310_v1, %v122_v35  ;;  %v92_v45 = vld [vmem:[#allocation2 + $0x30] sm:$0xff] }
  0x21   :  { %5581 = vst [vmem:[#allocation22_spill] sm:$0xff] %v3947_v53  ;;  %v4045_v27 = vunpack.c.l.bf16 %v97_v46 }
  0x22   :  { %5582 = vst [vmem:[#allocation23_spill] sm:$0xff] %v3953_v62  ;;  %v348_v20 = vadd.f32 %v347_v2, %v123_v36  ;;  %v312_v37 = vadd.f32 %v311_v19, %v124_v47  ;;  %v106_v47 = vld [vmem:[#allocation2 + $0xa0] sm:$0xff] }
  0x23   :  { %1605 = vmatpush.bf16.msra.mxu0 %v3401_v4  ;;  %3593 = vmatpush.bf16.msra.mxu2 %v3401_v4  ;;  %5583 = vst [vmem:[#allocation24_spill] sm:$0xff] %v3955_v63  ;;  %v91_v4 = vld [vmem:[#allocation2 + $0x28] sm:$0xff] }
  0x24   :  { %186 = vadd.xlane.f32.xlu0 %v185_v30  ;;  %v349_v44 = vadd.f32 %v348_v20, %v125_v48  ;;  %v4005_v20 = vunpack.c.l.bf16 %v106_v47 }
  0x25   :  { %192 = vadd.xlane.f32.xlu1 %v191_v51  ;;  %v130_v51 = vunpack.c.l.bf16 %v92_v45 }
  0x26   :  { %v350_v1 = vadd.f32 %v349_v44, %v127_v60 }
  0x27   :  { %1606 = vmatpush.bf16.msra.mxu0 %v3400_v5  ;;  %3594 = vmatpush.bf16.msra.mxu2 %v3400_v5  ;;  %v105_v5 = vld [vmem:[#allocation2 + $0x98] sm:$0xff] }
  0x28   :  { %234 = vadd.xlane.f32.xlu2 %v233_v55  ;;  %v131_v55 = vunpack.c.h.bf16 %v92_v45 }
  0x2a   :  { %v3995_v58 = vadd.f32 1.0, %v131_v55 }
  0x2b   :  { %1607 = vmatpush.bf16.msra.mxu0 %v3399_v6  ;;  %3595 = vmatpush.bf16.msra.mxu2 %v3399_v6  ;;  %v3389_v6 = vld [vmem:[#allocation6 + $0x38] sm:$0xff] }
  0x2c   :  { %195 = vadd.xlane.f32.xlu0 %v194_v61  ;;  %5591 = vst [vmem:[#allocation32_spill] sm:$0xff] %v3995_v58  ;;  %v313_v61 = vadd.f32 %v312_v37, %v126_v59  ;;  %v4007_v59 = vunpack.c.h.bf16 %v106_v47 }
  0x2f   :  { %1608 = vmatpush.bf16.msra.mxu0 %v3398_v7  ;;  %3596 = vmatpush.bf16.msra.mxu2 %v3398_v7  ;;  %v3397_v7 = vld [vmem:[#allocation6 + $0x78] sm:$0xff] }
  0x32   :  { %1609 = vmatmul.bf16.vlgmr.msra.gmra.mxu0 %v3382_v8  ;;  %1649 = vmatmul.bf16.vlgmr.msra.gmra.mxu2 %v3390_v9  ;;  %v3959_v8 = vunpack.c.l.bf16 %v104_v3  ;;  %v3961_v9 = vunpack.c.h.bf16 %v104_v3 }
  0x42   :  { %1614 = vmatmul.bf16.gmra.mxu0 %v3383_v10  ;;  %1654 = vmatmul.bf16.gmra.mxu2 %v3391_v11  ;;  %v128_v10 = vunpack.c.l.bf16 %v91_v4  ;;  %v129_v11 = vunpack.c.h.bf16 %v91_v4 }
  0x44   :  { %v3975_v21 = vadd.f32 1.0, %v128_v10  ;;  %v3977_v25 = vadd.f32 1.0, %v129_v11  ;;  %v314_v3 = vadd.f32 %v313_v61, %v128_v10  ;;  %v351_v4 = vadd.f32 %v350_v1, %v129_v11 }
  0x45   :  { %v242_v1 = vadd.f32 %v4007_v59, %v4005_v20 }
  0x46   :  { %5586 = vst [vmem:[#allocation27_spill] sm:$0xff] %v3975_v21  ;;  %v352_v37 = vadd.f32 %v351_v4, %v131_v55 }
  0x47   :  { %5587 = vst [vmem:[#allocation28_spill] sm:$0xff] %v3977_v25 }
  0x52   :  { %1619 = vmatmul.bf16.gmra.mxu0 %v3384_v12  ;;  %1659 = vmatmul.bf16.gmra.mxu2 %v3392_v13  ;;  %v3963_v12 = vunpack.c.l.bf16 %v105_v5  ;;  %v3965_v13 = vunpack.c.h.bf16 %v105_v5  ;;  %v93_v5 = vld [vmem:[#allocation2 + $0x38] sm:$0xff] }
  0x53   :  { %v132_v48 = vunpack.c.l.bf16 %v93_v5 }
  0x54   :  { %v239_v30 = vadd.f32 %v3965_v13, %v3963_v12 }
  0x56   :  { %240 = vadd.xlane.f32.xlu0 %v239_v30  ;;  %v4009_v30 = vadd.f32 1.0, %v132_v48 }
  0x58   :  { %5592 = vst [vmem:[#allocation33_spill] sm:$0xff] %v4009_v30 }
  0x5e   :  { %243 = vadd.xlane.f32.xlu0 %v242_v1 }
  0x62   :  { %1624 = vmatmul.bf16.gmra.mxu0 %v3385_v14  ;;  %1664 = vmatmul.bf16.gmra.mxu2 %v3393_v15  ;;  %v236_v14 = vadd.f32 %v3961_v9, %v3959_v8  ;;  %v3970_v15 = vadd.f32 1.0, %v3959_v8 }
  0x64   :  { %5584 = vst [vmem:[#allocation25_spill] sm:$0xff] %v3970_v15  ;;  %237 = vadd.xlane.f32.xlu2 %v236_v14 }
  0x72   :  { %1629 = vmatmul.bf16.gmra.mxu0 %v3386_v17  ;;  %1669 = vmatmul.bf16.gmra.mxu2 %v3394_v18  ;;  %v3973_v17 = vadd.f32 1.0, %v3961_v9  ;;  %v197_v18 = vadd.f32 %v129_v11, %v128_v10  ;;  %v315_v11 = vadd.f32 %v314_v3, %v130_v51 }
  0x74   :  { %5585 = vst [vmem:[#allocation26_spill] sm:$0xff] %v3973_v17  ;;  %198 = vadd.xlane.f32.xlu1 %v197_v18  ;;  %v316_v4 = vadd.f32 %v315_v11, %v132_v48  ;;  %v101_v17 = vld [vmem:[#allocation2 + $0x78] sm:$0xff] }
  0x82   :  { %1634 = vmatmul.bf16.gmra.mxu0 %v3387_v33  ;;  %1674 = vmatmul.bf16.gmra.mxu2 %v3395_v34  ;;  %v3984_v33 = vadd.f32 1.0, %v3963_v12  ;;  %v3987_v34 = vadd.f32 1.0, %v3965_v13 }
  0x84   :  { %5588 = vst [vmem:[#allocation29_spill] sm:$0xff] %v3984_v33 }
  0x85   :  { %5589 = vst [vmem:[#allocation30_spill] sm:$0xff] %v3987_v34 }
  0x92   :  { %1639 = vmatmul.bf16.gmra.mxu0 %v3388_v56  ;;  %1679 = vmatmul.bf16.gmra.mxu2 %v3396_v57  ;;  %v200_v56 = vadd.f32 %v131_v55, %v130_v51  ;;  %v3993_v57 = vadd.f32 1.0, %v130_v51  ;;  %v4029_v51 = vadd.f32 1.0, %v4007_v59 }
  0x94   :  { %5590 = vst [vmem:[#allocation31_spill] sm:$0xff] %v3993_v57  ;;  %201 = vadd.xlane.f32.xlu1 %v200_v56  ;;  %v4111_v57 = vunpack.c.h.bf16 %v101_v17 }
  0x95   :  { %5597 = vst [vmem:[#allocation38_spill] sm:$0xff] %v4029_v51 }
  0xa2   :  { %1644 = vmatmul.bf16.gmra.mxu0 %v3389_v6  ;;  %1684 = vmatmul.bf16.gmra.mxu2 %v3397_v7  ;;  %v107_v6 = vld [vmem:[#allocation2 + $0xa8] sm:$0xff]  ;;  %v133_v7 = vunpack.c.h.bf16 %v93_v5  ;;  %v4026_v5 = vadd.f32 1.0, %v4005_v20 }
  0xa3   :  { %v3999_v14 = vunpack.c.l.bf16 %v107_v6  ;;  %v4001_v18 = vunpack.c.h.bf16 %v107_v6 }
  0xa4   :  { %v203_v60 = vadd.f32 %v133_v7, %v132_v48  ;;  %v4011_v10 = vadd.f32 1.0, %v133_v7  ;;  %5596 = vst [vmem:[#allocation37_spill] sm:$0xff] %v4026_v5  ;;  %v353_v6 = vadd.f32 %v352_v37, %v133_v7  ;;  %v96_v48 = vld [vmem:[#allocation2 + $0x50] sm:$0xff]  ;;  %v4047_v5 = vunpack.c.h.bf16 %v97_v46 }
  0xa5   :  { %v245_v44 = vadd.f32 %v4001_v18, %v3999_v14  ;;  %v4016_v45 = vadd.f32 1.0, %v3999_v14  ;;  %v4021_v61 = vadd.f32 1.0, %v4001_v18  ;;  %v138_v11 = vunpack.c.l.bf16 %v96_v48 }
  0xa6   :  { %5593 = vst [vmem:[#allocation34_spill] sm:$0xff] %v4011_v10  ;;  %204 = vadd.xlane.f32.xlu2 %v203_v60  ;;  %v94_v60 = vld [vmem:[#allocation2 + $0x40] sm:$0xff]  ;;  %v139_v37 = vunpack.c.h.bf16 %v96_v48  ;;  %v100_v10 = vld [vmem:[#allocation2 + $0x70] sm:$0xff] }
  0xa7   :  { %5594 = vst [vmem:[#allocation35_spill] sm:$0xff] %v4016_v45  ;;  %246 = vadd.xlane.f32.xlu1 %v245_v44  ;;  %v134_v56 = vunpack.c.l.bf16 %v94_v60  ;;  %v135_v2 = vunpack.c.h.bf16 %v94_v60  ;;  %v95_v44 = vld [vmem:[#allocation2 + $0x48] sm:$0xff] }
  0xa8   :  { %5595 = vst [vmem:[#allocation36_spill] sm:$0xff] %v4021_v61  ;;  %v136_v54 = vunpack.c.l.bf16 %v95_v44  ;;  %v137_v31 = vunpack.c.h.bf16 %v95_v44  ;;  %v98_v44 = vld [vmem:[#allocation2 + $0x60] sm:$0xff] }
  0xa9   :  { %v206_v35 = vadd.f32 %v135_v2, %v134_v56  ;;  %v4039_v26 = vadd.f32 1.0, %v134_v56  ;;  %v4041_v0 = vadd.f32 1.0, %v135_v2  ;;  %v317_v55 = vadd.f32 %v316_v4, %v134_v56  ;;  %v109_v56 = vld [vmem:[#allocation2 + $0xb8] sm:$0xff] }
  0xaa   :  { %v354_v1 = vadd.f32 %v353_v6, %v135_v2  ;;  %v108_v2 = vld [vmem:[#allocation2 + $0xb0] sm:$0xff]  ;;  %v4051_v45 = vunpack.c.l.bf16 %v109_v56  ;;  %v4053_v7 = vunpack.c.h.bf16 %v109_v56  ;;  %v4062_v48 = vunpack.c.l.bf16 %v98_v44 }
  0xab   :  { %5598 = vst [vmem:[#allocation39_spill] sm:$0xff] %v4039_v26  ;;  %v318_v60 = vadd.f32 %v317_v55, %v136_v54  ;;  %v209_v30 = vadd.f32 %v137_v31, %v136_v54  ;;  %v4083_v58 = vadd.f32 1.0, %v136_v54  ;;  %v4085_v33 = vadd.f32 1.0, %v137_v31 }
  0xac   :  { %5599 = vst [vmem:[#allocation40_spill] sm:$0xff] %v4041_v0  ;;  %v355_v47 = vadd.f32 %v354_v1, %v137_v31  ;;  %v4059_v1 = vunpack.c.h.bf16 %v108_v2  ;;  %v251_v26 = vadd.f32 %v4053_v7, %v4051_v45  ;;  %v99_v0 = vld [vmem:[#allocation2 + $0x68] sm:$0xff] }
  0xad   :  { %v319_v4 = vadd.f32 %v318_v60, %v138_v11  ;;  %v4070_v60 = vadd.f32 1.0, %v4053_v7  ;;  %5604 = vst [vmem:[#allocation45_spill] sm:$0xff] %v4083_v58  ;;  %210 = vadd.xlane.f32.xlu0 %v209_v30  ;;  %v4092_v25 = vunpack.c.l.bf16 %v99_v0  ;;  %v4094_v15 = vunpack.c.h.bf16 %v99_v0 }
  0xae   :  { %207 = vadd.xlane.f32.xlu2 %v206_v35  ;;  %v356_v6 = vadd.f32 %v355_v47, %v139_v37  ;;  %v4055_v35 = vunpack.c.l.bf16 %v108_v2  ;;  %v4067_v47 = vadd.f32 1.0, %v4051_v45  ;;  %5605 = vst [vmem:[#allocation46_spill] sm:$0xff] %v4085_v33  ;;  %v4106_v30 = vunpack.c.l.bf16 %v101_v17 }
  0xaf   :  { %v4003_v19 = vpop.f32.mrf.mxu0  ;;  %v320_v46 = vadd.f32 %v319_v4, %v4045_v27  ;;  %5601 = vst [vmem:[#allocation42_spill] sm:$0xff] %v4070_v60  ;;  %v4079_v4 = vadd.f32 1.0, %v4059_v1  ;;  %v212_v58 = vadd.f32 %v139_v37, %v138_v11  ;;  %v4116_v33 = vadd.f32 1.0, %v139_v37 }
  0xb0   :  { %5600 = vst [vmem:[#allocation41_spill] sm:$0xff] %v4067_v47  ;;  %v357_v56 = vadd.f32 %v356_v6, %v4047_v5  ;;  %v248_v2 = vadd.f32 %v4059_v1, %v4055_v35  ;;  %v4076_v61 = vadd.f32 1.0, %v4055_v35  ;;  %v4087_v6 = vunpack.c.h.bf16 %v98_v44  ;;  %v111_v47 = vld [vmem:[#allocation2 + $0xc8] sm:$0xff] }
  0xb1   :  { %5603 = vst [vmem:[#allocation44_spill] sm:$0xff] %v4079_v4  ;;  %v321_v21 = vadd.f32 %v320_v46, %v4062_v48  ;;  %v168_v62 = vunpack.c.l.bf16 %v111_v47  ;;  %v4130_v63 = vunpack.c.h.bf16 %v111_v47 }
  0xb2   :  { %5602 = vst [vmem:[#allocation43_spill] sm:$0xff] %v4076_v61  ;;  %249 = vadd.xlane.f32.xlu1 %v248_v2  ;;  %v358_v31 = vadd.f32 %v357_v56, %v4087_v6  ;;  %v4104_v2 = vunpack.c.h.bf16 %v100_v10  ;;  %v4114_v56 = vadd.f32 1.0, %v138_v11 }
  0xb3   :  { %v322_v34 = vadd.f32 %v321_v21, %v4092_v25  ;;  %5607 = vst [vmem:[#allocation48_spill] sm:$0xff] %v4116_v33  ;;  %v257_v47 = vadd.f32 %v4130_v63, %v168_v62 }
  0xb4   :  { %v359_v46 = vadd.f32 %v358_v31, %v4094_v15  ;;  %5606 = vst [vmem:[#allocation47_spill] sm:$0xff] %v4114_v56 }
  0xb5   :  { %v4033_v3 = vpop.f32.mrf.mxu2  ;;  %213 = vadd.xlane.f32.xlu0 %v212_v58 }
  0xb6   :  { %252 = vadd.xlane.f32.xlu2 %v251_v26  ;;  %v4099_v26 = vunpack.c.l.bf16 %v100_v10  ;;  %v360_v21 = vadd.f32 %v359_v46, %v4104_v2 }
  0xb7   :  { %v4037_v36 = vpop.f32.mrf.mxu0 }
  0xb8   :  { %v323_v54 = vadd.f32 %v322_v34, %v4099_v26  ;;  %v361_v17 = vadd.f32 %v360_v21, %v4111_v57  ;;  %v110_v34 = vld [vmem:[#allocation2 + $0xc0] sm:$0xff] }
  0xb9   :  { %v166_v60 = vunpack.c.l.bf16 %v110_v34 }
  0xba   :  { %v324_v61 = vadd.f32 %v323_v54, %v4106_v30  ;;  %v362_v37 = vadd.f32 %v361_v17, %v3927_v40  ;;  %v167_v54 = vunpack.c.h.bf16 %v110_v34  ;;  %v4141_v17 = vadd.f32 1.0, %v4045_v27 }
  0xbb   :  { %v4134_v10 = vadd.f32 1.0, %v166_v60  ;;  %v4144_v34 = vadd.f32 1.0, %v4047_v5 }
  0xbc   :  { %v325_v31 = vadd.f32 %v324_v61, %v3924_v39  ;;  %v363_v61 = vadd.f32 %v362_v37, %v3943_v50  ;;  %v254_v21 = vadd.f32 %v167_v54, %v166_v60  ;;  %v4136_v56 = vadd.f32 1.0, %v167_v54  ;;  %5610 = vst [vmem:[#allocation51_spill] sm:$0xff] %v4141_v17 }
  0xbd   :  { %v4049_v51 = vpop.f32.mrf.mxu2  ;;  %5608 = vst [vmem:[#allocation49_spill] sm:$0xff] %v4134_v10  ;;  %v4152_v37 = vadd.f32 1.0, %v4130_v63  ;;  %258 = vadd.xlane.f32.xlu0 %v257_v47 }
  0xbe   :  { %v326_v11 = vadd.f32 %v325_v31, %v3941_v49  ;;  %5609 = vst [vmem:[#allocation50_spill] sm:$0xff] %v4136_v56  ;;  %v215_v31 = vadd.f32 %v4047_v5, %v4045_v27  ;;  %255 = vadd.xlane.f32.xlu2 %v254_v21  ;;  %v364_v5 = vadd.f32 %v363_v61, %v3961_v9  ;;  %v4171_v9 = vadd.f32 1.0, %v4062_v48 }
  0xbf   :  { %v4057_v55 = vpop.f32.mrf.mxu0  ;;  %5611 = vst [vmem:[#allocation52_spill] sm:$0xff] %v4144_v34  ;;  %v4174_v61 = vadd.f32 1.0, %v4087_v6 }
  0xc0   :  { %v327_v58 = vadd.f32 %v326_v11, %v3959_v8  ;;  %v4149_v11 = vadd.f32 1.0, %v168_v62  ;;  %5613 = vst [vmem:[#allocation54_spill] sm:$0xff] %v4152_v37  ;;  %216 = vadd.xlane.f32.xlu1 %v215_v31  ;;  %v365_v10 = vadd.f32 %v364_v5, %v3965_v13  ;;  %v113_v31 = vld [vmem:[#allocation2 + $0xd8] sm:$0xff] }
  0xc1   :  { %5614 = vst [vmem:[#allocation55_spill] sm:$0xff] %v4171_v9 }
  0xc2   :  { %5612 = vst [vmem:[#allocation53_spill] sm:$0xff] %v4149_v11  ;;  %v328_v33 = vadd.f32 %v327_v58, %v3963_v12  ;;  %v366_v12 = vadd.f32 %v365_v10, %v4007_v59  ;;  %v218_v58 = vadd.f32 %v4087_v6, %v4062_v48 }
  0xc3   :  { %5615 = vst [vmem:[#allocation56_spill] sm:$0xff] %v4174_v61 }
  0xc4   :  { %v329_v8 = vadd.f32 %v328_v33, %v4005_v20  ;;  %v367_v20 = vadd.f32 %v366_v12, %v4001_v18  ;;  %v172_v18 = vunpack.c.l.bf16 %v113_v31 }
  0xc5   :  { %v4101_v44 = vpop.f32.mrf.mxu2 }
  0xc6   :  { %v330_v56 = vadd.f32 %v329_v8, %v3999_v14  ;;  %v112_v14 = vld [vmem:[#allocation2 + $0xd0] sm:$0xff]  ;;  %v368_v10 = vadd.f32 %v367_v20, %v4059_v1  ;;  %v759_v8 = vlaneseq  ;;  %v4193_v1 = vadd.f32 1.0, %v4094_v15 }
  0xc7   :  { %v4109_v0 = vpop.f32.mrf.mxu0  ;;  %v170_v5 = vunpack.c.l.bf16 %v112_v14  ;;  %v171_v12 = vunpack.c.h.bf16 %v112_v14 }
  0xc8   :  { %v331_v33 = vadd.f32 %v330_v56, %v4055_v35  ;;  %219 = vadd.xlane.f32.xlu1 %v218_v58  ;;  %v369_v6 = vadd.f32 %v368_v10, %v4053_v7  ;;  %v173_v56 = vunpack.c.h.bf16 %v113_v31  ;;  %v221_v58 = vadd.f32 %v4094_v15, %v4092_v25  ;;  %5617 = vst [vmem:[#allocation58_spill] sm:$0xff] %v4193_v1  ;;  %v114_v10 = vld [vmem:[#allocation2 + $0xe0] sm:$0xff] }
  0xc9   :  { %v4195_v7 = vadd.f32 1.0, %v172_v18  ;;  %v4201_v14 = vadd.f32 1.0, %v170_v5  ;;  %v4203_v31 = vadd.f32 1.0, %v171_v12  ;;  %v4211_v52 = vshrl.u32 %v759_v8, 7 }
  0xca   :  { %v332_v59 = vadd.f32 %v331_v33, %v4051_v45  ;;  %v4190_v45 = vadd.f32 1.0, %v4092_v25  ;;  %v263_v33 = vadd.f32 %v173_v56, %v172_v18  ;;  %v4197_v20 = vadd.f32 1.0, %v173_v56  ;;  %222 = vadd.xlane.f32.xlu2 %v221_v58  ;;  %v115_v25 = vld [vmem:[#allocation2 + $0xe8] sm:$0xff]  ;;  %v116_v58 = vld [vmem:[#allocation2 + $0xf0] sm:$0xff] }
  0xcb   :  { %5618 = vst [vmem:[#allocation59_spill] sm:$0xff] %v4195_v7  ;;  %v4218_v1 = vunpack.c.l.bf16 %v115_v25  ;;  %v762_v15 = vadd.s32 16, %v4211_v52 }
  0xcc   :  { %v333_v48 = vadd.f32 %v332_v59, %v166_v60  ;;  %5616 = vst [vmem:[#allocation57_spill] sm:$0xff] %v4190_v45  ;;  %v370_v60 = vadd.f32 %v369_v6, %v167_v54  ;;  %v260_v59 = vadd.f32 %v171_v12, %v170_v5  ;;  %v4216_v45 = vand.u32 127, %v759_v8  ;;  %v117_v54 = vld [vmem:[#allocation2 + $0xf8] sm:$0xff] }
  0xcd   :  { %v4124_v4 = vpop.f32.mrf.mxu2  ;;  %5619 = vst [vmem:[#allocation60_spill] sm:$0xff] %v4197_v20  ;;  %v4227_v20 = vunpack.c.l.bf16 %v116_v58  ;;  %v891_v8 = vadd.f32 1.0, %v3924_v39  ;;  %v224_v39 = vadd.f32 %v4104_v2, %v4099_v26 }
  0xce   :  { %v334_v13 = vadd.f32 %v333_v48, %v168_v62  ;;  %5620 = vst [vmem:[#allocation61_spill] sm:$0xff] %v4201_v14  ;;  %261 = vadd.xlane.f32.xlu0 %v260_v59  ;;  %v4209_v48 = vunpack.c.l.bf16 %v114_v10  ;;  %v371_v27 = vadd.f32 %v370_v60, %v4130_v63  ;;  %v184_v59 = vpop.xlane.xlu0 %183  ;;  %v4221_v14 = vunpack.c.h.bf16 %v114_v10 }
  0xcf   :  { %v4128_v46 = vpop.f32.mrf.mxu0  ;;  %5621 = vst [vmem:[#allocation62_spill] sm:$0xff] %v4203_v31  ;;  %v4225_v31 = vadd.s32 128, %v4216_v45  ;;  %v4232_v60 = vunpack.c.h.bf16 %v115_v25  ;;  %vm795_vm0 = vcmp.eq.s32.totalorder %v4211_v52, %v4216_v45  ;;  %vm799_vm1 = vcmp.eq.s32.totalorder %v762_v15, %v4216_v45 }
  0xd0   :  { %264 = vadd.xlane.f32.xlu1 %v263_v33  ;;  %v335_v6 = vadd.f32 %v334_v13, %v170_v5  ;;  %v372_v13 = vadd.f32 %v371_v27, %v171_v12  ;;  %v776_v5 = vadd.s32 128, %v4211_v52  ;;  %v4236_v27 = vunpack.c.l.bf16 %v117_v54  ;;  %vm4248_vm4 = vmpackc.low %vm3846_vm3, %vm795_vm0 }
  0xd1   :  { %v4240_v10 = vunpack.c.h.bf16 %v116_v58  ;;  %v4252_v15 = vunpack.c.h.bf16 %v117_v54  ;;  %vm957_vm5 = vmpackc.low %vm3846_vm3, %vm799_vm1  ;;  %v4263_v9 = vadd.f32 1.0, %v184_v59  ;;  %v4271_v54 = vld [vmem:[%s5529_s4] ss:$0 sm:$0xff]  ;;  %v227_v59 = vadd.f32 %v4111_v57, %v4106_v30 }
  0xd2   :  { %v336_v33 = vadd.f32 %v335_v6, %v172_v18  ;;  %v892_v18 = vadd.f32 1.0, %v3927_v40  ;;  %v373_v6 = vadd.f32 %v372_v13, %v173_v56  ;;  %vm828_vm2 = vcmp.eq.s32.totalorder %v776_v5, %v4225_v31  ;;  %225 = vadd.xlane.f32.xlu2 %v224_v39 }
  0xd3   :  { %vm971_vm6 = vmpackc.low %vm828_vm2, %vm3846_vm3  ;;  %3617 = vrsqrt.f32 %v4263_v9  ;;  %v5624_v5 = vpack.c.bf16 %v3903_v23, %v3901_v22  ;;  %v5625_v39 = vpack.c.bf16 %v3931_v42, %v3929_v41  ;;  %v4312_v41 = vadd.f32 %v4271_v54, %v4037_v36 }
  0xd4   :  { %v337_v63 = vadd.f32 %v336_v33, %v4209_v48  ;;  %v374_v33 = vadd.f32 %v373_v6, %v4221_v14  ;;  %v939_v25 = vpack.c.bf16 %v892_v18, %v891_v8  ;;  %v4260_v6 = vadd.f32 1.0, %v3943_v50 }
  0xd5   :  { %v4161_v21 = vpop.f32.mrf.mxu2  ;;  %v4318_v56 = vadd.f32 %v4271_v54, %v4049_v51  ;;  %v4328_v36 = vadd.f32 %v4271_v54, %v4101_v44  ;;  %v1621_v44 = vadd.f32 %v4271_v54, %v4128_v46  ;;  %vm392_vm7 = vweird.f32 %v4263_v9 }
  0xd6   :  { %v338_v12 = vadd.f32 %v337_v63, %v4218_v1  ;;  %v375_v58 = vadd.f32 %v374_v33, %v4232_v60  ;;  %v4257_v63 = vadd.f32 1.0, %v3941_v49  ;;  %v187_v61 = vpop.xlane.xlu0 %186  ;;  %v4287_v33 = vsel %vm4248_vm4, %v5624_v5, %v3897_v16  ;;  %228 = vadd.xlane.f32.xlu0 %v227_v59 }
  0xd7   :  { %v4165_v53 = vpop.f32.mrf.mxu0  ;;  %v4276_v50 = vadd.f32 1.0, %v187_v61  ;;  %v4293_v61 = vsel %vm957_vm5, %v5625_v39, %v3917_v32  ;;  %v4304_v16 = vadd.f32 %v4271_v54, %v4003_v19  ;;  %v4308_v32 = vadd.f32 %v4271_v54, %v4033_v3  ;;  %5626 = vst [vmem:[#allocation63_spill] sm:$0xff] %v4318_v56 }
  0xd8   :  { %v339_v40 = vadd.f32 %v338_v12, %v4227_v20  ;;  %v376_v49 = vadd.f32 %v375_v58, %v4240_v10  ;;  %v4298_v58 = vsel %vm971_vm6, %v939_v25, %v3921_v38  ;;  %v269_v38 = vadd.f32 %v4232_v60, %v4218_v1 }
  0xd9   :  { %3619 = vrsqrt.f32 %v4276_v50  ;;  %v4322_v19 = vadd.f32 %v4271_v54, %v4057_v55  ;;  %v266_v3 = vadd.f32 %v4221_v14, %v4209_v48  ;;  %v3618_v59 = vpop.eup %3617  ;;  %v1618_v55 = vadd.f32 %v4271_v54, %v4109_v0 }
  0xda   :  { %v340_v12 = vadd.f32 %v339_v40, %v4236_v27  ;;  %v377_v40 = vadd.f32 %v376_v49, %v4252_v15  ;;  %270 = vadd.xlane.f32.xlu2 %v269_v38  ;;  %v4339_v5 = vadd.f32 %v4271_v54, %v4124_v4  ;;  %v387_v0 = vmul.f32 %v3618_v59, %v4263_v9 }
  0xdb   :  { %267 = vadd.xlane.f32.xlu1 %v266_v3  ;;  %vm393_vm8 = vweird.f32 %v3618_v59  ;;  %vm402_vm9 = vweird.f32 %v4276_v50 }
  0xdc   :  { %v341_v18 = vrot.slane %v340_v12, 4  ;;  %v378_v42 = vrot.slane %v377_v40, 4  ;;  %vm4372_vm11 = vmor %vm392_vm7, %vm393_vm8 }
  0xdd   :  { %v4182_v47 = vpop.f32.mrf.mxu2 }
  0xde   :  { %v342_v23 = vadd.f32 %v341_v18, %v340_v12  ;;  %v379_v51 = vadd.f32 %v378_v42, %v377_v40  ;;  %v1623_v40 = vadd.f32 %v4271_v54, %v4165_v53  ;;  %v4352_v4 = vadd.f32 %v4271_v54, %v4182_v47 }
  0xdf   :  { %v4185_v35 = vpop.f32.mrf.mxu0  ;;  %v388_v53 = vmul.f32 %v3618_v59, %v387_v0 }
  0xe0   :  { %v343_v25 = vrot.slane %v342_v23, 2  ;;  %v1626_v12 = vadd.f32 %v4271_v54, %v4185_v35  ;;  %v3620_v35 = vpop.eup %3619  ;;  %v380_v38 = vrot.slane %v379_v51, 2  ;;  %v4388_v0 = vpack.c.bf16 %v1623_v40, %v1621_v44 }
  0xe1   :  { %v389_v17 = vmul.f32 0.5, %v388_v53  ;;  %vm403_vm10 = vweird.f32 %v3620_v35  ;;  %v1051_v53 = vunpack.c.l.bf16 %v4287_v33  ;;  %v4401_v44 = vpack.c.bf16 %v1618_v55, %v4322_v19 }
  0xe2   :  { %v344_v39 = vadd.f32 %v343_v25, %v342_v23  ;;  %v397_v25 = vmul.f32 %v3620_v35, %v4276_v50  ;;  %v381_v3 = vadd.f32 %v380_v38, %v379_v51  ;;  %v190_v38 = vpop.xlane.xlu1 %189  ;;  %vm404_vm14 = vmor %vm402_vm9, %vm403_vm10  ;;  %v5631_v50 = vpack.c.bf16 %v3913_v29, %v3911_v28 }
  0xe3   :  { %v390_v51 = vsub.f32 1.5, %v389_v17  ;;  %v4416_v19 = vadd.f32 1.0, %v4111_v57  ;;  %v4420_v55 = vpack.c.bf16 %v4312_v41, %v4304_v16  ;;  %v4426_v29 = vadd.f32 1.0, %v190_v38 }
  0xe4   :  { %v345_v23 = vrot.slane %v344_v39, 1  ;;  %v398_v47 = vmul.f32 %v3620_v35, %v397_v25  ;;  %v382_v37 = vrot.slane %v381_v3, 1 }
  0xe5   :  { %v4213_v62 = vpop.f32.mrf.mxu2  ;;  %vm412_vm5 = vweird.f32 %v4426_v29 }
  0xe6   :  { %v4356_v46 = vadd.f32 %v4271_v54, %v4213_v62  ;;  %v346_v11 = vadd.f32 %v345_v23, %v344_v39  ;;  %v761_v62 = vadd.s32 8, %v4211_v52  ;;  %v399_v56 = vmul.f32 0.5, %v398_v47 }
  0xe7   :  { %v1627_v7 = vpop.f32.mrf.mxu0  ;;  %v4378_v39 = vadd.f32 1.0, %v4104_v2 }
  0xe8   :  { %v1628_v49 = vadd.f32 %v4271_v54, %v1627_v7  ;;  %v4345_v7 = vadd.f32 %v4271_v54, %v4161_v21  ;;  %v4367_v34 = vadd.f32 1.0, %v346_v11  ;;  %vm797_vm12 = vcmp.eq.s32.totalorder %v761_v62, %v4216_v45 }
  0xe9   :  { %vm4384_vm13 = vmpackc.low %vm3846_vm3, %vm797_vm12  ;;  %v400_v17 = vsub.f32 1.5, %v399_v56  ;;  %v1052_v56 = vunpack.c.h.bf16 %v4287_v33  ;;  %v4413_v62 = vadd.f32 1.0, %v4106_v30 }
  0xea   :  { %v4362_v22 = vpack.c.bf16 %v1628_v49, %v1626_v12  ;;  %v383_v49 = vadd.f32 %v382_v37, %v381_v3  ;;  %3621 = vrsqrt.f32 %v4367_v34  ;;  %v232_v37 = vpop.xlane.xlu2 %231  ;;  %v391_v3 = vmul.f32 %v3618_v59, %v390_v51 }
  0xeb   :  { %v401_v47 = vmul.f32 %v3620_v35, %v400_v17  ;;  %5632 = vst [vmem:[#allocation64_spill] sm:$0xff] %v4413_v62  ;;  %vm744_vm15 = vweird.f32 %v4367_v34 }
  0xec   :  { %v4391_v2 = vadd.f32 1.0, %v383_v49  ;;  %v395_v40 = vsel %vm4372_vm11, %v3618_v59, %v391_v3 }
  0xed   :  { %v1667_v13 = vpop.f32.mrf.mxu2  ;;  %v706_v33 = vpack.c.bf16 %v395_v40, %v395_v40  ;;  %v405_v49 = vsel %vm404_vm14, %v3620_v35, %v401_v47  ;;  %v4448_v40 = vadd.f32 1.0, %v4218_v1 }
  0xee   :  { %v4360_v21 = vadd.f32 %v4271_v54, %v1667_v13  ;;  %v4370_v13 = vadd.f32 1.0, %v4099_v26  ;;  %3623 = vrsqrt.f32 %v4391_v2  ;;  %v707_v28 = vpack.c.bf16 %v405_v49, %v405_v49 }
  0xef   :  { %v4273_v8 = vpop.f32.mrf.mxu0  ;;  %v1019_v57 = vunpack.c.l.bf16 %v706_v33  ;;  %3625 = vrsqrt.f32 %v4426_v29  ;;  %vm754_vm0 = vweird.f32 %v4391_v2  ;;  %5633 = vst [vmem:[#allocation65_spill] sm:$0xff] %v4448_v40  ;;  %v4452_v49 = vadd.f32 1.0, %v232_v37 }
  0xf0   :  { %v1631_v11 = vadd.f32 %v4271_v54, %v4273_v8  ;;  %v4430_v30 = vpop.eup %3621  ;;  %v1020_v26 = vunpack.c.l.bf16 %v707_v28 }
  0xf1   :  { %v1116_v3 = vmul.f32 %v1052_v56, %v1019_v57  ;;  %vm745_vm1 = vweird.f32 %v4430_v30  ;;  %v4462_v56 = vadd.f32 1.0, %v4221_v14  ;;  %3627 = vrsqrt.f32 %v4452_v49 }
  0xf2   :  { %v235_v28 = vpop.xlane.xlu2 %234  ;;  %vm4481_vm4 = vmor %vm744_vm15, %vm745_vm1  ;;  %vm552_vm11 = vweird.f32 %v4452_v49 }
  0xf3   :  { %5636 = vst [vmem:[#allocation68_spill] sm:$0xff] %v4462_v56 }
  0xf5   :  { %v4333_v18 = vpop.f32.mrf.mxu2 }
  0xf6   :  { %v4424_v59 = vadd.f32 %v4271_v54, %v4333_v18  ;;  %v739_v18 = vmul.f32 %v4430_v30, %v4367_v34 }
  0xf7   :  { %v1632_v42 = vpop.f32.mrf.mxu0 }
  0xf8   :  { %v1633_v23 = vadd.f32 %v4271_v54, %v1632_v42  ;;  %v988_v42 = vsel %vm4384_vm13, %v5631_v50, %v3905_v24  ;;  %v740_v17 = vmul.f32 %v4430_v30, %v739_v18  ;;  %v193_v50 = vpop.xlane.xlu1 %192 }
  0xf9   :  { %v1053_v51 = vunpack.c.l.bf16 %v988_v42  ;;  %v1054_v9 = vunpack.c.h.bf16 %v988_v42 }
  0xfa   :  { %v4428_v24 = vpack.c.bf16 %v1633_v23, %v1631_v11  ;;  %v3624_v11 = vpop.eup %3623  ;;  %v1115_v23 = vmul.f32 %v1051_v53, %v1019_v57  ;;  %v741_v16 = vmul.f32 0.5, %v740_v17  ;;  %v4458_v53 = vadd.f32 1.0, %v4209_v48 }
  0xfb   :  { %v749_v42 = vmul.f32 %v3624_v11, %v4391_v2  ;;  %v1118_v8 = vmul.f32 %v1054_v9, %v1020_v26  ;;  %v4464_v57 = vadd.f32 1.0, %v193_v50  ;;  %vm755_vm2 = vweird.f32 %v3624_v11 }
  0xfc   :  { %5635 = vst [vmem:[#allocation67_spill] sm:$0xff] %v4458_v53  ;;  %v742_v37 = vsub.f32 1.5, %v741_v16  ;;  %v1179_v18 = vpack.c.bf16 %v1116_v3, %v1115_v23  ;;  %vm4490_vm6 = vmor %vm754_vm0, %vm755_vm2  ;;  %v763_v17 = vadd.s32 24, %v4211_v52  ;;  %v275_v9 = vadd.f32 %v4252_v15, %v4236_v27 }
  0xfd   :  { %v1672_v12 = vpop.f32.mrf.mxu2  ;;  %v750_v1 = vmul.f32 %v3624_v11, %v749_v42  ;;  %3629 = vrsqrt.f32 %v4464_v57  ;;  %vm422_vm12 = vweird.f32 %v4464_v57 }
  0xfe   :  { %v4433_v35 = vadd.f32 %v4271_v54, %v1672_v12  ;;  %v4455_v12 = vadd.f32 1.0, %v4232_v60  ;;  %v743_v50 = vmul.f32 %v4430_v30, %v742_v37  ;;  %v1211_v34 = vunpack.c.l.bf16 %v1179_v18  ;;  %276 = vadd.xlane.f32.xlu1 %v275_v9 }
  0xff   :  { %v1635_v25 = vpop.f32.mrf.mxu0  ;;  %v751_v60 = vmul.f32 0.5, %v750_v1  ;;  %vm801_vm8 = vcmp.eq.s32.totalorder %v763_v17, %v4216_v45  ;;  %v777_v9 = vadd.s32 136, %v4211_v52 }
 0x100   :  { %v4441_v38 = vadd.f32 %v4271_v54, %v1635_v25  ;;  %v1117_v25 = vmul.f32 %v1053_v51, %v1020_v26  ;;  %5634 = vst [vmem:[#allocation66_spill] sm:$0xff] %v4455_v12  ;;  %v3626_v51 = vpop.eup %3625  ;;  %v4468_v26 = vadd.f32 1.0, %v235_v28  ;;  %vm958_vm10 = vmpackc.low %vm3846_vm3, %vm801_vm8 }
 0x101   :  { %v407_v48 = vmul.f32 %v3626_v51, %v4426_v29  ;;  %v752_v42 = vsub.f32 1.5, %v751_v60  ;;  %vm413_vm7 = vweird.f32 %v3626_v51  ;;  %vm830_vm15 = vcmp.eq.s32.totalorder %v777_v9, %v4225_v31 }
 0x102   :  { %v1180_v3 = vpack.c.bf16 %v1118_v8, %v1117_v25  ;;  %v747_v8 = vsel %vm4481_vm4, %v4430_v30, %v743_v50  ;;  %v1212_v25 = vunpack.c.h.bf16 %v1179_v18  ;;  %vm4506_vm9 = vmor %vm412_vm5, %vm413_vm7  ;;  %3631 = vrsqrt.f32 %v4468_v26  ;;  %v3628_v18 = vpop.eup %3627 }
 0x103   :  { %v408_v1 = vmul.f32 %v3626_v51, %v407_v48  ;;  %v272_v30 = vadd.f32 %v4240_v10, %v4227_v20  ;;  %vm562_vm13 = vweird.f32 %v4468_v26  ;;  %vm553_vm14 = vweird.f32 %v3628_v18  ;;  %vm4574_vm2 = vmpackc.low %vm830_vm15, %vm3846_vm3 }
 0x104   :  { %v1213_v48 = vunpack.c.l.bf16 %v1180_v3  ;;  %v1214_v2 = vunpack.c.h.bf16 %v1180_v3  ;;  %v547_v3 = vmul.f32 %v3628_v18, %v4452_v49  ;;  %vm4554_vm1 = vmor %vm552_vm11, %vm553_vm14  ;;  %v5649_v49 = vunpack.c.h.bf16 %v4293_v61 }
 0x105   :  { %v1675_v41 = vpop.f32.mrf.mxu2  ;;  %v409_v60 = vmul.f32 0.5, %v408_v1  ;;  %273 = vadd.xlane.f32.xlu0 %v272_v30  ;;  %v4591_v9 = vadd.f32 1.0, %v4240_v10 }
 0x106   :  { %v4474_v14 = vadd.f32 %v4271_v54, %v1675_v41 }
 0x107   :  { %v1637_v47 = vpop.f32.mrf.mxu0  ;;  %v410_v53 = vsub.f32 1.5, %v409_v60  ;;  %v5644_v60 = vld [vmem:[#allocation21_spill] sm:$0xff] }
 0x108   :  { %v1638_v28 = vadd.f32 %v4271_v54, %v1637_v47  ;;  %v753_v47 = vmul.f32 %v3624_v11, %v752_v42  ;;  %v3630_v42 = vpop.eup %3629 }
 0x109   :  { %v411_v29 = vmul.f32 %v3626_v51, %v410_v53  ;;  %v4546_v56 = vpop.eup %3631  ;;  %vm423_vm0 = vweird.f32 %v3630_v42 }
 0x10a   :  { %v757_v33 = vsel %vm4490_vm6, %v3624_v11, %v753_v47  ;;  %v5643_v47 = vld [vmem:[#allocation22_spill] sm:$0xff]  ;;  %vm4580_vm4 = vmor %vm422_vm12, %vm423_vm0  ;;  %vm563_vm5 = vweird.f32 %v4546_v56 }
 0x10b   :  { %v758_v17 = vpack.c.bf16 %v757_v33, %v747_v8  ;;  %v415_v53 = vsel %vm4506_vm9, %v3626_v51, %v411_v29  ;;  %v548_v8 = vmul.f32 %v3628_v18, %v547_v3  ;;  %v5645_v30 = vpack.c.bf16 %v5643_v47, %v5644_v60  ;;  %vm564_vm6 = vmor %vm562_vm13, %vm563_vm5 }
 0x10c   :  { %v708_v51 = vpack.c.bf16 %v415_v53, %v415_v53 }
 0x10d   :  { %v1677_v23 = vpop.f32.mrf.mxu2  ;;  %v4522_v33 = vunpack.c.l.bf16 %v758_v17  ;;  %v4538_v11 = vsel %vm958_vm10, %v5645_v30, %v3933_v43  ;;  %v549_v29 = vmul.f32 0.5, %v548_v8 }
 0x10e   :  { %v4514_v50 = vadd.f32 %v4271_v54, %v1677_v23  ;;  %v4524_v23 = vunpack.c.h.bf16 %v758_v17  ;;  %v417_v17 = vmul.f32 %v3630_v42, %v4464_v57  ;;  %v1057_v53 = vunpack.c.l.bf16 %v4538_v11 }
 0x10f   :  { %v1640_v37 = vpop.f32.mrf.mxu0  ;;  %v1277_v16 = vmul.f32 %v4522_v33, %v1211_v34  ;;  %v1279_v40 = vmul.f32 %v4522_v33, %v1213_v48  ;;  %v4550_v34 = vpack.c.bf16 %v1638_v28, %v4441_v38  ;;  %v550_v48 = vsub.f32 1.5, %v549_v29 }
 0x110   :  { %v4527_v1 = vadd.f32 %v4271_v54, %v1640_v37  ;;  %v1278_v37 = vmul.f32 %v4524_v23, %v1212_v25  ;;  %v1280_v12 = vmul.f32 %v4524_v23, %v1214_v2  ;;  %v418_v43 = vmul.f32 %v3630_v42, %v417_v17 }
 0x111   :  { %v1021_v25 = vunpack.c.l.bf16 %v708_v51  ;;  %v4565_v38 = vadd.f32 1.0, %v4252_v15  ;;  %v5648_v28 = vunpack.c.l.bf16 %v4293_v61  ;;  %v551_v30 = vmul.f32 %v3628_v18, %v550_v48 }
 0x112   :  { %v1341_v3 = vpack.c.bf16 %v1278_v37, %v1277_v16  ;;  %v1342_v47 = vpack.c.bf16 %v1280_v12, %v1279_v40  ;;  %v419_v60 = vmul.f32 0.5, %v418_v43  ;;  %v557_v12 = vmul.f32 %v4546_v56, %v4468_v26  ;;  %v238_v26 = vpop.xlane.xlu2 %237 }
 0x113   :  { %v4562_v40 = vadd.f32 1.0, %v4236_v27  ;;  %v1119_v16 = vmul.f32 %v5648_v28, %v1021_v25  ;;  %v1120_v8 = vmul.f32 %v5649_v49, %v1021_v25  ;;  %v4588_v29 = vadd.f32 1.0, %v4227_v20 }
 0x114   :  { %1373 = vst [vmem:[#allocation2] sm:$0xff] %v1341_v3  ;;  %v420_v17 = vsub.f32 1.5, %v419_v60  ;;  %v558_v51 = vmul.f32 %v4546_v56, %v557_v12  ;;  %v555_v3 = vsel %vm4554_vm1, %v3628_v18, %v551_v30  ;;  %v1058_v57 = vunpack.c.h.bf16 %v4538_v11  ;;  %v199_v12 = vpop.xlane.xlu1 %198 }
 0x115   :  { %v4529_v41 = vpop.f32.mrf.mxu2  ;;  %1374 = vst [vmem:[#allocation2 + $0x8] sm:$0xff] %v1342_v47  ;;  %v954_v61 = vpack.c.bf16 %v4565_v38, %v4562_v40  ;;  %v1181_v43 = vpack.c.bf16 %v1120_v8, %v1119_v16  ;;  %v722_v25 = vpack.c.bf16 %v555_v3, %v555_v3  ;;  %v3685_v16 = vld [vmem:[#allocation2 + $0x88] sm:$0xff]  ;;  %v5654_v18 = vpack.c.bf16 %v4260_v6, %v4257_v63 }
 0x116   :  { %v421_v47 = vmul.f32 %v3630_v42, %v420_v17  ;;  %v559_v60 = vmul.f32 0.5, %v558_v51  ;;  %v196_v17 = vpop.xlane.xlu0 %195  ;;  %v5655_v63 = vunpack.c.l.bf16 %v4298_v58 }
 0x117   :  { %v1642_v62 = vpop.f32.mrf.mxu0  ;;  %v1215_v20 = vunpack.c.l.bf16 %v1181_v43  ;;  %v1216_v28 = vunpack.c.h.bf16 %v1181_v43  ;;  %v1004_v11 = vsel %vm4574_vm2, %v5654_v18, %v3685_v16  ;;  %v1035_v49 = vunpack.c.l.bf16 %v722_v25 }
 0x118   :  { %v425_v10 = vsel %vm4580_vm4, %v3630_v42, %v421_v47  ;;  %v1643_v2 = vadd.f32 %v4271_v54, %v1642_v62  ;;  %v560_v30 = vsub.f32 1.5, %v559_v60  ;;  %v764_v42 = vadd.s32 32, %v4211_v52 }
 0x119   :  { %v709_v8 = vpack.c.bf16 %v425_v10, %v425_v10  ;;  %v1281_v51 = vmul.f32 %v4522_v33, %v1215_v20  ;;  %v1282_v43 = vmul.f32 %v4524_v23, %v1216_v28  ;;  %v4612_v15 = vadd.f32 1.0, %v196_v17 }
 0x11a   :  { %v1147_v6 = vmul.f32 %v5655_v63, %v1035_v49  ;;  %v5656_v62 = vunpack.c.h.bf16 %v4298_v58  ;;  %v561_v47 = vmul.f32 %v4546_v56, %v560_v30  ;;  %v1085_v60 = vunpack.c.l.bf16 %v1004_v11 }
 0x11b   :  { %v1022_v3 = vunpack.c.l.bf16 %v709_v8  ;;  %v1343_v25 = vpack.c.bf16 %v1282_v43, %v1281_v51  ;;  %v1086_v20 = vunpack.c.h.bf16 %v1004_v11  ;;  %3633 = vrsqrt.f32 %v4612_v15 }
 0x11c   :  { %v1148_v37 = vmul.f32 %v5656_v62, %v1035_v49  ;;  %v565_v18 = vsel %vm564_vm6, %v4546_v56, %v561_v47  ;;  %vm803_vm7 = vcmp.eq.s32.totalorder %v764_v42, %v4216_v45  ;;  %v4628_v63 = vadd.f32 1.0, %v238_v26 }
 0x11d   :  { %v1682_v27 = vpop.f32.mrf.mxu2  ;;  %v1121_v10 = vmul.f32 %v1057_v53, %v1022_v3  ;;  %v1122_v16 = vmul.f32 %v1058_v57, %v1022_v3  ;;  %1375 = vst [vmem:[#allocation2 + $0x10] sm:$0xff] %v1343_v25  ;;  %v723_v8 = vpack.c.bf16 %v565_v18, %v565_v18  ;;  %v778_v53 = vadd.s32 144, %v4211_v52  ;;  %vm959_vm8 = vmpackc.low %vm3846_vm3, %vm803_vm7  ;;  %v3686_v18 = vld [vmem:[#allocation2 + $0x20] sm:$0xff] }
 0x11e   :  { %v1195_v28 = vpack.c.bf16 %v1148_v37, %v1147_v6  ;;  %v4622_v58 = vadd.f32 %v4271_v54, %v1682_v27  ;;  %v4630_v6 = vadd.f32 1.0, %v199_v12  ;;  %3635 = vrsqrt.f32 %v4628_v63 }
 0x11f   :  { %v1645_v48 = vpop.f32.mrf.mxu0  ;;  %v1182_v51 = vpack.c.bf16 %v1122_v16, %v1121_v10  ;;  %v1036_v57 = vunpack.c.l.bf16 %v723_v8  ;;  %vm832_vm9 = vcmp.eq.s32.totalorder %v778_v53, %v4225_v31  ;;  %v5657_v8 = vld [vmem:[#allocation24_spill] sm:$0xff]  ;;  %vm432_vm11 = vweird.f32 %v4612_v15 }
 0x120   :  { %v1646_v49 = vadd.f32 %v4271_v54, %v1645_v48  ;;  %v1243_v11 = vunpack.c.l.bf16 %v1195_v28  ;;  %v1244_v30 = vunpack.c.h.bf16 %v1195_v28  ;;  %vm4649_vm10 = vmpackc.low %vm832_vm9, %vm3846_vm3  ;;  %3637 = vrsqrt.f32 %v4630_v6 }
 0x121   :  { %v1217_v62 = vunpack.c.l.bf16 %v1182_v51  ;;  %v1218_v37 = vunpack.c.h.bf16 %v1182_v51  ;;  %v4635_v42 = vpop.eup %3633  ;;  %v1149_v3 = vmul.f32 %v1085_v60, %v1036_v57  ;;  %v1150_v47 = vmul.f32 %v1086_v20, %v1036_v57 }
 0x122   :  { %v1309_v27 = vmul.f32 %v4522_v33, %v1243_v11  ;;  %v1310_v48 = vmul.f32 %v4524_v23, %v1244_v30  ;;  %v427_v10 = vmul.f32 %v4635_v42, %v4612_v15  ;;  %v5658_v11 = vld [vmem:[#allocation23_spill] sm:$0xff]  ;;  %v1728_v20 = vpack.c.bf16 %v1643_v2, %v4527_v1  ;;  %v241_v2 = vpop.xlane.xlu0 %240 }
 0x123   :  { %v1283_v26 = vmul.f32 %v4522_v33, %v1217_v62  ;;  %v1284_v12 = vmul.f32 %v4524_v23, %v1218_v37  ;;  %v1196_v16 = vpack.c.bf16 %v1150_v47, %v1149_v3  ;;  %v5659_v30 = vpack.c.bf16 %v5657_v8, %v5658_v11  ;;  %v3687_v62 = vld [vmem:[#allocation2 + $0x90] sm:$0xff]  ;;  %v5662_v37 = vld [vmem:[#allocation26_spill] sm:$0xff]  ;;  %v5663_v3 = vld [vmem:[#allocation25_spill] sm:$0xff] }
 0x124   :  { %v1357_v28 = vpack.c.bf16 %v1310_v48, %v1309_v27  ;;  %v428_v57 = vmul.f32 %v4635_v42, %v427_v10  ;;  %vm433_vm12 = vweird.f32 %v4635_v42  ;;  %v5664_v47 = vpack.c.bf16 %v5662_v37, %v5663_v3  ;;  %v3689_v3 = vld [vmem:[#allocation2 + $0x98] sm:$0xff] }
 0x125   :  { %v1685_v17 = vpop.f32.mrf.mxu2  ;;  %v4645_v60 = vsel %vm959_vm8, %v5659_v30, %v3686_v18  ;;  %v1344_v51 = vpack.c.bf16 %v1284_v12, %v1283_v26  ;;  %v1246_v27 = vunpack.c.h.bf16 %v1196_v16  ;;  %v779_v10 = vadd.s32 152, %v4211_v52  ;;  %vm4675_vm13 = vmor %vm432_vm11, %vm433_vm12  ;;  %v4684_v30 = vpop.eup %3635 }
 0x126   :  { %1389 = vst [vmem:[#allocation2 + $0x80] sm:$0xff] %v1357_v28  ;;  %v429_v48 = vmul.f32 0.5, %v428_v57  ;;  %v4680_v8 = vadd.f32 1.0, %v241_v2  ;;  %v1735_v11 = vpack.c.bf16 %v4514_v50, %v4474_v14  ;;  %vm572_vm2 = vweird.f32 %v4628_v63  ;;  %v4711_v57 = vpop.eup %3637  ;;  %v5671_v2 = vld [vmem:[#allocation28_spill] sm:$0xff] }
 0x127   :  { %v1647_v43 = vpop.f32.mrf.mxu0  ;;  %1376 = vst [vmem:[#allocation2 + $0x18] sm:$0xff] %v1344_v51  ;;  %v1312_v26 = vmul.f32 %v4524_v23, %v1246_v27  ;;  %v1059_v51 = vunpack.c.l.bf16 %v4645_v60  ;;  %vm834_vm0 = vcmp.eq.s32.totalorder %v779_v10, %v4225_v31  ;;  %vm442_vm4 = vweird.f32 %v4630_v6 }
 0x128   :  { %v1648_v56 = vadd.f32 %v4271_v54, %v1647_v43  ;;  %v1686_v43 = vadd.f32 %v4271_v54, %v1685_v17  ;;  %v4664_v17 = vsel %vm4649_vm10, %v5664_v47, %v3687_v62  ;;  %vm4701_vm1 = vmpackc.low %vm834_vm0, %vm3846_vm3  ;;  %3639 = vrsqrt.f32 %v4680_v8  ;;  %v5674_v47 = vld [vmem:[#allocation30_spill] sm:$0xff] }
 0x129   :  { %v1087_v50 = vunpack.c.l.bf16 %v4664_v17  ;;  %vm573_vm5 = vweird.f32 %v4684_v30  ;;  %vm443_vm7 = vweird.f32 %v4711_v57  ;;  %vm582_vm9 = vweird.f32 %v4680_v8 }
 0x12a   :  { %v1729_v25 = vpack.c.bf16 %v1648_v56, %v1646_v49  ;;  %v1245_v56 = vunpack.c.l.bf16 %v1196_v16  ;;  %v430_v16 = vsub.f32 1.5, %v429_v48  ;;  %v5672_v48 = vld [vmem:[#allocation27_spill] sm:$0xff]  ;;  %vm574_vm6 = vmor %vm572_vm2, %vm573_vm5 }
 0x12b   :  { %vm4769_vm10 = vmor %vm442_vm4, %vm443_vm7 }
 0x12c   :  { %1898 = vmatpush.bf16.msra.mxu1 %v1729_v25  ;;  %3597 = vmatpush.bf16.msra.mxu3 %v1729_v25  ;;  %v765_v25 = vadd.s32 40, %v4211_v52  ;;  %v1311_v28 = vmul.f32 %v4522_v33, %v1245_v56  ;;  %v431_v14 = vmul.f32 %v4635_v42, %v430_v16  ;;  %v766_v16 = vadd.s32 48, %v4211_v52 }
 0x12d   :  { %v1687_v53 = vpop.f32.mrf.mxu2 }
 0x12e   :  { %v1688_v1 = vadd.f32 %v4271_v54, %v1687_v53  ;;  %vm805_vm14 = vcmp.eq.s32.totalorder %v765_v25, %v4216_v45  ;;  %v1358_v49 = vpack.c.bf16 %v1312_v26, %v1311_v28  ;;  %v1088_v53 = vunpack.c.h.bf16 %v4664_v17  ;;  %v5675_v25 = vld [vmem:[#allocation29_spill] sm:$0xff]  ;;  %v202_v26 = vpop.xlane.xlu1 %201 }
 0x12f   :  { %vm4690_vm15 = vmpackc.low %vm3846_vm3, %vm805_vm14  ;;  %v435_v56 = vsel %vm4675_vm13, %v4635_v42, %v431_v14  ;;  %v5676_v42 = vpack.c.bf16 %v5674_v47, %v5675_v25  ;;  %v4738_v18 = vadd.f32 1.0, %v202_v26  ;;  %v1733_v14 = vpack.c.bf16 %v4360_v21, %v4356_v46  ;;  %v205_v46 = vpop.xlane.xlu2 %204  ;;  %v5681_v47 = vld [vmem:[#allocation63_spill] sm:$0xff] }
 0x130   :  { %1899 = vmatpush.bf16.msra.mxu1 %v1728_v20  ;;  %3598 = vmatpush.bf16.msra.mxu3 %v1728_v20  ;;  %v1737_v12 = vpack.c.bf16 %v1688_v1, %v1686_v43  ;;  %v1681_v20 = vadd.f32 %v4271_v54, %v4529_v41  ;;  %v1060_v43 = vunpack.c.h.bf16 %v4645_v60  ;;  %v567_v54 = vmul.f32 %v4684_v30, %v4628_v63  ;;  %v3688_v1 = vld [vmem:[#allocation2 + $0x28] sm:$0xff]  ;;  %v4749_v41 = vpop.eup %3639 }
 0x131   :  { %1390 = vst [vmem:[#allocation2 + $0x88] sm:$0xff] %v1358_v49  ;;  %v710_v37 = vpack.c.bf16 %v435_v56, %v435_v56  ;;  %v4732_v28 = vsel %vm4701_vm1, %v5676_v42, %v3689_v3  ;;  %3641 = vrsqrt.f32 %v4738_v18  ;;  %vm807_vm8 = vcmp.eq.s32.totalorder %v766_v16, %v4216_v45 }
 0x132   :  { %1987 = vmatpush.bf16.msrb.mxu2 %v1737_v12  ;;  %v1736_v60 = vpack.c.bf16 %v4622_v58, %v1681_v20  ;;  %v568_v27 = vmul.f32 %v4684_v30, %v567_v54  ;;  %v437_v58 = vmul.f32 %v4711_v57, %v4630_v6  ;;  %v1734_v12 = vpack.c.bf16 %v4433_v35, %v4424_v59  ;;  %vm4782_vm11 = vmpackc.low %vm3846_vm3, %vm807_vm8 }
 0x133   :  { %v1023_v20 = vunpack.c.l.bf16 %v710_v37  ;;  %v1089_v54 = vunpack.c.l.bf16 %v4732_v28  ;;  %v1732_v63 = vpack.c.bf16 %v4352_v4, %v4345_v7  ;;  %v1731_v37 = vpack.c.bf16 %v4339_v5, %v4328_v36  ;;  %v5689_v36 = vld [vmem:[#allocation34_spill] sm:$0xff]  ;;  %v5690_v5 = vld [vmem:[#allocation33_spill] sm:$0xff] }
 0x134   :  { %1900 = vmatpush.bf16.msra.mxu1 %v4550_v34  ;;  %3599 = vmatpush.bf16.msra.mxu3 %v4550_v34  ;;  %v5673_v34 = vpack.c.bf16 %v5671_v2, %v5672_v48  ;;  %v569_v10 = vmul.f32 0.5, %v568_v27  ;;  %v438_v15 = vmul.f32 %v4711_v57, %v437_v58  ;;  %v1090_v27 = vunpack.c.h.bf16 %v4732_v28 }
 0x135   :  { %v1124_v56 = vmul.f32 %v1060_v43, %v1023_v20  ;;  %vm583_vm12 = vweird.f32 %v4749_v41  ;;  %v1730_v25 = vpack.c.bf16 %v5681_v47, %v4308_v32  ;;  %vm452_vm14 = vweird.f32 %v4738_v18  ;;  %v3031_v47 = vld [vmem:[#allocation2] sm:$0xf] }
 0x136   :  { %v4722_v62 = vsel %vm4690_vm15, %v5673_v34, %v3688_v1  ;;  %1988 = vmatpush.bf16.msrb.mxu2 %v1736_v60  ;;  %v570_v59 = vsub.f32 1.5, %v569_v10  ;;  %v1123_v60 = vmul.f32 %v1059_v51, %v1023_v20  ;;  %v577_v1 = vmul.f32 %v4749_v41, %v4680_v8  ;;  %vm4816_vm13 = vmor %vm582_vm9, %vm583_vm12 }
 0x137   :  { %v1061_v49 = vunpack.c.l.bf16 %v4722_v62  ;;  %v1062_v35 = vunpack.c.h.bf16 %v4722_v62  ;;  %v4774_v34 = vadd.f32 1.0, %v205_v46  ;;  %v4786_v6 = vpop.eup %3641 }
 0x138   :  { %1901 = vmatpush.bf16.msra.mxu1 %v4428_v24  ;;  %3600 = vmatpush.bf16.msra.mxu3 %v4428_v24  ;;  %v439_v24 = vmul.f32 0.5, %v438_v15  ;;  %v571_v21 = vmul.f32 %v4684_v30, %v570_v59  ;;  %v1183_v51 = vpack.c.bf16 %v1124_v56, %v1123_v60  ;;  %v578_v48 = vmul.f32 %v4749_v41, %v577_v1  ;;  %v3690_v15 = vld [vmem:[#allocation2 + $0x30] sm:$0xff]  ;;  %v5682_v59 = vld [vmem:[#allocation32_spill] sm:$0xff] }
 0x139   :  { %3643 = vrsqrt.f32 %v4774_v34  ;;  %v5683_v60 = vld [vmem:[#allocation31_spill] sm:$0xff]  ;;  %v447_v46 = vmul.f32 %v4786_v6, %v4738_v18  ;;  %vm453_vm15 = vweird.f32 %v4786_v6  ;;  %vm462_vm1 = vweird.f32 %v4774_v34 }
 0x13a   :  { %1989 = vmatpush.bf16.msrb.mxu2 %v1735_v11  ;;  %v440_v43 = vsub.f32 1.5, %v439_v24  ;;  %v575_v11 = vsel %vm574_vm6, %v4684_v30, %v571_v21  ;;  %v1219_v58 = vunpack.c.l.bf16 %v1183_v51  ;;  %v579_v30 = vmul.f32 0.5, %v578_v48  ;;  %v247_v21 = vpop.xlane.xlu1 %246  ;;  %vm4846_vm2 = vmor %vm452_vm14, %vm453_vm15 }
 0x13b   :  { %v724_v3 = vpack.c.bf16 %v575_v11, %v575_v11  ;;  %v5684_v56 = vpack.c.bf16 %v5682_v59, %v5683_v60  ;;  %v448_v2 = vmul.f32 %v4786_v6, %v447_v46  ;;  %v4828_v8 = vadd.f32 1.0, %v247_v21  ;;  %v244_v21 = vpop.xlane.xlu0 %243 }
 0x13c   :  { %1902 = vmatpush.bf16.msra.mxu1 %v4362_v22  ;;  %3601 = vmatpush.bf16.msra.mxu3 %v4362_v22  ;;  %v1220_v22 = vunpack.c.h.bf16 %v1183_v51  ;;  %v441_v7 = vmul.f32 %v4711_v57, %v440_v43  ;;  %v1285_v42 = vmul.f32 %v4522_v33, %v1219_v58  ;;  %v580_v20 = vsub.f32 1.5, %v579_v30 }
 0x13d   :  { %v1037_v10 = vunpack.c.l.bf16 %v724_v3  ;;  %v4804_v24 = vsel %vm4782_vm11, %v5684_v56, %v3690_v15  ;;  %v449_v3 = vmul.f32 0.5, %v448_v2  ;;  %3645 = vrsqrt.f32 %v4828_v8 }
 0x13e   :  { %1990 = vmatpush.bf16.msrb.mxu2 %v1734_v12  ;;  %v1286_v26 = vmul.f32 %v4524_v23, %v1220_v22  ;;  %v445_v16 = vsel %vm4769_vm10, %v4711_v57, %v441_v7  ;;  %v581_v11 = vmul.f32 %v4749_v41, %v580_v20  ;;  %v781_v51 = vadd.s32 168, %v4211_v52 }
 0x13f   :  { %v711_v12 = vpack.c.bf16 %v445_v16, %v445_v16  ;;  %v1151_v57 = vmul.f32 %v1087_v50, %v1037_v10  ;;  %v767_v50 = vadd.s32 56, %v4211_v52  ;;  %vm602_vm8 = vweird.f32 %v4828_v8 }
 0x140   :  { %1903 = vmatpush.bf16.msra.mxu1 %v4388_v0  ;;  %3602 = vmatpush.bf16.msra.mxu3 %v4388_v0  ;;  %v1345_v1 = vpack.c.bf16 %v1286_v26, %v1285_v42  ;;  %v1152_v0 = vmul.f32 %v1088_v53, %v1037_v10  ;;  %v1063_v53 = vunpack.c.l.bf16 %v4804_v24  ;;  %v585_v22 = vsel %vm4816_vm13, %v4749_v41, %v581_v11 }
 0x141   :  { %v1024_v43 = vunpack.c.l.bf16 %v711_v12  ;;  %v725_v30 = vpack.c.bf16 %v585_v22, %v585_v22  ;;  %v450_v26 = vsub.f32 1.5, %v449_v3  ;;  %vm809_vm0 = vcmp.eq.s32.totalorder %v767_v50, %v4216_v45 }
 0x142   :  { %1991 = vmatpush.bf16.msrb.mxu2 %v1733_v14  ;;  %1377 = vst [vmem:[#allocation2 + $0x20] sm:$0xff] %v1345_v1  ;;  %v1197_v17 = vpack.c.bf16 %v1152_v0, %v1151_v57  ;;  %v3644_v14 = vpop.eup %3643  ;;  %vm962_vm4 = vmpackc.low %vm3846_vm3, %vm809_vm0  ;;  %v3691_v57 = vld [vmem:[#allocation2 + $0x38] sm:$0xff]  ;;  %v4880_v50 = vadd.f32 1.0, %v244_v21  ;;  %vm838_vm7 = vcmp.eq.s32.totalorder %v781_v51, %v4225_v31 }
 0x143   :  { %v1125_v48 = vmul.f32 %v1061_v49, %v1024_v43  ;;  %v1126_v58 = vmul.f32 %v1062_v35, %v1024_v43  ;;  %v457_v42 = vmul.f32 %v3644_v14, %v4774_v34  ;;  %v1038_v35 = vunpack.c.l.bf16 %v725_v30  ;;  %vm4889_vm9 = vmpackc.low %vm838_vm7, %vm3846_vm3 }
 0x144   :  { %1904 = vmatpush.bf16.msra.mxu1 %v4401_v44  ;;  %3603 = vmatpush.bf16.msra.mxu3 %v4401_v44  ;;  %v1247_v7 = vunpack.c.l.bf16 %v1197_v17  ;;  %v1248_v4 = vunpack.c.h.bf16 %v1197_v17  ;;  %v451_v12 = vmul.f32 %v4786_v6, %v450_v26  ;;  %vm463_vm5 = vweird.f32 %v3644_v14  ;;  %v208_v26 = vpop.xlane.xlu2 %207 }
 0x145   :  { %v1184_v44 = vpack.c.bf16 %v1126_v58, %v1125_v48  ;;  %v1153_v15 = vmul.f32 %v1089_v54, %v1038_v35  ;;  %v1154_v18 = vmul.f32 %v1090_v27, %v1038_v35  ;;  %v1064_v27 = vunpack.c.h.bf16 %v4804_v24  ;;  %vm464_vm6 = vmor %vm462_vm1, %vm463_vm5  ;;  %v3646_v24 = vpop.eup %3645 }
 0x146   :  { %1992 = vmatpush.bf16.msrb.mxu2 %v1732_v63  ;;  %v1313_v62 = vmul.f32 %v4522_v33, %v1247_v7  ;;  %v1314_v49 = vmul.f32 %v4524_v23, %v1248_v4  ;;  %v458_v63 = vmul.f32 %v3644_v14, %v457_v42  ;;  %v455_v54 = vsel %vm4846_vm2, %v4786_v6, %v451_v12 }
 0x147   :  { %v1221_v10 = vunpack.c.l.bf16 %v1184_v44  ;;  %v1222_v16 = vunpack.c.h.bf16 %v1184_v44  ;;  %v1198_v28 = vpack.c.bf16 %v1154_v18, %v1153_v15  ;;  %v712_v56 = vpack.c.bf16 %v455_v54, %v455_v54 }
 0x148   :  { %1905 = vmatpush.bf16.msra.mxu1 %v4420_v55  ;;  %3604 = vmatpush.bf16.msra.mxu3 %v4420_v55  ;;  %v1359_v20 = vpack.c.bf16 %v1314_v49, %v1313_v62  ;;  %v459_v59 = vmul.f32 0.5, %v458_v63  ;;  %v597_v34 = vmul.f32 %v3646_v24, %v4828_v8  ;;  %3647 = vrsqrt.f32 %v4880_v50 }
 0x149   :  { %v1287_v55 = vmul.f32 %v4522_v33, %v1221_v10  ;;  %v1288_v60 = vmul.f32 %v4524_v23, %v1222_v16  ;;  %v1249_v43 = vunpack.c.l.bf16 %v1198_v28  ;;  %v1250_v11 = vunpack.c.h.bf16 %v1198_v28 }
 0x14a   :  { %1993 = vmatpush.bf16.msrb.mxu2 %v1731_v37  ;;  %1391 = vst [vmem:[#allocation2 + $0x90] sm:$0xff] %v1359_v20  ;;  %v460_v46 = vsub.f32 1.5, %v459_v59  ;;  %v5691_v37 = vpack.c.bf16 %v5689_v36, %v5690_v5  ;;  %v1025_v2 = vunpack.c.l.bf16 %v712_v56  ;;  %v598_v32 = vmul.f32 %v3646_v24, %v597_v34  ;;  %v5694_v56 = vld [vmem:[#allocation36_spill] sm:$0xff]  ;;  %v3406_v5 = vld [vmem:[#allocation2 + $0x4] sm:$0xf] }
 0x14b   :  { %v1346_v1 = vpack.c.bf16 %v1288_v60, %v1287_v55  ;;  %v1315_v17 = vmul.f32 %v4522_v33, %v1249_v43  ;;  %v1316_v48 = vmul.f32 %v4524_v23, %v1250_v11  ;;  %vm603_vm10 = vweird.f32 %v3646_v24  ;;  %v3095_v55 = vld [vmem:[#allocation2 + $0x80] sm:$0xf]  ;;  %v3423_v60 = vld [vmem:[#allocation2 + $0x84] sm:$0xf0] }
 0x14c   :  { %v994_v0 = vsel %vm962_vm4, %v5691_v37, %v3691_v57  ;;  %v461_v6 = vmul.f32 %v3644_v14, %v460_v46  ;;  %v1127_v58 = vmul.f32 %v1063_v53, %v1025_v2  ;;  %v1128_v22 = vmul.f32 %v1064_v27, %v1025_v2  ;;  %v3692_v27 = vld [vmem:[#allocation2 + $0xa8] sm:$0xff]  ;;  %v5695_v46 = vld [vmem:[#allocation35_spill] sm:$0xff]  ;;  %vm4908_vm11 = vmor %vm602_vm8, %vm603_vm10 }
 0x14d   :  { %1378 = vst [vmem:[#allocation2 + $0x28] sm:$0xff] %v1346_v1  ;;  %v1065_v3 = vunpack.c.l.bf16 %v994_v0  ;;  %v1066_v7 = vunpack.c.h.bf16 %v994_v0  ;;  %v1360_v30 = vpack.c.bf16 %v1316_v48, %v1315_v17  ;;  %v599_v41 = vmul.f32 0.5, %v598_v32  ;;  %v3033_v37 = vld [vmem:[#allocation2 + $0x8] sm:$0xf0]  ;;  %v5708_v57 = vld [vmem:[#allocation41_spill] sm:$0xff] }
 0x14e   :  { %1994 = vmatpush.bf16.msrb.mxu2 %v1730_v25  ;;  %v465_v4 = vsel %vm464_vm6, %v3644_v14, %v461_v6  ;;  %v1185_v42 = vpack.c.bf16 %v1128_v22, %v1127_v58  ;;  %v3407_v25 = vld [vmem:[#allocation2 + $0x4] sm:$0xf0]  ;;  %v780_v63 = vadd.s32 160, %v4211_v52  ;;  %v4894_v10 = vadd.f32 1.0, %v208_v26  ;;  %v3648_v0 = vpop.eup %3647  ;;  %v253_v22 = vpop.xlane.xlu2 %252 }
 0x14f   :  { %v713_v44 = vpack.c.bf16 %v465_v4, %v465_v4  ;;  %1392 = vst [vmem:[#allocation2 + $0x98] sm:$0xff] %v1360_v30  ;;  %v3032_v14 = vor.u32 %v3407_v25, %v3031_v47  ;;  %v600_v18 = vsub.f32 1.5, %v599_v41  ;;  %v768_v59 = vadd.s32 64, %v4211_v52  ;;  %v3693_v25 = vld [vmem:[#allocation2 + $0xa0] sm:$0xff]  ;;  %v5699_v26 = vld [vmem:[#allocation38_spill] sm:$0xff] }
 0x150   :  { %v1223_v53 = vunpack.c.l.bf16 %v1185_v42  ;;  %v1224_v62 = vunpack.c.h.bf16 %v1185_v42  ;;  %3649 = vrsqrt.f32 %v4894_v10  ;;  %v5696_v21 = vpack.c.bf16 %v5694_v56, %v5695_v46 }
 0x151   :  { %v1026_v49 = vunpack.c.l.bf16 %v713_v44  ;;  %1906 = vmatmul.bf16.vlgmr.msra.gmra.mxu1 %v3032_v14  ;;  %v3096_v36 = vor.u32 %v3423_v60, %v3095_v55  ;;  %v601_v51 = vmul.f32 %v3646_v24, %v600_v18  ;;  %vm836_vm12 = vcmp.eq.s32.totalorder %v780_v63, %v4225_v31  ;;  %v250_v14 = vpop.xlane.xlu1 %249  ;;  %v5705_v18 = vld [vmem:[#allocation39_spill] sm:$0xff] }
 0x152   :  { %v1289_v16 = vmul.f32 %v4522_v33, %v1223_v53  ;;  %v1290_v12 = vmul.f32 %v4524_v23, %v1224_v62  ;;  %v1008_v1 = vsel %vm4889_vm9, %v5696_v21, %v3692_v27  ;;  %v3036_v43 = vor.u32 %v3406_v5, %v3033_v37  ;;  %vm975_vm14 = vmpackc.low %vm836_vm12, %vm3846_vm3  ;;  %v5700_v53 = vld [vmem:[#allocation37_spill] sm:$0xff]  ;;  %v3695_v21 = vld [vmem:[#allocation2 + $0xb8] sm:$0xff]  ;;  %v211_v37 = vpop.xlane.xlu0 %210 }
 0x153   :  { %v1129_v20 = vmul.f32 %v1065_v3, %v1026_v49  ;;  %v1130_v15 = vmul.f32 %v1066_v7, %v1026_v49  ;;  %v783_v11 = vadd.s32 184, %v4211_v52  ;;  %v587_v17 = vmul.f32 %v3648_v0, %v4880_v50  ;;  %1946 = vmatmul.bf16.vlgmr.msra.gmra.mxu3 %v3096_v36 }
 0x154   :  { %v1347_v54 = vpack.c.bf16 %v1290_v12, %v1289_v16  ;;  %v1093_v8 = vunpack.c.l.bf16 %v1008_v1  ;;  %v1094_v48 = vunpack.c.h.bf16 %v1008_v1  ;;  %v605_v58 = vsel %vm4908_vm11, %v3646_v24, %v601_v51  ;;  %1995 = vmatmul.bf16.vlgmr.msrb.gmra.mxu2 %v3036_v43  ;;  %v5707_v1 = vld [vmem:[#allocation42_spill] sm:$0xff] }
 0x155   :  { %v1186_v28 = vpack.c.bf16 %v1130_v15, %v1129_v20  ;;  %vm811_vm13 = vcmp.eq.s32.totalorder %v768_v59, %v4216_v45  ;;  %v727_v4 = vpack.c.bf16 %v605_v58, %v605_v58  ;;  %v588_v34 = vmul.f32 %v3648_v0, %v587_v17  ;;  %v3694_v20 = vld [vmem:[#allocation2 + $0x40] sm:$0xff]  ;;  %v5704_v15 = vld [vmem:[#allocation40_spill] sm:$0xff] }
 0x156   :  { %1379 = vst [vmem:[#allocation2 + $0x30] sm:$0xff] %v1347_v54  ;;  %v3650_v30 = vpop.eup %3649  ;;  %vm592_vm15 = vweird.f32 %v4880_v50  ;;  %vm593_vm0 = vweird.f32 %v3648_v0  ;;  %vm842_vm1 = vcmp.eq.s32.totalorder %v783_v11, %v4225_v31  ;;  %v4925_v24 = vadd.f32 1.0, %v253_v22  ;;  %vm963_vm2 = vmpackc.low %vm3846_vm3, %vm811_vm13 }
 0x157   :  { %v1225_v2 = vunpack.c.l.bf16 %v1186_v28  ;;  %v1226_v6 = vunpack.c.h.bf16 %v1186_v28  ;;  %v1040_v44 = vunpack.c.l.bf16 %v727_v4  ;;  %v589_v32 = vmul.f32 0.5, %v588_v34  ;;  %vm978_vm4 = vmpackc.low %vm842_vm1, %vm3846_vm3 }
 0x158   :  { %v467_v47 = vmul.f32 %v3650_v30, %v4894_v10  ;;  %v5701_v62 = vpack.c.bf16 %v5699_v26, %v5700_v53  ;;  %3651 = vrsqrt.f32 %v4925_v24  ;;  %vm4941_vm5 = vmor %vm592_vm15, %vm593_vm0  ;;  %v5706_v59 = vpack.c.bf16 %v5704_v15, %v5705_v18  ;;  %v3039_v15 = vld [vmem:[#allocation2 + $0x10] sm:$0xf]  ;;  %v3409_v18 = vld [vmem:[#allocation2 + $0x14] sm:$0xf0] }
 0x159   :  { %v1291_v3 = vmul.f32 %v4522_v33, %v1225_v2  ;;  %v1292_v7 = vmul.f32 %v4524_v23, %v1226_v6  ;;  %v1157_v35 = vmul.f32 %v1093_v8, %v1040_v44  ;;  %v1158_v41 = vmul.f32 %v1094_v48, %v1040_v44 }
 0x15a   :  { %v1007_v49 = vsel %vm975_vm14, %v5701_v62, %v3693_v25  ;;  %v590_v63 = vsub.f32 1.5, %v589_v32  ;;  %v468_v16 = vmul.f32 %v3650_v30, %v467_v47  ;;  %v995_v55 = vsel %vm963_vm2, %v5706_v59, %v3694_v20 }
 0x15b   :  { %v1348_v42 = vpack.c.bf16 %v1292_v7, %v1291_v3  ;;  %vm472_vm6 = vweird.f32 %v4894_v10  ;;  %v782_v60 = vadd.s32 176, %v4211_v52  ;;  %v4950_v54 = vadd.f32 1.0, %v250_v14 }
 0x15c   :  { %v1200_v28 = vpack.c.bf16 %v1158_v41, %v1157_v35  ;;  %v591_v27 = vmul.f32 %v3648_v0, %v590_v63  ;;  %v469_v56 = vmul.f32 0.5, %v468_v16  ;;  %vm473_vm7 = vweird.f32 %v3650_v30  ;;  %v3696_v41 = vld [vmem:[#allocation2 + $0xb0] sm:$0xff]  ;;  %v5710_v63 = vld [vmem:[#allocation44_spill] sm:$0xff] }
 0x15d   :  { %1380 = vst [vmem:[#allocation2 + $0x38] sm:$0xff] %v1348_v42  ;;  %v1091_v50 = vunpack.c.l.bf16 %v1007_v49  ;;  %v1092_v46 = vunpack.c.h.bf16 %v1007_v49  ;;  %v5709_v36 = vpack.c.bf16 %v5707_v1, %v5708_v57  ;;  %3653 = vrsqrt.f32 %v4950_v54  ;;  %vm474_vm8 = vmor %vm472_vm6, %vm473_vm7  ;;  %v5711_v16 = vld [vmem:[#allocation43_spill] sm:$0xff] }
 0x15e   :  { %v1253_v51 = vunpack.c.l.bf16 %v1200_v28  ;;  %v1254_v43 = vunpack.c.h.bf16 %v1200_v28  ;;  %v595_v11 = vsel %vm4941_vm5, %v3648_v0, %v591_v27  ;;  %v470_v2 = vsub.f32 1.5, %v469_v56  ;;  %v3652_v6 = vpop.eup %3651 }
 0x15f   :  { %v4955_v5 = vsel %vm978_vm4, %v5709_v36, %v3695_v21  ;;  %v726_v17 = vpack.c.bf16 %v595_v11, %v595_v11  ;;  %v1067_v8 = vunpack.c.l.bf16 %v995_v55  ;;  %v1068_v48 = vunpack.c.h.bf16 %v995_v55 }
 0x160   :  { %vm840_vm9 = vcmp.eq.s32.totalorder %v782_v60, %v4225_v31  ;;  %v1319_v58 = vmul.f32 %v4522_v33, %v1253_v51  ;;  %v1320_v22 = vmul.f32 %v4524_v23, %v1254_v43  ;;  %v471_v3 = vmul.f32 %v3650_v30, %v470_v2 }
 0x161   :  { %v617_v7 = vmul.f32 %v3652_v6, %v4925_v24  ;;  %v1039_v4 = vunpack.c.l.bf16 %v726_v17  ;;  %v1097_v0 = vunpack.c.l.bf16 %v4955_v5  ;;  %v1098_v34 = vunpack.c.h.bf16 %v4955_v5  ;;  %vm977_vm10 = vmpackc.low %vm840_vm9, %vm3846_vm3 }
 0x162   :  { %v4969_v42 = vadd.f32 1.0, %v211_v37  ;;  %v1362_v44 = vpack.c.bf16 %v1320_v22, %v1319_v58  ;;  %v475_v32 = vsel %vm474_vm8, %v3650_v30, %v471_v3  ;;  %v769_v47 = vadd.s32 72, %v4211_v52 }
 0x163   :  { %v618_v10 = vmul.f32 %v3652_v6, %v617_v7  ;;  %v4973_v25 = vpop.eup %3653  ;;  %v1155_v26 = vmul.f32 %v1091_v50, %v1039_v4  ;;  %v1156_v53 = vmul.f32 %v1092_v46, %v1039_v4  ;;  %v714_v62 = vpack.c.bf16 %v475_v32, %v475_v32  ;;  %v214_v46 = vpop.xlane.xlu0 %213  ;;  %v3408_v4 = vld [vmem:[#allocation2 + $0x14] sm:$0xf] }
 0x164   :  { %vm622_vm11 = vweird.f32 %v4925_v24  ;;  %1394 = vst [vmem:[#allocation2 + $0xa8] sm:$0xff] %v1362_v44  ;;  %vm623_vm12 = vweird.f32 %v3652_v6  ;;  %v607_v14 = vmul.f32 %v4973_v25, %v4950_v54  ;;  %vm612_vm13 = vweird.f32 %v4950_v54  ;;  %v5723_v7 = vld [vmem:[#allocation47_spill] sm:$0xff] }
 0x165   :  { %v619_v49 = vmul.f32 0.5, %v618_v10  ;;  %v1199_v30 = vpack.c.bf16 %v1156_v53, %v1155_v26  ;;  %v1027_v35 = vunpack.c.l.bf16 %v714_v62  ;;  %v5712_v12 = vpack.c.bf16 %v5710_v63, %v5711_v16  ;;  %vm624_vm15 = vmor %vm622_vm11, %vm623_vm12  ;;  %v3697_v10 = vld [vmem:[#allocation2 + $0x48] sm:$0xff]  ;;  %v5718_v26 = vld [vmem:[#allocation45_spill] sm:$0xff]  ;;  %v256_v63 = vpop.xlane.xlu2 %255 }
 0x166   :  { %3655 = vrsqrt.f32 %v4969_v42  ;;  %v608_v55 = vmul.f32 %v4973_v25, %v607_v14  ;;  %vm813_vm14 = vcmp.eq.s32.totalorder %v769_v47, %v4216_v45  ;;  %v3040_v60 = vor.u32 %v3409_v18, %v3039_v15  ;;  %v5717_v47 = vld [vmem:[#allocation46_spill] sm:$0xff] }
 0x167   :  { %v4982_v20 = vsel %vm977_vm10, %v5712_v12, %v3696_v41  ;;  %v620_v59 = vsub.f32 1.5, %v619_v49  ;;  %v1251_v28 = vunpack.c.l.bf16 %v1199_v30  ;;  %v1252_v27 = vunpack.c.h.bf16 %v1199_v30  ;;  %vm4999_vm1 = vmpackc.low %vm3846_vm3, %vm813_vm14  ;;  %v3425_v41 = vld [vmem:[#allocation2 + $0x94] sm:$0xf0] }
 0x168   :  { %v1131_v56 = vmul.f32 %v1067_v8, %v1027_v35  ;;  %v1132_v50 = vmul.f32 %v1068_v48, %v1027_v35  ;;  %v609_v1 = vmul.f32 0.5, %v608_v55  ;;  %vm613_vm0 = vweird.f32 %v4973_v25  ;;  %1911 = vmatmul.bf16.gmra.mxu1 %v3040_v60  ;;  %v3103_v35 = vld [vmem:[#allocation2 + $0x90] sm:$0xf] }
 0x169   :  { %v621_v21 = vmul.f32 %v3652_v6, %v620_v59  ;;  %v4991_v57 = vadd.f32 1.0, %v214_v46  ;;  %v1317_v36 = vmul.f32 %v4522_v33, %v1251_v28  ;;  %v1318_v37 = vmul.f32 %v4524_v23, %v1252_v27  ;;  %vm5009_vm2 = vmor %vm612_vm13, %vm613_vm0 }
 0x16a   :  { %v1187_v51 = vpack.c.bf16 %v1132_v50, %v1131_v56  ;;  %v1095_v43 = vunpack.c.l.bf16 %v4982_v20  ;;  %v610_v2 = vsub.f32 1.5, %v609_v1  ;;  %v770_v17 = vadd.s32 80, %v4211_v52 }
 0x16b   :  { %v625_v11 = vsel %vm624_vm15, %v3652_v6, %v621_v21  ;;  %3657 = vrsqrt.f32 %v4991_v57  ;;  %v1361_v48 = vpack.c.bf16 %v1318_v37, %v1317_v36  ;;  %v3041_v6 = vld [vmem:[#allocation2 + $0x18] sm:$0xf0]  ;;  %v1096_v44 = vunpack.c.h.bf16 %v4982_v20 }
 0x16c   :  { %v3656_v8 = vpop.eup %3655  ;;  %v1227_v58 = vunpack.c.l.bf16 %v1187_v51  ;;  %v1228_v22 = vunpack.c.h.bf16 %v1187_v51  ;;  %v729_v3 = vpack.c.bf16 %v625_v11, %v625_v11  ;;  %v611_v32 = vmul.f32 %v4973_v25, %v610_v2 }
 0x16d   :  { %v5719_v53 = vpack.c.bf16 %v5717_v47, %v5718_v26  ;;  %v477_v54 = vmul.f32 %v3656_v8, %v4969_v42  ;;  %1393 = vst [vmem:[#allocation2 + $0xa0] sm:$0xff] %v1361_v48  ;;  %vm482_vm4 = vweird.f32 %v4969_v42  ;;  %vm815_vm5 = vcmp.eq.s32.totalorder %v770_v17, %v4216_v45  ;;  %v217_v42 = vpop.xlane.xlu1 %216 }
 0x16e   :  { %v1293_v49 = vmul.f32 %v4522_v33, %v1227_v58  ;;  %v1294_v14 = vmul.f32 %v4524_v23, %v1228_v22  ;;  %v1042_v30 = vunpack.c.l.bf16 %v729_v3  ;;  %v615_v16 = vsel %vm5009_vm2, %v4973_v25, %v611_v32  ;;  %vm5041_vm7 = vmpackc.low %vm3846_vm3, %vm815_vm5  ;;  %v3698_v22 = vld [vmem:[#allocation2 + $0x50] sm:$0xff]  ;;  %v5722_v3 = vld [vmem:[#allocation48_spill] sm:$0xff] }
 0x16f   :  { %v5020_v62 = vsel %vm4999_vm1, %v5719_v53, %v3697_v10  ;;  %v478_v12 = vmul.f32 %v3656_v8, %v477_v54  ;;  %v3044_v20 = vor.u32 %v3408_v4, %v3041_v6  ;;  %v728_v55 = vpack.c.bf16 %v615_v16, %v615_v16 }
 0x170   :  { %v1349_v15 = vpack.c.bf16 %v1294_v14, %v1293_v49  ;;  %v1161_v18 = vmul.f32 %v1097_v0, %v1042_v30  ;;  %v1162_v59 = vmul.f32 %v1098_v34, %v1042_v30  ;;  %vm483_vm6 = vweird.f32 %v3656_v8 }
 0x171   :  { %v3658_v60 = vpop.eup %3657  ;;  %v479_v28 = vmul.f32 0.5, %v478_v12  ;;  %2000 = vmatmul.bf16.gmra.mxu2 %v3044_v20  ;;  %v3104_v27 = vor.u32 %v3425_v41, %v3103_v35  ;;  %v5034_v56 = vadd.f32 1.0, %v256_v63  ;;  %v1041_v50 = vunpack.c.l.bf16 %v728_v55  ;;  %vm484_vm8 = vmor %vm482_vm4, %vm483_vm6  ;;  %v259_v55 = vpop.xlane.xlu0 %258 }
 0x172   :  { %1381 = vst [vmem:[#allocation2 + $0x40] sm:$0xff] %v1349_v15  ;;  %v1202_v25 = vpack.c.bf16 %v1162_v59, %v1161_v18  ;;  %v487_v46 = vmul.f32 %v3658_v60, %v4991_v57  ;;  %v1069_v21 = vunpack.c.l.bf16 %v5020_v62  ;;  %v1070_v51 = vunpack.c.h.bf16 %v5020_v62 }
 0x173   :  { %v480_v1 = vsub.f32 1.5, %v479_v28  ;;  %1951 = vmatmul.bf16.gmra.mxu3 %v3104_v27  ;;  %3659 = vrsqrt.f32 %v5034_v56  ;;  %v1159_v36 = vmul.f32 %v1095_v43, %v1041_v50  ;;  %v1160_v37 = vmul.f32 %v1096_v44, %v1041_v50  ;;  %v3699_v50 = vld [vmem:[#allocation2 + $0xc0] sm:$0xff] }
 0x174   :  { %v1257_v0 = vunpack.c.l.bf16 %v1202_v25  ;;  %v1258_v34 = vunpack.c.h.bf16 %v1202_v25  ;;  %v488_v11 = vmul.f32 %v3658_v60, %v487_v46  ;;  %v784_v2 = vadd.s32 192, %v4211_v52  ;;  %v5725_v46 = vld [vmem:[#allocation50_spill] sm:$0xff] }
 0x175   :  { %v481_v24 = vmul.f32 %v3656_v8, %v480_v1  ;;  %v1201_v58 = vpack.c.bf16 %v1160_v37, %v1159_v36  ;;  %v5724_v43 = vpack.c.bf16 %v5722_v3, %v5723_v7  ;;  %vm492_vm9 = vweird.f32 %v4991_v57 }
 0x176   :  { %v1323_v17 = vmul.f32 %v4522_v33, %v1257_v0  ;;  %v1324_v48 = vmul.f32 %v4524_v23, %v1258_v34  ;;  %v489_v44 = vmul.f32 0.5, %v488_v11  ;;  %vm493_vm10 = vweird.f32 %v3658_v60 }
 0x177   :  { %v997_v4 = vsel %vm5041_vm7, %v5724_v43, %v3698_v22  ;;  %v485_v6 = vsel %vm484_vm8, %v3656_v8, %v481_v24  ;;  %v1255_v10 = vunpack.c.l.bf16 %v1201_v58  ;;  %v1256_v47 = vunpack.c.h.bf16 %v1201_v58  ;;  %vm494_vm12 = vmor %vm492_vm9, %vm493_vm10 }
 0x178   :  { %v1364_v32 = vpack.c.bf16 %v1324_v48, %v1323_v17  ;;  %v715_v26 = vpack.c.bf16 %v485_v6, %v485_v6  ;;  %v490_v62 = vsub.f32 1.5, %v489_v44  ;;  %vm844_vm11 = vcmp.eq.s32.totalorder %v784_v2, %v4225_v31  ;;  %v3047_v2 = vld [vmem:[#allocation2 + $0x20] sm:$0xf]  ;;  %v3411_v17 = vld [vmem:[#allocation2 + $0x24] sm:$0xf0]  ;;  %v220_v6 = vpop.xlane.xlu1 %219 }
 0x179   :  { %v3660_v53 = vpop.eup %3659  ;;  %v771_v54 = vadd.s32 88, %v4211_v52  ;;  %v5061_v49 = vadd.f32 1.0, %v217_v42  ;;  %v1321_v14 = vmul.f32 %v4522_v33, %v1255_v10  ;;  %v1322_v8 = vmul.f32 %v4524_v23, %v1256_v47  ;;  %vm979_vm13 = vmpackc.low %vm844_vm11, %vm3846_vm3  ;;  %v5730_v10 = vld [vmem:[#allocation52_spill] sm:$0xff]  ;;  %v5731_v47 = vld [vmem:[#allocation51_spill] sm:$0xff] }
 0x17a   :  { %1396 = vst [vmem:[#allocation2 + $0xb8] sm:$0xff] %v1364_v32  ;;  %v1028_v30 = vunpack.c.l.bf16 %v715_v26  ;;  %v627_v35 = vmul.f32 %v3660_v53, %v5034_v56  ;;  %v1071_v41 = vunpack.c.l.bf16 %v997_v4  ;;  %v491_v63 = vmul.f32 %v3658_v60, %v490_v62  ;;  %v3700_v32 = vld [vmem:[#allocation2 + $0x58] sm:$0xff] }
 0x17b   :  { %v1363_v16 = vpack.c.bf16 %v1322_v8, %v1321_v14  ;;  %v1072_v18 = vunpack.c.h.bf16 %v997_v4  ;;  %vm817_vm14 = vcmp.eq.s32.totalorder %v771_v54, %v4216_v45  ;;  %3661 = vrsqrt.f32 %v5061_v49 }
 0x17c   :  { %v1133_v12 = vmul.f32 %v1069_v21, %v1028_v30  ;;  %v1134_v20 = vmul.f32 %v1070_v51, %v1028_v30  ;;  %v628_v15 = vmul.f32 %v3660_v53, %v627_v35  ;;  %v495_v59 = vsel %vm494_vm12, %v3658_v60, %v491_v63  ;;  %v5726_v21 = vld [vmem:[#allocation49_spill] sm:$0xff]  ;;  %vm5080_vm1 = vmpackc.low %vm3846_vm3, %vm817_vm14 }
 0x17d   :  { %1395 = vst [vmem:[#allocation2 + $0xb0] sm:$0xff] %v1363_v16  ;;  %v716_v28 = vpack.c.bf16 %v495_v59, %v495_v59  ;;  %v5071_v25 = vadd.f32 1.0, %v259_v55  ;;  %v5727_v1 = vpack.c.bf16 %v5725_v46, %v5726_v21  ;;  %vm632_vm15 = vweird.f32 %v5034_v56  ;;  %v3410_v16 = vld [vmem:[#allocation2 + $0x24] sm:$0xf]  ;;  %v3111_v55 = vld [vmem:[#allocation2 + $0xa0] sm:$0xf] }
 0x17e   :  { %v1188_v57 = vpack.c.bf16 %v1134_v20, %v1133_v12  ;;  %v629_v27 = vmul.f32 0.5, %v628_v15  ;;  %vm633_vm0 = vweird.f32 %v3660_v53  ;;  %v3048_v3 = vor.u32 %v3411_v17, %v3047_v2  ;;  %v3049_v12 = vld [vmem:[#allocation2 + $0x28] sm:$0xf0] }
 0x17f   :  { %v1011_v5 = vsel %vm979_vm13, %v5727_v1, %v3699_v50  ;;  %v1029_v34 = vunpack.c.l.bf16 %v716_v28  ;;  %3663 = vrsqrt.f32 %v5071_v25  ;;  %vm634_vm2 = vmor %vm632_vm15, %vm633_vm0  ;;  %v5732_v26 = vpack.c.bf16 %v5730_v10, %v5731_v47  ;;  %v223_v50 = vpop.xlane.xlu2 %222 }
 0x180   :  { %v1229_v60 = vunpack.c.l.bf16 %v1188_v57  ;;  %v1230_v0 = vunpack.c.h.bf16 %v1188_v57  ;;  %v630_v36 = vsub.f32 1.5, %v629_v27  ;;  %v1099_v58 = vunpack.c.l.bf16 %v1011_v5  ;;  %1916 = vmatmul.bf16.gmra.mxu1 %v3048_v3  ;;  %v3427_v57 = vld [vmem:[#allocation2 + $0xa4] sm:$0xf0] }
 0x181   :  { %v1135_v11 = vmul.f32 %v1071_v41, %v1029_v34  ;;  %v1136_v56 = vmul.f32 %v1072_v18, %v1029_v34  ;;  %v3662_v48 = vpop.eup %3661  ;;  %v1100_v4 = vunpack.c.h.bf16 %v1011_v5  ;;  %v5093_v62 = vsel %vm5080_vm1, %v5732_v26, %v3700_v32 }
 0x182   :  { %v1295_v51 = vmul.f32 %v4522_v33, %v1229_v60  ;;  %v1296_v24 = vmul.f32 %v4524_v23, %v1230_v0  ;;  %v631_v22 = vmul.f32 %v3660_v53, %v630_v36  ;;  %v497_v42 = vmul.f32 %v3662_v48, %v5061_v49 }
 0x183   :  { %v1189_v43 = vpack.c.bf16 %v1136_v56, %v1135_v11  ;;  %v785_v54 = vadd.s32 200, %v4211_v52  ;;  %v5096_v14 = vadd.f32 1.0, %v220_v6  ;;  %vm502_vm4 = vweird.f32 %v5061_v49  ;;  %v5738_v6 = vld [vmem:[#allocation53_spill] sm:$0xff] }
 0x184   :  { %v1350_v7 = vpack.c.bf16 %v1296_v24, %v1295_v51  ;;  %v635_v44 = vsel %vm634_vm2, %v3660_v53, %v631_v22  ;;  %v498_v41 = vmul.f32 %v3662_v48, %v497_v42  ;;  %vm503_vm5 = vweird.f32 %v3662_v48  ;;  %v5737_v42 = vld [vmem:[#allocation54_spill] sm:$0xff] }
 0x185   :  { %v1231_v8 = vunpack.c.l.bf16 %v1189_v43  ;;  %v1232_v30 = vunpack.c.h.bf16 %v1189_v43  ;;  %v730_v35 = vpack.c.bf16 %v635_v44, %v635_v44  ;;  %v5098_v63 = vpop.eup %3663  ;;  %v772_v53 = vadd.s32 96, %v4211_v52  ;;  %vm5112_vm7 = vmor %vm502_vm4, %vm503_vm5 }
 0x186   :  { %1382 = vst [vmem:[#allocation2 + $0x48] sm:$0xff] %v1350_v7  ;;  %3665 = vrsqrt.f32 %v5096_v14  ;;  %v499_v59 = vmul.f32 0.5, %v498_v41  ;;  %vm846_vm6 = vcmp.eq.s32.totalorder %v785_v54, %v4225_v31  ;;  %v637_v28 = vmul.f32 %v5098_v63, %v5071_v25  ;;  %v265_v54 = vpop.xlane.xlu1 %264  ;;  %v5742_v41 = vld [vmem:[#allocation56_spill] sm:$0xff] }
 0x187   :  { %v1297_v20 = vmul.f32 %v4522_v33, %v1231_v8  ;;  %v1298_v15 = vmul.f32 %v4524_v23, %v1232_v30  ;;  %v1043_v18 = vunpack.c.l.bf16 %v730_v35  ;;  %v3052_v27 = vor.u32 %v3410_v16, %v3049_v12  ;;  %vm980_vm9 = vmpackc.low %vm846_vm6, %vm3846_vm3  ;;  %v3702_v35 = vld [vmem:[#allocation2 + $0x60] sm:$0xff] }
 0x188   :  { %v500_v5 = vsub.f32 1.5, %v499_v59  ;;  %v1073_v60 = vunpack.c.l.bf16 %v5093_v62  ;;  %v638_v34 = vmul.f32 %v5098_v63, %v637_v28  ;;  %vm819_vm8 = vcmp.eq.s32.totalorder %v772_v53, %v4216_v45  ;;  %v5743_v53 = vld [vmem:[#allocation55_spill] sm:$0xff] }
 0x189   :  { %v1351_v46 = vpack.c.bf16 %v1298_v15, %v1297_v20  ;;  %v1163_v21 = vmul.f32 %v1099_v58, %v1043_v18  ;;  %v1164_v1 = vmul.f32 %v1100_v4, %v1043_v18  ;;  %2005 = vmatmul.bf16.gmra.mxu2 %v3052_v27  ;;  %v3112_v36 = vor.u32 %v3427_v57, %v3111_v55  ;;  %vm5132_vm12 = vmpackc.low %vm3846_vm3, %vm819_vm8  ;;  %v3701_v4 = vld [vmem:[#allocation2 + $0xc8] sm:$0xff] }
 0x18a   :  { %v1074_v51 = vunpack.c.h.bf16 %v5093_v62  ;;  %v501_v24 = vmul.f32 %v3662_v48, %v500_v5  ;;  %v5122_v49 = vadd.f32 1.0, %v223_v50  ;;  %v639_v56 = vmul.f32 0.5, %v638_v34  ;;  %v262_v5 = vpop.xlane.xlu0 %261 }
 0x18b   :  { %1383 = vst [vmem:[#allocation2 + $0x50] sm:$0xff] %v1351_v46  ;;  %v1203_v37 = vpack.c.bf16 %v1164_v1, %v1163_v21  ;;  %vm642_vm10 = vweird.f32 %v5071_v25  ;;  %vm643_vm11 = vweird.f32 %v5098_v63  ;;  %1956 = vmatmul.bf16.gmra.mxu3 %v3112_v36  ;;  %v773_v2 = vadd.s32 104, %v4211_v52 }
 0x18c   :  { %v3666_v11 = vpop.eup %3665  ;;  %v505_v22 = vsel %vm5112_vm7, %v3662_v48, %v501_v24  ;;  %v5739_v44 = vpack.c.bf16 %v5737_v42, %v5738_v6  ;;  %v640_v10 = vsub.f32 1.5, %v639_v56  ;;  %vm512_vm13 = vweird.f32 %v5096_v14  ;;  %vm5147_vm14 = vmor %vm642_vm10, %vm643_vm11  ;;  %v3703_v24 = vld [vmem:[#allocation2 + $0x68] sm:$0xff] }
 0x18d   :  { %v1259_v17 = vunpack.c.l.bf16 %v1203_v37  ;;  %v1260_v58 = vunpack.c.h.bf16 %v1203_v37  ;;  %v507_v7 = vmul.f32 %v3666_v11, %v5096_v14  ;;  %v717_v43 = vpack.c.bf16 %v505_v22, %v505_v22  ;;  %v5745_v56 = vld [vmem:[#allocation58_spill] sm:$0xff] }
 0x18e   :  { %v1012_v32 = vsel %vm980_vm9, %v5739_v44, %v3701_v4  ;;  %3667 = vrsqrt.f32 %v5122_v49  ;;  %v641_v30 = vmul.f32 %v5098_v63, %v640_v10  ;;  %v5744_v16 = vpack.c.bf16 %v5742_v41, %v5743_v53  ;;  %v3413_v41 = vld [vmem:[#allocation2 + $0x34] sm:$0xf0] }
 0x18f   :  { %v1325_v48 = vmul.f32 %v4522_v33, %v1259_v17  ;;  %v1326_v47 = vmul.f32 %v4524_v23, %v1260_v58  ;;  %v508_v62 = vmul.f32 %v3666_v11, %v507_v7  ;;  %v1030_v8 = vunpack.c.l.bf16 %v717_v43 }
 0x190   :  { %v999_v12 = vsel %vm5132_vm12, %v5744_v16, %v3702_v35  ;;  %vm821_vm15 = vcmp.eq.s32.totalorder %v773_v2, %v4216_v45  ;;  %vm513_vm0 = vweird.f32 %v3666_v11  ;;  %v5159_v15 = vadd.f32 1.0, %v265_v54  ;;  %v5746_v2 = vld [vmem:[#allocation57_spill] sm:$0xff]  ;;  %v3055_v35 = vld [vmem:[#allocation2 + $0x30] sm:$0xf] }
 0x191   :  { %v1365_v25 = vpack.c.bf16 %v1326_v47, %v1325_v48  ;;  %v509_v20 = vmul.f32 0.5, %v508_v62  ;;  %v1137_v18 = vmul.f32 %v1073_v60, %v1030_v8  ;;  %v1138_v59 = vmul.f32 %v1074_v51, %v1030_v8  ;;  %vm968_vm1 = vmpackc.low %vm3846_vm3, %vm821_vm15 }
 0x192   :  { %v1101_v55 = vunpack.c.l.bf16 %v1012_v32  ;;  %v645_v57 = vsel %vm5147_vm14, %v5098_v63, %v641_v30  ;;  %v1102_v28 = vunpack.c.h.bf16 %v1012_v32  ;;  %v787_v46 = vadd.s32 216, %v4211_v52  ;;  %vm514_vm2 = vmor %vm512_vm13, %vm513_vm0 }
 0x193   :  { %1397 = vst [vmem:[#allocation2 + $0xc0] sm:$0xff] %v1365_v25  ;;  %v731_v27 = vpack.c.bf16 %v645_v57, %v645_v57  ;;  %v510_v50 = vsub.f32 1.5, %v509_v20  ;;  %v1190_v21 = vpack.c.bf16 %v1138_v59, %v1137_v18  ;;  %v1075_v1 = vunpack.c.l.bf16 %v999_v12  ;;  %v3704_v59 = vld [vmem:[#allocation2 + $0xd8] sm:$0xff]  ;;  %v5753_v57 = vld [vmem:[#allocation59_spill] sm:$0xff] }
 0x194   :  { %3669 = vrsqrt.f32 %v5159_v15  ;;  %v3668_v60 = vpop.eup %3667  ;;  %v1076_v34 = vunpack.c.h.bf16 %v999_v12  ;;  %v5169_v36 = vadd.f32 1.0, %v262_v5  ;;  %v5747_v17 = vpack.c.bf16 %v5745_v56, %v5746_v2 }
 0x195   :  { %v1044_v0 = vunpack.c.l.bf16 %v731_v27  ;;  %v511_v63 = vmul.f32 %v3666_v11, %v510_v50  ;;  %v1233_v37 = vunpack.c.l.bf16 %v1190_v21  ;;  %v1234_v51 = vunpack.c.h.bf16 %v1190_v21 }
 0x196   :  { %v5174_v58 = vsel %vm968_vm1, %v5747_v17, %v3703_v24  ;;  %v517_v14 = vmul.f32 %v3668_v60, %v5122_v49  ;;  %vm850_vm4 = vcmp.eq.s32.totalorder %v787_v46, %v4225_v31  ;;  %vm522_vm5 = vweird.f32 %v5122_v49  ;;  %v226_v49 = vpop.xlane.xlu2 %225 }
 0x197   :  { %v1165_v22 = vmul.f32 %v1101_v55, %v1044_v0  ;;  %v1166_v3 = vmul.f32 %v1102_v28, %v1044_v0  ;;  %v515_v7 = vsel %vm514_vm2, %v3666_v11, %v511_v63  ;;  %v1299_v43 = vmul.f32 %v4522_v33, %v1233_v37  ;;  %vm5186_vm7 = vmpackc.low %vm850_vm4, %vm3846_vm3  ;;  %v5752_v55 = vld [vmem:[#allocation60_spill] sm:$0xff] }
 0x198   :  { %v1300_v4 = vmul.f32 %v4524_v23, %v1234_v51  ;;  %v718_v42 = vpack.c.bf16 %v515_v7, %v515_v7  ;;  %v518_v6 = vmul.f32 %v3668_v60, %v517_v14  ;;  %v786_v32 = vadd.s32 208, %v4211_v52 }
 0x199   :  { %v1204_v44 = vpack.c.bf16 %v1166_v3, %v1165_v22  ;;  %3671 = vrsqrt.f32 %v5169_v36  ;;  %vm523_vm6 = vweird.f32 %v3668_v60  ;;  %v1077_v8 = vunpack.c.l.bf16 %v5174_v58 }
 0x19a   :  { %v5183_v10 = vpop.eup %3669  ;;  %v1352_v48 = vpack.c.bf16 %v1300_v4, %v1299_v43  ;;  %v1031_v47 = vunpack.c.l.bf16 %v718_v42  ;;  %v519_v11 = vmul.f32 0.5, %v518_v6  ;;  %vm662_vm8 = vweird.f32 %v5159_v15  ;;  %vm5199_vm9 = vmor %vm522_vm5, %vm523_vm6  ;;  %v3412_v4 = vld [vmem:[#allocation2 + $0x34] sm:$0xf]  ;;  %v3057_v42 = vld [vmem:[#allocation2 + $0x38] sm:$0xf0] }
 0x19b   :  { %v1261_v62 = vunpack.c.l.bf16 %v1204_v44  ;;  %v1262_v54 = vunpack.c.h.bf16 %v1204_v44  ;;  %v657_v30 = vmul.f32 %v5183_v10, %v5159_v15  ;;  %v5754_v28 = vpack.c.bf16 %v5752_v55, %v5753_v57 }
 0x19c   :  { %1384 = vst [vmem:[#allocation2 + $0x58] sm:$0xff] %v1352_v48  ;;  %v1139_v53 = vmul.f32 %v1075_v1, %v1031_v47  ;;  %v1140_v16 = vmul.f32 %v1076_v34, %v1031_v47  ;;  %v520_v12 = vsub.f32 1.5, %v519_v11  ;;  %vm848_vm10 = vcmp.eq.s32.totalorder %v786_v32, %v4225_v31  ;;  %v3119_v48 = vld [vmem:[#allocation2 + $0xb0] sm:$0xf]  ;;  %v3429_v47 = vld [vmem:[#allocation2 + $0xb4] sm:$0xf0] }
 0x19d   :  { %v1327_v25 = vmul.f32 %v4522_v33, %v1261_v62  ;;  %v1328_v20 = vmul.f32 %v4524_v23, %v1262_v54  ;;  %v5208_v27 = vsel %vm5186_vm7, %v5754_v28, %v3704_v59  ;;  %v658_v50 = vmul.f32 %v5183_v10, %v657_v30  ;;  %vm5223_vm12 = vmpackc.low %vm848_vm10, %vm3846_vm3 }
 0x19e   :  { %v1191_v46 = vpack.c.bf16 %v1140_v16, %v1139_v53  ;;  %v521_v21 = vmul.f32 %v3668_v60, %v520_v12  ;;  %v3056_v1 = vor.u32 %v3413_v41, %v3055_v35  ;;  %vm663_vm11 = vweird.f32 %v5183_v10  ;;  %v3705_v35 = vld [vmem:[#allocation2 + $0xd0] sm:$0xff]  ;;  %v5759_v41 = vld [vmem:[#allocation62_spill] sm:$0xff]  ;;  %v5760_v53 = vld [vmem:[#allocation61_spill] sm:$0xff] }
 0x19f   :  { %v3672_v5 = vpop.eup %3671  ;;  %v1366_v0 = vpack.c.bf16 %v1328_v20, %v1327_v25  ;;  %v659_v34 = vmul.f32 0.5, %v658_v50  ;;  %v5213_v63 = vadd.f32 1.0, %v226_v49  ;;  %v1078_v2 = vunpack.c.h.bf16 %v5174_v58  ;;  %vm5233_vm13 = vmor %vm662_vm8, %vm663_vm11  ;;  %v229_v25 = vpop.xlane.xlu0 %228 }
 0x1a0   :  { %v1235_v37 = vunpack.c.l.bf16 %v1191_v46  ;;  %v1236_v51 = vunpack.c.h.bf16 %v1191_v46  ;;  %v525_v24 = vsel %vm5199_vm9, %v3668_v60, %v521_v21  ;;  %v647_v56 = vmul.f32 %v3672_v5, %v5169_v36  ;;  %1921 = vmatmul.bf16.gmra.mxu1 %v3056_v1 }
 0x1a1   :  { %1398 = vst [vmem:[#allocation2 + $0xc8] sm:$0xff] %v1366_v0  ;;  %v719_v17 = vpack.c.bf16 %v525_v24, %v525_v24  ;;  %v1105_v14 = vunpack.c.l.bf16 %v5208_v27  ;;  %v660_v22 = vsub.f32 1.5, %v659_v34  ;;  %3673 = vrsqrt.f32 %v5213_v63 }
 0x1a2   :  { %v1301_v7 = vmul.f32 %v4522_v33, %v1235_v37  ;;  %v1302_v60 = vmul.f32 %v4524_v23, %v1236_v51  ;;  %v648_v43 = vmul.f32 %v3672_v5, %v647_v56  ;;  %vm652_vm14 = vweird.f32 %v5169_v36 }
 0x1a3   :  { %v1032_v6 = vunpack.c.l.bf16 %v719_v17  ;;  %v661_v44 = vmul.f32 %v5183_v10, %v660_v22  ;;  %v3060_v32 = vor.u32 %v3412_v4, %v3057_v42  ;;  %vm653_vm15 = vweird.f32 %v3672_v5  ;;  %v271_v17 = vpop.xlane.xlu2 %270 }
 0x1a4   :  { %v1353_v11 = vpack.c.bf16 %v1302_v60, %v1301_v7  ;;  %v649_v26 = vmul.f32 0.5, %v648_v43  ;;  %v3120_v15 = vor.u32 %v3429_v47, %v3119_v48  ;;  %v5761_v16 = vpack.c.bf16 %v5759_v41, %v5760_v53  ;;  %vm654_vm0 = vmor %vm652_vm14, %vm653_vm15  ;;  %v3706_v47 = vld [vmem:[#allocation2 + $0x70] sm:$0xff] }
 0x1a5   :  { %v1141_v62 = vmul.f32 %v1077_v8, %v1032_v6  ;;  %v1142_v54 = vmul.f32 %v1078_v2, %v1032_v6  ;;  %v665_v30 = vsel %vm5233_vm13, %v5183_v10, %v661_v44  ;;  %2010 = vmatmul.bf16.gmra.mxu2 %v3060_v32  ;;  %v1106_v20 = vunpack.c.h.bf16 %v5208_v27  ;;  %v268_v32 = vpop.xlane.xlu1 %267 }
 0x1a6   :  { %v1013_v12 = vsel %vm5223_vm12, %v5761_v16, %v3705_v35  ;;  %1385 = vst [vmem:[#allocation2 + $0x60] sm:$0xff] %v1353_v11  ;;  %v733_v18 = vpack.c.bf16 %v665_v30, %v665_v30  ;;  %v650_v59 = vsub.f32 1.5, %v649_v26  ;;  %v774_v8 = vadd.s32 112, %v4211_v52  ;;  %1961 = vmatmul.bf16.gmra.mxu3 %v3120_v15 }
 0x1a7   :  { %v1192_v55 = vpack.c.bf16 %v1142_v54, %v1141_v62  ;;  %v3674_v10 = vpop.eup %3673  ;;  %v1103_v28 = vunpack.c.l.bf16 %v1013_v12  ;;  %v5253_v46 = vadd.f32 1.0, %v229_v25  ;;  %v1104_v49 = vunpack.c.h.bf16 %v1013_v12 }
 0x1a8   :  { %v1046_v57 = vunpack.c.l.bf16 %v733_v18  ;;  %v651_v50 = vmul.f32 %v3672_v5, %v650_v59  ;;  %v527_v27 = vmul.f32 %v3674_v10, %v5213_v63  ;;  %vm823_vm1 = vcmp.eq.s32.totalorder %v774_v8, %v4216_v45 }
 0x1a9   :  { %v1237_v21 = vunpack.c.l.bf16 %v1192_v55  ;;  %v1238_v1 = vunpack.c.h.bf16 %v1192_v55  ;;  %vm532_vm2 = vweird.f32 %v5213_v63  ;;  %3675 = vrsqrt.f32 %v5253_v46  ;;  %vm969_vm5 = vmpackc.low %vm3846_vm3, %vm823_vm1  ;;  %v274_v55 = vpop.xlane.xlu0 %273 }
 0x1aa   :  { %v1169_v0 = vmul.f32 %v1105_v14, %v1046_v57  ;;  %v1170_v34 = vmul.f32 %v1106_v20, %v1046_v57  ;;  %v655_v37 = vsel %vm654_vm0, %v3672_v5, %v651_v50  ;;  %v528_v56 = vmul.f32 %v3674_v10, %v527_v27  ;;  %v3415_v57 = vld [vmem:[#allocation2 + $0x44] sm:$0xf0] }
 0x1ab   :  { %v1303_v51 = vmul.f32 %v4522_v33, %v1237_v21  ;;  %v1304_v36 = vmul.f32 %v4524_v23, %v1238_v1  ;;  %v732_v24 = vpack.c.bf16 %v655_v37, %v655_v37  ;;  %vm533_vm4 = vweird.f32 %v3674_v10  ;;  %v3414_v21 = vld [vmem:[#allocation2 + $0x44] sm:$0xf]  ;;  %v3065_v1 = vld [vmem:[#allocation2 + $0x48] sm:$0xf0]  ;;  %v3127_v37 = vld [vmem:[#allocation2 + $0xc0] sm:$0xf] }
 0x1ac   :  { %v1206_v2 = vpack.c.bf16 %v1170_v34, %v1169_v0  ;;  %v529_v7 = vmul.f32 0.5, %v528_v56  ;;  %v775_v60 = vadd.s32 120, %v4211_v52  ;;  %v5265_v58 = vadd.f32 1.0, %v271_v17  ;;  %vm534_vm6 = vmor %vm532_vm2, %vm533_vm4  ;;  %v5765_v56 = vld [vmem:[#allocation64_spill] sm:$0xff] }
 0x1ad   :  { %v1354_v22 = vpack.c.bf16 %v1304_v36, %v1303_v51  ;;  %v1045_v3 = vunpack.c.l.bf16 %v732_v24  ;;  %v5762_v11 = vpack.c.bf16 %v4378_v39, %v4370_v13  ;;  %v789_v30 = vadd.s32 232, %v4211_v52  ;;  %v3431_v51 = vld [vmem:[#allocation2 + $0xc4] sm:$0xf0]  ;;  %v277_v36 = vpop.xlane.xlu1 %276  ;;  %v3707_v24 = vld [vmem:[#allocation2 + $0x78] sm:$0xff] }
 0x1ae   :  { %v1265_v14 = vunpack.c.l.bf16 %v1206_v2  ;;  %v1266_v5 = vunpack.c.h.bf16 %v1206_v2  ;;  %v530_v42 = vsub.f32 1.5, %v529_v7  ;;  %3677 = vrsqrt.f32 %v5265_v58 }
 0x1af   :  { %1386 = vst [vmem:[#allocation2 + $0x68] sm:$0xff] %v1354_v22  ;;  %v1167_v43 = vmul.f32 %v1103_v28, %v1045_v3  ;;  %v1168_v4 = vmul.f32 %v1104_v49, %v1045_v3  ;;  %v1001_v26 = vsel %vm969_vm5, %v5762_v11, %v3706_v47  ;;  %v5275_v62 = vpop.eup %3675  ;;  %vm825_vm7 = vcmp.eq.s32.totalorder %v775_v60, %v4216_v45  ;;  %v5772_v47 = vld [vmem:[#allocation65_spill] sm:$0xff] }
 0x1b0   :  { %v1331_v6 = vmul.f32 %v4522_v33, %v1265_v14  ;;  %v1332_v44 = vmul.f32 %v4524_v23, %v1266_v5  ;;  %v531_v15 = vmul.f32 %v3674_v10, %v530_v42  ;;  %v5279_v35 = vadd.f32 1.0, %v268_v32  ;;  %vm5291_vm8 = vmpackc.low %vm3846_vm3, %vm825_vm7 }
 0x1b1   :  { %v1205_v48 = vpack.c.bf16 %v1168_v4, %v1167_v43  ;;  %v537_v16 = vmul.f32 %v5275_v62, %v5253_v46  ;;  %v1079_v12 = vunpack.c.l.bf16 %v1001_v26  ;;  %v1080_v13 = vunpack.c.h.bf16 %v1001_v26 }
 0x1b2   :  { %v1368_v54 = vpack.c.bf16 %v1332_v44, %v1331_v6  ;;  %v535_v53 = vsel %vm534_vm6, %v3674_v10, %v531_v15  ;;  %vm542_vm9 = vweird.f32 %v5253_v46  ;;  %vm854_vm10 = vcmp.eq.s32.totalorder %v789_v30, %v4225_v31  ;;  %v3063_v10 = vld [vmem:[#allocation2 + $0x40] sm:$0xf]  ;;  %v3708_v46 = vld [vmem:[#allocation2 + $0xe8] sm:$0xff] }
 0x1b3   :  { %v1263_v63 = vunpack.c.l.bf16 %v1205_v48  ;;  %v1264_v41 = vunpack.c.h.bf16 %v1205_v48  ;;  %v720_v39 = vpack.c.bf16 %v535_v53, %v535_v53  ;;  %v538_v18 = vmul.f32 %v5275_v62, %v537_v16  ;;  %vm5310_vm12 = vmpackc.low %vm854_vm10, %vm3846_vm3  ;;  %v5771_v48 = vld [vmem:[#allocation66_spill] sm:$0xff] }
 0x1b4   :  { %1400 = vst [vmem:[#allocation2 + $0xd8] sm:$0xff] %v1368_v54  ;;  %v5286_v59 = vpop.eup %3677  ;;  %3679 = vrsqrt.f32 %v5279_v35  ;;  %vm543_vm11 = vweird.f32 %v5275_v62  ;;  %v788_v0 = vadd.s32 224, %v4211_v52  ;;  %v3064_v34 = vor.u32 %v3415_v57, %v3063_v10 }
 0x1b5   :  { %v1329_v25 = vmul.f32 %v4522_v33, %v1263_v63  ;;  %v1330_v20 = vmul.f32 %v4524_v23, %v1264_v41  ;;  %v1033_v8 = vunpack.c.l.bf16 %v720_v39  ;;  %v539_v50 = vmul.f32 0.5, %v538_v18  ;;  %vm5319_vm13 = vmor %vm542_vm9, %vm543_vm11 }
 0x1b6   :  { %v677_v45 = vmul.f32 %v5286_v59, %v5265_v58  ;;  %v5766_v2 = vpack.c.bf16 %v4416_v19, %v5765_v56  ;;  %vm682_vm14 = vweird.f32 %v5265_v58  ;;  %1926 = vmatmul.bf16.gmra.mxu1 %v3064_v34  ;;  %v3068_v5 = vor.u32 %v3414_v21, %v3065_v1  ;;  %v3709_v21 = vld [vmem:[#allocation2 + $0xe0] sm:$0xff]  ;;  %v5776_v1 = vld [vmem:[#allocation68_spill] sm:$0xff] }
 0x1b7   :  { %v1367_v28 = vpack.c.bf16 %v1330_v20, %v1329_v25  ;;  %v1143_v49 = vmul.f32 %v1079_v12, %v1033_v8  ;;  %v1144_v27 = vmul.f32 %v1080_v13, %v1033_v8  ;;  %v540_v22 = vsub.f32 1.5, %v539_v50 }
 0x1b8   :  { %v1002_v17 = vsel %vm5291_vm8, %v5766_v2, %v3707_v24  ;;  %v678_v7 = vmul.f32 %v5286_v59, %v677_v45  ;;  %v3128_v60 = vor.u32 %v3431_v51, %v3127_v37  ;;  %vm683_vm15 = vweird.f32 %v5286_v59  ;;  %2015 = vmatmul.bf16.gmra.mxu2 %v3068_v5  ;;  %v3417_v24 = vld [vmem:[#allocation2 + $0x54] sm:$0xf0] }
 0x1b9   :  { %1399 = vst [vmem:[#allocation2 + $0xd0] sm:$0xff] %v1367_v28  ;;  %v1193_v14 = vpack.c.bf16 %v1144_v27, %v1143_v49  ;;  %v541_v43 = vmul.f32 %v5275_v62, %v540_v22  ;;  %v5326_v42 = vadd.f32 1.0, %v277_v36  ;;  %v5773_v11 = vpack.c.bf16 %v5771_v48, %v5772_v47  ;;  %vm684_vm1 = vmor %vm682_vm14, %vm683_vm15  ;;  %v5777_v49 = vld [vmem:[#allocation67_spill] sm:$0xff] }
 0x1ba   :  { %v679_v4 = vmul.f32 0.5, %v678_v7  ;;  %v3680_v6 = vpop.eup %3679  ;;  %vm852_vm0 = vcmp.eq.s32.totalorder %v788_v0, %v4225_v31  ;;  %1966 = vmatmul.bf16.gmra.mxu3 %v3128_v60  ;;  %v1081_v15 = vunpack.c.l.bf16 %v1002_v17  ;;  %v1082_v16 = vunpack.c.h.bf16 %v1002_v17  ;;  %v3071_v36 = vld [vmem:[#allocation2 + $0x50] sm:$0xf] }
 0x1bb   :  { %v1239_v44 = vunpack.c.l.bf16 %v1193_v14  ;;  %v1240_v32 = vunpack.c.h.bf16 %v1193_v14  ;;  %v1016_v26 = vsel %vm5310_vm12, %v5773_v11, %v3708_v46  ;;  %v545_v54 = vsel %vm5319_vm13, %v5275_v62, %v541_v43  ;;  %vm5346_vm2 = vmpackc.low %vm852_vm0, %vm3846_vm3  ;;  %v3433_v43 = vld [vmem:[#allocation2 + $0xd4] sm:$0xf0]  ;;  %v3416_v11 = vld [vmem:[#allocation2 + $0x54] sm:$0xf] }
 0x1bc   :  { %v680_v30 = vsub.f32 1.5, %v679_v4  ;;  %v667_v63 = vmul.f32 %v3680_v6, %v5279_v35  ;;  %v721_v12 = vpack.c.bf16 %v545_v54, %v545_v54  ;;  %v1109_v13 = vunpack.c.l.bf16 %v1016_v26 }
 0x1bd   :  { %v1305_v41 = vmul.f32 %v4522_v33, %v1239_v44  ;;  %v1306_v53 = vmul.f32 %v4524_v23, %v1240_v32  ;;  %3681 = vrsqrt.f32 %v5326_v42  ;;  %v1110_v8 = vunpack.c.h.bf16 %v1016_v26 }
 0x1be   :  { %v681_v39 = vmul.f32 %v5286_v59, %v680_v30  ;;  %v668_v25 = vmul.f32 %v3680_v6, %v667_v63  ;;  %v1034_v18 = vunpack.c.l.bf16 %v721_v12  ;;  %vm672_vm4 = vweird.f32 %v5279_v35 }
 0x1bf   :  { %v1355_v20 = vpack.c.bf16 %v1306_v53, %v1305_v41  ;;  %vm673_vm5 = vweird.f32 %v3680_v6  ;;  %v5353_v57 = vadd.f32 1.0, %v274_v55  ;;  %v5778_v27 = vpack.c.bf16 %v5776_v1, %v5777_v49 }
 0x1c0   :  { %v685_v58 = vsel %vm684_vm1, %v5286_v59, %v681_v39  ;;  %v669_v10 = vmul.f32 0.5, %v668_v25  ;;  %v1145_v28 = vmul.f32 %v1081_v15, %v1034_v18  ;;  %v1146_v50 = vmul.f32 %v1082_v16, %v1034_v18  ;;  %vm674_vm6 = vmor %vm672_vm4, %vm673_vm5  ;;  %v3135_v60 = vld [vmem:[#allocation2 + $0xd0] sm:$0xf] }
 0x1c1   :  { %1387 = vst [vmem:[#allocation2 + $0x70] sm:$0xff] %v1355_v20  ;;  %v735_v45 = vpack.c.bf16 %v685_v58, %v685_v58  ;;  %v1015_v0 = vsel %vm5346_vm2, %v5778_v27, %v3709_v21  ;;  %v791_v37 = vadd.s32 248, %v4211_v52  ;;  %3683 = vrsqrt.f32 %v5353_v57 }
 0x1c2   :  { %v670_v34 = vsub.f32 1.5, %v669_v10  ;;  %v1194_v59 = vpack.c.bf16 %v1146_v50, %v1145_v28  ;;  %v1107_v2 = vunpack.c.l.bf16 %v1015_v0  ;;  %v1108_v17 = vunpack.c.h.bf16 %v1015_v0  ;;  %v3710_v10 = vld [vmem:[#allocation2 + $0xf8] sm:$0xff] }
 0x1c3   :  { %v1048_v51 = vunpack.c.l.bf16 %v735_v45  ;;  %v3682_v56 = vpop.eup %3681  ;;  %v790_v3 = vadd.s32 240, %v4211_v52  ;;  %vm858_vm7 = vcmp.eq.s32.totalorder %v791_v37, %v4225_v31  ;;  %v3072_v44 = vor.u32 %v3417_v24, %v3071_v36  ;;  %v3073_v52 = vld [vmem:[#allocation2 + $0x58] sm:$0xf0]  ;;  %v3711_v37 = vld [vmem:[#allocation2 + $0xf0] sm:$0xff] }
 0x1c4   :  { %v671_v22 = vmul.f32 %v3680_v6, %v670_v34  ;;  %v1241_v7 = vunpack.c.l.bf16 %v1194_v59  ;;  %v1242_v14 = vunpack.c.h.bf16 %v1194_v59  ;;  %v697_v35 = vmul.f32 %v3682_v56, %v5326_v42  ;;  %vm5374_vm10 = vmpackc.low %vm858_vm7, %vm3846_vm3 }
 0x1c5   :  { %v1173_v19 = vmul.f32 %v1109_v13, %v1048_v51  ;;  %v1174_v5 = vmul.f32 %v1110_v8, %v1048_v51  ;;  %vm702_vm8 = vweird.f32 %v5326_v42  ;;  %vm856_vm9 = vcmp.eq.s32.totalorder %v790_v3, %v4225_v31  ;;  %v3419_v3 = vld [vmem:[#allocation2 + $0x64] sm:$0xf0] }
 0x1c6   :  { %v675_v4 = vsel %vm674_vm6, %v3680_v6, %v671_v22  ;;  %v1307_v32 = vmul.f32 %v4522_v33, %v1241_v7  ;;  %v1308_v46 = vmul.f32 %v4524_v23, %v1242_v14  ;;  %v698_v15 = vmul.f32 %v3682_v56, %v697_v35  ;;  %1931 = vmatmul.bf16.gmra.mxu1 %v3072_v44  ;;  %vm5392_vm13 = vmpackc.low %vm856_vm9, %vm3846_vm3  ;;  %v3079_v22 = vld [vmem:[#allocation2 + $0x60] sm:$0xf] }
 0x1c7   :  { %v1208_v48 = vpack.c.bf16 %v1174_v5, %v1173_v19  ;;  %v734_v47 = vpack.c.bf16 %v675_v4, %v675_v4  ;;  %v3684_v26 = vpop.eup %3683  ;;  %v3136_v6 = vor.u32 %v3433_v43, %v3135_v60  ;;  %vm703_vm11 = vweird.f32 %v3682_v56  ;;  %v3418_v43 = vld [vmem:[#allocation2 + $0x64] sm:$0xf]  ;;  %v3081_v4 = vld [vmem:[#allocation2 + $0x68] sm:$0xf0] }
 0x1c8   :  { %v1356_v54 = vpack.c.bf16 %v1308_v46, %v1307_v32  ;;  %v699_v16 = vmul.f32 0.5, %v698_v15  ;;  %v687_v12 = vmul.f32 %v3684_v26, %v5353_v57  ;;  %v3076_v13 = vor.u32 %v3416_v11, %v3073_v52  ;;  %vm704_vm12 = vmor %vm702_vm8, %vm703_vm11 }
 0x1c9   :  { %v1269_v30 = vunpack.c.l.bf16 %v1208_v48  ;;  %v1270_v63 = vunpack.c.h.bf16 %v1208_v48  ;;  %v1047_v41 = vunpack.c.l.bf16 %v734_v47  ;;  %v1018_v28 = vsel %vm5374_vm10, %v954_v61, %v3710_v10  ;;  %v3461_v61 = vld [vmem:[#allocation11 + $0x38] sm:$0xff] }
 0x1ca   :  { %1388 = vst [vmem:[#allocation2 + $0x78] sm:$0xff] %v1356_v54  ;;  %v700_v18 = vsub.f32 1.5, %v699_v16  ;;  %v688_v8 = vmul.f32 %v3684_v26, %v687_v12  ;;  %2020 = vmatmul.bf16.gmra.mxu2 %v3076_v13  ;;  %1971 = vmatmul.bf16.gmra.mxu3 %v3136_v6  ;;  %vm692_vm14 = vweird.f32 %v5353_v57  ;;  %vm693_vm15 = vweird.f32 %v3684_v26  ;;  %v3460_v6 = vld [vmem:[#allocation11 + $0x30] sm:$0xff]  ;;  %v3459_v16 = vld [vmem:[#allocation11 + $0x28] sm:$0xff]  ;;  %v3457_v10 = vld [vmem:[#allocation11 + $0x18] sm:$0xff] }
 0x1cb   :  { %v1335_v39 = vmul.f32 %v4522_v33, %v1269_v30  ;;  %v1336_v62 = vmul.f32 %v4524_v23, %v1270_v63  ;;  %v1171_v25 = vmul.f32 %v1107_v2, %v1047_v41  ;;  %v1172_v20 = vmul.f32 %v1108_v17, %v1047_v41  ;;  %vm694_vm3 = vmor %vm692_vm14, %vm693_vm15  ;;  %2368 = vmatpush.bf16.msrb.mxu3 %v3461_v61 }
 0x1cc   :  { %v701_v50 = vmul.f32 %v3682_v56, %v700_v18  ;;  %v689_v21 = vmul.f32 0.5, %v688_v8  ;;  %v1113_v1 = vunpack.c.l.bf16 %v1018_v28  ;;  %v1114_v49 = vunpack.c.h.bf16 %v1018_v28 }
 0x1cd   :  { %v1370_v55 = vpack.c.bf16 %v1336_v62, %v1335_v39  ;;  %v1207_v58 = vpack.c.bf16 %v1172_v20, %v1171_v25  ;;  %v5783_v59 = vpack.c.bf16 %v4591_v9, %v4588_v29  ;;  %v3080_v60 = vor.u32 %v3419_v3, %v3079_v22  ;;  %v3458_v62 = vld [vmem:[#allocation11 + $0x20] sm:$0xff]  ;;  %v3087_v20 = vld [vmem:[#allocation2 + $0x70] sm:$0xf] }
 0x1ce   :  { %v705_v42 = vsel %vm704_vm12, %v3682_v56, %v701_v50  ;;  %v690_v27 = vsub.f32 1.5, %v689_v21  ;;  %v3084_v46 = vor.u32 %v3418_v43, %v3081_v4  ;;  %v1907_v47 = vpop.f32.mrf.mxu1  ;;  %v3420_v50 = vld [vmem:[#allocation2 + $0x74] sm:$0xf] }
 0x1cf   :  { %1402 = vst [vmem:[#allocation2 + $0xe8] sm:$0xff] %v1370_v55  ;;  %v1267_v40 = vunpack.c.l.bf16 %v1207_v58  ;;  %v1268_v38 = vunpack.c.h.bf16 %v1207_v58  ;;  %v737_v34 = vpack.c.bf16 %v705_v42, %v705_v42  ;;  %v1017_v51 = vsel %vm5392_vm13, %v5783_v59, %v3711_v37  ;;  %2369 = vmatpush.bf16.msrb.mxu3 %v3460_v6  ;;  %v3455_v42 = vld [vmem:[#allocation11 + $0x8] sm:$0xff]  ;;  %v3422_v37 = vld [vmem:[#allocation2 + $0x84] sm:$0xf] }
 0x1d0   :  { %v691_v36 = vmul.f32 %v3684_v26, %v690_v27  ;;  %v1111_v2 = vunpack.c.l.bf16 %v1017_v51  ;;  %v1112_v19 = vunpack.c.h.bf16 %v1017_v51  ;;  %v3097_v59 = vld [vmem:[#allocation2 + $0x88] sm:$0xf0] }
 0x1d1   :  { %v1333_v0 = vmul.f32 %v4522_v33, %v1267_v40  ;;  %v1334_v31 = vmul.f32 %v4524_v23, %v1268_v38  ;;  %v1050_v56 = vunpack.c.l.bf16 %v737_v34  ;;  %v3421_v18 = vld [vmem:[#allocation2 + $0x74] sm:$0xf0]  ;;  %v3089_v45 = vld [vmem:[#allocation2 + $0x78] sm:$0xf0]  ;;  %v3454_v34 = vld [vmem:[#allocation11] sm:$0xff] }
 0x1d2   :  { %v695_v17 = vsel %vm694_vm3, %v3684_v26, %v691_v36  ;;  %v3088_v28 = vor.u32 %v3421_v18, %v3087_v20  ;;  %v3092_v38 = vor.u32 %v3420_v50, %v3089_v45  ;;  %v3100_v36 = vor.u32 %v3422_v37, %v3097_v59  ;;  %v3129_v50 = vld [vmem:[#allocation2 + $0xc8] sm:$0xf0] }
 0x1d3   :  { %v1369_v24 = vpack.c.bf16 %v1334_v31, %v1333_v0  ;;  %v1177_v7 = vmul.f32 %v1113_v1, %v1050_v56  ;;  %v1178_v14 = vmul.f32 %v1114_v49, %v1050_v56  ;;  %v736_v5 = vpack.c.bf16 %v695_v17, %v695_v17  ;;  %2370 = vmatpush.bf16.msrb.mxu3 %v3459_v16  ;;  %v3456_v49 = vld [vmem:[#allocation11 + $0x10] sm:$0xff] }
 0x1d5   :  { %1401 = vst [vmem:[#allocation2 + $0xe0] sm:$0xff] %v1369_v24  ;;  %v1210_v29 = vpack.c.bf16 %v1178_v14, %v1177_v7  ;;  %v1049_v9 = vunpack.c.l.bf16 %v736_v5  ;;  %v3424_v5 = vld [vmem:[#allocation2 + $0x94] sm:$0xf] }
 0x1d6   :  { %1936 = vmatmul.bf16.gmra.mxu1 %v3080_v60  ;;  %v3435_v48 = vld [vmem:[#allocation2 + $0xe4] sm:$0xf0]  ;;  %v1909_v8 = vpop.f32.mrf.mxu1  ;;  %v5410_v0 = vpop.f32.mrf.mxu3 }
 0x1d7   :  { %v1273_v57 = vunpack.c.l.bf16 %v1210_v29  ;;  %v1274_v35 = vunpack.c.h.bf16 %v1210_v29  ;;  %v1175_v44 = vmul.f32 %v1111_v2, %v1049_v9  ;;  %v1176_v32 = vmul.f32 %v1112_v19, %v1049_v9  ;;  %v1996_v54 = vpop.f32.mrf.mxu2  ;;  %2371 = vmatpush.bf16.msrb.mxu3 %v3458_v62  ;;  %v3105_v29 = vld [vmem:[#allocation2 + $0x98] sm:$0xf0] }
 0x1d8   :  { %v1997_v25 = vadd.f32 %v1996_v54, %v1907_v47  ;;  %v3108_v9 = vor.u32 %v3424_v5, %v3105_v29  ;;  %v3113_v47 = vld [vmem:[#allocation2 + $0xa8] sm:$0xf0] }
 0x1d9   :  { %v1339_v11 = vmul.f32 %v4522_v33, %v1273_v57  ;;  %v1340_v52 = vmul.f32 %v4524_v23, %v1274_v35  ;;  %v1209_v26 = vpack.c.bf16 %v1176_v32, %v1175_v44 }
 0x1da   :  { %2025 = vmatmul.bf16.gmra.mxu2 %v3084_v46  ;;  %v2076_v21 = vmax.f32 %v1997_v25, 0.0 }
 0x1db   :  { %v1372_v30 = vpack.c.bf16 %v1340_v52, %v1339_v11  ;;  %v1271_v63 = vunpack.c.l.bf16 %v1209_v26  ;;  %v1272_v41 = vunpack.c.h.bf16 %v1209_v26  ;;  %2372 = vmatpush.bf16.msrb.mxu3 %v3457_v10 }
 0x1dc   :  { %v3143_v15 = vld [vmem:[#allocation2 + $0xe0] sm:$0xf] }
 0x1dd   :  { %v3144_v53 = vor.u32 %v3435_v48, %v3143_v15  ;;  %1404 = vst [vmem:[#allocation2 + $0xf8] sm:$0xff] %v1372_v30  ;;  %v1337_v12 = vmul.f32 %v4522_v33, %v1271_v63  ;;  %v1338_v13 = vmul.f32 %v4524_v23, %v1272_v41  ;;  %v3426_v48 = vld [vmem:[#allocation2 + $0xa4] sm:$0xf]  ;;  %v3428_v41 = vld [vmem:[#allocation2 + $0xb4] sm:$0xf] }
 0x1de   :  { %v5412_v2 = vpop.f32.mrf.mxu3  ;;  %v3116_v6 = vor.u32 %v3426_v48, %v3113_v47 }
 0x1df   :  { %1976 = vmatmul.bf16.gmra.mxu3 %v3144_v53  ;;  %v1371_v39 = vpack.c.bf16 %v1338_v13, %v1337_v12  ;;  %v1998_v55 = vpop.f32.mrf.mxu2  ;;  %v3121_v53 = vld [vmem:[#allocation2 + $0xb8] sm:$0xf0] }
 0x1e0   :  { %v1999_v58 = vadd.f32 %v1998_v55, %v1909_v8  ;;  %2373 = vmatpush.bf16.msrb.mxu3 %v3456_v49  ;;  %v3124_v12 = vor.u32 %v3428_v41, %v3121_v53 }
 0x1e1   :  { %1403 = vst [vmem:[#allocation2 + $0xf0] sm:$0xff] %v1371_v39 }
 0x1e2   :  { %v2077_v33 = vmax.f32 %v1999_v58, 0.0 }
 0x1e4   :  { %v3437_v40 = vld [vmem:[#allocation2 + $0xf4] sm:$0xf0]  ;;  %v3497_v23 = vpack.c.bf16 %v2077_v33, %v2076_v21  ;;  %2374 = vmatpush.bf16.msrb.mxu3 %v3455_v42 }
 0x1e5   :  { %v1912_v27 = vpop.f32.mrf.mxu1 }
 0x1e6   :  { %1941 = vmatmul.bf16.gmra.mxu1 %v3088_v28  ;;  %3498 = vst [vmem:[#allocation3 + $0x30] sm:$0xff] %v3497_v23   ;;  %v3430_v28 = vld [vmem:[#allocation2 + $0xc4] sm:$0xf] }
 0x1e7   :  { %v3132_v45 = vor.u32 %v3430_v28, %v3129_v50 }
 0x1e8   :  { %v3151_v61 = vld [vmem:[#allocation2 + $0xf0] sm:$0xf]  ;;  %2375 = vmatpush.bf16.msrb.mxu3 %v3454_v34 }
 0x1e9   :  { %v3152_v1 = vor.u32 %v3437_v40, %v3151_v61 }
 0x1ea   :  { %2030 = vmatmul.bf16.gmra.mxu2 %v3092_v38 }
 0x1ed   :  { %v1914_v24 = vpop.f32.mrf.mxu1  ;;  %v3438_v22 = vld [vmem:[#allocation3 + $0x30] sm:$0xff] }
 0x1ef   :  { %1981 = vmatmul.bf16.gmra.mxu3 %v3152_v1 }
 0x1f4   :  { %v2001_v31 = vpop.f32.mrf.mxu2 }
 0x1f5   :  { %v2002_v51 = vadd.f32 %v2001_v31, %v1912_v27  ;;  %v3432_v27 = vld [vmem:[#allocation2 + $0xd4] sm:$0xf]  ;;  %v3137_v31 = vld [vmem:[#allocation2 + $0xd8] sm:$0xf0] }
 0x1f6   :  { %v5414_v19 = vpop.f32.mrf.mxu3  ;;  %v3140_v59 = vor.u32 %v3432_v27, %v3137_v31 }
 0x1f7   :  { %v2078_v3 = vmax.f32 %v2002_v51, 0.0 }
 0x1fa   :  { %2035 = vmatmul.bf16.gmra.mxu2 %v3100_v36 }
 0x1fc   :  { %v2003_v56 = vpop.f32.mrf.mxu2 }
 0x1fd   :  { %v2004_v17 = vadd.f32 %v2003_v56, %v1914_v24  ;;  %v1917_v60 = vpop.f32.mrf.mxu1 }
 0x1fe   :  { %v5416_v57 = vpop.f32.mrf.mxu3 }
 0x1ff   :  { %v2079_v7 = vmax.f32 %v2004_v17, 0.0  ;;  %2376 = vmatmul.bf16.vlgmr.msrb.gmra.mxu3 %v3438_v22 }
 0x201   :  { %v3502_v14 = vpack.c.bf16 %v2079_v7, %v2078_v3  ;;  %v3434_v7 = vld [vmem:[#allocation2 + $0xe4] sm:$0xf] }
 0x203   :  { %3574 = vst [vmem:[#allocation3] sm:$0xff] %v3502_v14   ;;  %v3145_v14 = vld [vmem:[#allocation2 + $0xe8] sm:$0xf0] }
 0x205   :  { %v1919_v44 = vpop.f32.mrf.mxu1 }
 0x20a   :  { %v3439_v43 = vld [vmem:[#allocation3] sm:$0xff]  ;;  %2040 = vmatmul.bf16.gmra.mxu2 %v3108_v9 }
 0x20c   :  { %v2006_v4 = vpop.f32.mrf.mxu2 }
 0x20d   :  { %v2007_v35 = vadd.f32 %v2006_v4, %v1917_v60 }
 0x20e   :  { %v5418_v52 = vpop.f32.mrf.mxu3 }
 0x20f   :  { %2381 = vmatmul.bf16.gmra.mxu3 %v3439_v43  ;;  %v2080_v11 = vmax.f32 %v2007_v35, 0.0  ;;  %v3148_v43 = vor.u32 %v3434_v7, %v3145_v14 }
 0x214   :  { %v2008_v32 = vpop.f32.mrf.mxu2 }
 0x215   :  { %v2009_v46 = vadd.f32 %v2008_v32, %v1919_v44 }
 0x216   :  { %v5420_v54 = vpop.f32.mrf.mxu3 }
 0x217   :  { %v2081_v26 = vmax.f32 %v2009_v46, 0.0 }
 0x219   :  { %v3507_v15 = vpack.c.bf16 %v2081_v26, %v2080_v11  ;;  %v3436_v26 = vld [vmem:[#allocation2 + $0xf4] sm:$0xf] }
 0x21a   :  { %2045 = vmatmul.bf16.gmra.mxu2 %v3116_v6 }
 0x21b   :  { %3575 = vst [vmem:[#allocation3 + $0x58] sm:$0xff] %v3507_v15   ;;  %v3153_v15 = vld [vmem:[#allocation2 + $0xf8] sm:$0xf0] }
 0x21c   :  { %v3156_v41 = vor.u32 %v3436_v26, %v3153_v15 }
 0x21d   :  { %v1922_v30 = vpop.f32.mrf.mxu1 }
 0x222   :  { %v3440_v63 = vld [vmem:[#allocation3 + $0x58] sm:$0xff] }
 0x223   :  { %2386 = vmatmul.bf16.gmra.mxu3 %v3440_v63 }
 0x225   :  { %v1924_v39 = vpop.f32.mrf.mxu1 }
 0x228   :  { %v2011_v16 = vpop.f32.mrf.mxu2 }
 0x229   :  { %v5422_v13 = vpop.f32.mrf.mxu3  ;;  %v2012_v62 = vadd.f32 %v2011_v16, %v1922_v30 }
 0x22a   :  { %2050 = vmatmul.bf16.gmra.mxu2 %v3124_v12 }
 0x22b   :  { %v2082_v18 = vmax.f32 %v2012_v62, 0.0 }
 0x230   :  { %v2013_v25 = vpop.f32.mrf.mxu2 }
 0x231   :  { %v2014_v20 = vadd.f32 %v2013_v25, %v1924_v39  ;;  %v5424_v58 = vpop.f32.mrf.mxu3 }
 0x233   :  { %v2083_v8 = vmax.f32 %v2014_v20, 0.0  ;;  %v1927_v10 = vpop.f32.mrf.mxu1 }
 0x235   :  { %v3512_v55 = vpack.c.bf16 %v2083_v8, %v2082_v18 }
 0x237   :  { %3576 = vst [vmem:[#allocation3 + $0x18] sm:$0xff] %v3512_v55  }
 0x23a   :  { %2055 = vmatmul.bf16.gmra.mxu2 %v3132_v45 }
 0x23b   :  { %v1929_v33 = vpop.f32.mrf.mxu1  ;;  %v2016_v40 = vpop.f32.mrf.mxu2 }
 0x23c   :  { %v2017_v38 = vadd.f32 %v2016_v40, %v1927_v10 }
 0x23d   :  { %v5426_v23 = vpop.f32.mrf.mxu3 }
 0x23e   :  { %v3441_v21 = vld [vmem:[#allocation3 + $0x18] sm:$0xff]  ;;  %v2084_v34 = vmax.f32 %v2017_v38, 0.0 }
 0x23f   :  { %2391 = vmatmul.bf16.gmra.mxu3 %v3441_v21 }
 0x243   :  { %v1932_v61 = vpop.f32.mrf.mxu1  ;;  %v2018_v1 = vpop.f32.mrf.mxu2 }
 0x244   :  { %v2019_v49 = vadd.f32 %v2018_v1, %v1929_v33 }
 0x245   :  { %v5428_v42 = vpop.f32.mrf.mxu3 }
 0x246   :  { %v2085_v37 = vmax.f32 %v2019_v49, 0.0 }
 0x248   :  { %v3517_v51 = vpack.c.bf16 %v2085_v37, %v2084_v34 }
 0x24a   :  { %2060 = vmatmul.bf16.gmra.mxu2 %v3140_v59  ;;  %3577 = vst [vmem:[#allocation3 + $0x50] sm:$0xff] %v3517_v51  }
 0x24b   :  { %v1934_v36 = vpop.f32.mrf.mxu1 }
 0x24d   :  { %v2021_v24 = vpop.f32.mrf.mxu2  ;;  %v5430_v56 = vpop.f32.mrf.mxu3 }
 0x24e   :  { %v2022_v22 = vadd.f32 %v2021_v24, %v1932_v61 }
 0x250   :  { %v2086_v9 = vmax.f32 %v2022_v22, 0.0 }
 0x251   :  { %v3442_v17 = vld [vmem:[#allocation3 + $0x50] sm:$0xff] }
 0x252   :  { %2396 = vmatmul.bf16.gmra.mxu3 %v3442_v17 }
 0x253   :  { %v1937_v5 = vpop.f32.mrf.mxu1 }
 0x255   :  { %v2023_v3 = vpop.f32.mrf.mxu2  ;;  %v5432_v4 = vpop.f32.mrf.mxu3 }
 0x256   :  { %v2024_v29 = vadd.f32 %v2023_v3, %v1934_v36 }
 0x258   :  { %v2087_v60 = vmax.f32 %v2024_v29, 0.0 }
 0x25a   :  { %v3522_v35 = vpack.c.bf16 %v2087_v60, %v2086_v9  ;;  %2065 = vmatmul.bf16.gmra.mxu2 %v3148_v43 }
 0x25b   :  { %v1939_v32 = vpop.f32.mrf.mxu1 }
 0x25c   :  { %3578 = vst [vmem:[#allocation3 + $0x68] sm:$0xff] %v3522_v35  }
 0x25d   :  { %v2026_v44 = vpop.f32.mrf.mxu2 }
 0x25e   :  { %v2027_v47 = vadd.f32 %v2026_v44, %v1937_v5 }
 0x260   :  { %v2088_v30 = vmax.f32 %v2027_v47, 0.0 }
 0x262   :  { %v5434_v46 = vpop.f32.mrf.mxu3 }
 0x263   :  { %v3443_v48 = vld [vmem:[#allocation3 + $0x68] sm:$0xff]  ;;  %v1942_v53 = vpop.f32.mrf.mxu1 }
 0x264   :  { %2401 = vmatmul.bf16.gmra.mxu3 %v3443_v48 }
 0x265   :  { %v2028_v11 = vpop.f32.mrf.mxu2 }
 0x266   :  { %v2029_v6 = vadd.f32 %v2028_v11, %v1939_v32 }
 0x268   :  { %v2089_v63 = vmax.f32 %v2029_v6, 0.0 }
 0x26a   :  { %v3527_v16 = vpack.c.bf16 %v2089_v63, %v2088_v30  ;;  %2070 = vmatmul.bf16.gmra.mxu2 %v3156_v41  ;;  %v5436_v12 = vpop.f32.mrf.mxu3 }
 0x26b   :  { %v1944_v25 = vpop.f32.mrf.mxu1 }
 0x26c   :  { %3579 = vst [vmem:[#allocation3 + $0x8] sm:$0xff] %v3527_v16  }
 0x26d   :  { %v2031_v39 = vpop.f32.mrf.mxu2 }
 0x26e   :  { %v2032_v20 = vadd.f32 %v2031_v39, %v1942_v53 }
 0x270   :  { %v2090_v10 = vmax.f32 %v2032_v20, 0.0 }
 0x272   :  { %v5438_v18 = vpop.f32.mrf.mxu3 }
 0x273   :  { %v3444_v62 = vld [vmem:[#allocation3 + $0x8] sm:$0xff] }
 0x274   :  { %2406 = vmatmul.bf16.gmra.mxu3 %v3444_v62 }
 0x275   :  { %v2033_v8 = vpop.f32.mrf.mxu2 }
 0x276   :  { %v2034_v55 = vadd.f32 %v2033_v8, %v1944_v25 }
 0x278   :  { %v2091_v28 = vmax.f32 %v2034_v55, 0.0 }
 0x27a   :  { %v3532_v50 = vpack.c.bf16 %v2091_v28, %v2090_v10  ;;  %v5440_v21 = vpop.f32.mrf.mxu3 }
 0x27c   :  { %3580 = vst [vmem:[#allocation3 + $0x48] sm:$0xff] %v3532_v50  }
 0x27d   :  { %v2036_v45 = vpop.f32.mrf.mxu2 }
 0x27e   :  { %v2037_v40 = vadd.f32 %v2036_v45, %v5410_v0 }
 0x280   :  { %v2092_v49 = vmax.f32 %v2037_v40, 0.0 }
 0x282   :  { %v5444_v1 = vpop.f32.mrf.mxu3 }
 0x283   :  { %v3445_v33 = vld [vmem:[#allocation3 + $0x48] sm:$0xff] }
 0x284   :  { %2411 = vmatmul.bf16.gmra.mxu3 %v3445_v33 }
 0x285   :  { %v2038_v38 = vpop.f32.mrf.mxu2 }
 0x286   :  { %v2039_v61 = vadd.f32 %v2038_v38, %v5412_v2 }
 0x288   :  { %v2093_v27 = vmax.f32 %v2039_v61, 0.0 }
 0x28a   :  { %v3537_v31 = vpack.c.bf16 %v2093_v27, %v2092_v49  ;;  %v5446_v37 = vpop.f32.mrf.mxu3 }
 0x28c   :  { %3581 = vst [vmem:[#allocation3 + $0x40] sm:$0xff] %v3537_v31  }
 0x28d   :  { %v2041_v34 = vpop.f32.mrf.mxu2 }
 0x28e   :  { %v2042_v51 = vadd.f32 %v2041_v34, %v5414_v19 }
 0x290   :  { %v2094_v24 = vmax.f32 %v2042_v51, 0.0 }
 0x292   :  { %v5450_v2 = vpop.f32.mrf.mxu3 }
 0x293   :  { %v3446_v59 = vld [vmem:[#allocation3 + $0x40] sm:$0xff] }
 0x294   :  { %2416 = vmatmul.bf16.gmra.mxu3 %v3446_v59  ;;  %v5471_v59 = vld [vmem:[%s5530_s5] ss:$0 sm:$0xff]  ;;  %s3847_s5 = smov [#allocation12]  }
 0x295   :  { %v2043_v36 = vpop.f32.mrf.mxu2  ;;  %s2911_s18 = sshll.u32 %s3847_s5, 4  ;;  %s2912_s18 = int_to_ptr.vmem [resolvable:$true] %s2911_s18 }
 0x296   :  { %v2044_v0 = vadd.f32 %v2043_v36, %v5416_v57 }
 0x298   :  { %v2095_v17 = vmax.f32 %v2044_v0, 0.0 }
 0x29a   :  { %v3542_v22 = vpack.c.bf16 %v2095_v17, %v2094_v24  ;;  %v5453_v29 = vpop.f32.mrf.mxu3 }
 0x29c   :  { %3582 = vst [vmem:[#allocation3 + $0x20] sm:$0xff] %v3542_v22  }
 0x29d   :  { %v2046_v3 = vpop.f32.mrf.mxu2 }
 0x29e   :  { %v2047_v14 = vadd.f32 %v2046_v3, %v5418_v52 }
 0x2a0   :  { %v2096_v9 = vmax.f32 %v2047_v14, 0.0 }
 0x2a3   :  { %v3447_v7 = vld [vmem:[#allocation3 + $0x20] sm:$0xff] }
 0x2a4   :  { %2421 = vmatmul.bf16.gmra.mxu3 %v3447_v7 }
 0x2a5   :  { %v2048_v5 = vpop.f32.mrf.mxu2 }
 0x2a6   :  { %v2049_v19 = vadd.f32 %v2048_v5, %v5420_v54  ;;  %v5456_v35 = vpop.f32.mrf.mxu3 }
 0x2a8   :  { %v2097_v60 = vmax.f32 %v2049_v19, 0.0 }
 0x2aa   :  { %v3547_v43 = vpack.c.bf16 %v2097_v60, %v2096_v9 }
 0x2ac   :  { %3583 = vst [vmem:[#allocation3 + $0x10] sm:$0xff] %v3547_v43  }
 0x2ad   :  { %v2051_v57 = vpop.f32.mrf.mxu2 }
 0x2ae   :  { %v2052_v32 = vadd.f32 %v2051_v57, %v5422_v13  ;;  %v5460_v26 = vpop.f32.mrf.mxu3 }
 0x2b0   :  { %v2098_v47 = vmax.f32 %v2052_v32, 0.0 }
 0x2b3   :  { %v3448_v44 = vld [vmem:[#allocation3 + $0x10] sm:$0xff] }
 0x2b4   :  { %2426 = vmatmul.bf16.gmra.mxu3 %v3448_v44 }
 0x2b5   :  { %v2053_v48 = vpop.f32.mrf.mxu2 }
 0x2b6   :  { %v2054_v52 = vadd.f32 %v2053_v48, %v5424_v58 }
 0x2b8   :  { %v2099_v11 = vmax.f32 %v2054_v52, 0.0 }
 0x2ba   :  { %v3552_v15 = vpack.c.bf16 %v2099_v11, %v2098_v47 }
 0x2bc   :  { %3584 = vst [vmem:[#allocation3 + $0x38] sm:$0xff] %v3552_v15  }
 0x2bd   :  { %v2056_v54 = vpop.f32.mrf.mxu2 }
 0x2be   :  { %v2057_v63 = vadd.f32 %v2056_v54, %v5426_v23 }
 0x2c0   :  { %v2100_v13 = vmax.f32 %v2057_v63, 0.0  ;;  %v2390_v63 = vadd.f32 %v5471_v59, %v5460_v26  ;;  %v2378_v26 = vadd.f32 %v5471_v59, %v5444_v1 }
 0x2c2   :  { %v2392_v30 = vpop.f32.mrf.mxu3 }
 0x2c3   :  { %v3449_v6 = vld [vmem:[#allocation3 + $0x38] sm:$0xff]  ;;  %v2393_v24 = vadd.f32 %v5471_v59, %v2392_v30 }
 0x2c4   :  { %2431 = vmatmul.bf16.gmra.mxu3 %v3449_v6 }
 0x2c5   :  { %v2058_v41 = vpop.f32.mrf.mxu2 }
 0x2c6   :  { %v2059_v53 = vadd.f32 %v2058_v41, %v5428_v42  ;;  %v2388_v41 = vadd.f32 %v5471_v59, %v5456_v35  ;;  %v3255_v35 = vld [vmem:[#allocation2] sm:$0xf] }
 0x2c8   :  { %v2101_v16 = vmax.f32 %v2059_v53, 0.0  ;;  %v2385_v53 = vadd.f32 %v5471_v59, %v5453_v29 }
 0x2ca   :  { %v3557_v39 = vpack.c.bf16 %v2101_v16, %v2100_v13  ;;  %v2394_v62 = vpop.f32.mrf.mxu3  ;;  %v2491_v13 = vpack.c.bf16 %v2390_v63, %v2388_v41 }
 0x2cc   :  { %3585 = vst [vmem:[#allocation3 + $0x60] sm:$0xff] %v3557_v39   ;;  %v2383_v39 = vadd.f32 %v5471_v59, %v5450_v2 }
 0x2cd   :  { %v2061_v58 = vpop.f32.mrf.mxu2 }
 0x2ce   :  { %v2062_v20 = vadd.f32 %v2061_v58, %v5430_v56  ;;  %v2380_v58 = vadd.f32 %v5471_v59, %v5446_v37 }
 0x2d0   :  { %v2102_v28 = vmax.f32 %v2062_v20, 0.0  ;;  %v3463_v20 = vld [vmem:[#allocation2 + $0x4] sm:$0xf0] }
 0x2d1   :  { %v3256_v29 = vor.u32 %v3463_v20, %v3255_v35  ;;  %v3479_v35 = vld [vmem:[#allocation2 + $0x84] sm:$0xf0]  ;;  %v3257_v20 = vld [vmem:[#allocation2 + $0x8] sm:$0xf0] }
 0x2d3   :  { %v3450_v25 = vld [vmem:[#allocation3 + $0x60] sm:$0xff] }
 0x2d4   :  { %2436 = vmatmul.bf16.gmra.mxu3 %v3450_v25  ;;  %v2489_v25 = vpack.c.bf16 %v2380_v58, %v2378_v26  ;;  %v3477_v58 = vld [vmem:[#allocation2 + $0x74] sm:$0xf0]  ;;  %v3462_v26 = vld [vmem:[#allocation2 + $0x4] sm:$0xf] }
 0x2d5   :  { %v2063_v8 = vpop.f32.mrf.mxu2  ;;  %v2397_v10 = vpop.f32.mrf.mxu3 }
 0x2d6   :  { %v2064_v55 = vadd.f32 %v2063_v8, %v5432_v4  ;;  %v2398_v54 = vadd.f32 %v5471_v59, %v2397_v10  ;;  %v3263_v10 = vld [vmem:[#allocation2 + $0x10] sm:$0xf] }
 0x2d8   :  { %v2103_v23 = vmax.f32 %v2064_v55, 0.0 }
 0x2da   :  { %v3562_v50 = vpack.c.bf16 %v2103_v23, %v2102_v28  ;;  %v3465_v28 = vld [vmem:[#allocation2 + $0x14] sm:$0xf0] }
 0x2db   :  { %v3264_v23 = vor.u32 %v3465_v28, %v3263_v10  ;;  %v3481_v10 = vld [vmem:[#allocation2 + $0x94] sm:$0xf0]  ;;  %v3265_v28 = vld [vmem:[#allocation2 + $0x18] sm:$0xf0] }
 0x2dc   :  { %3586 = vst [vmem:[#allocation3 + $0x70] sm:$0xff] %v3562_v50  }
 0x2dd   :  { %v2066_v45 = vpop.f32.mrf.mxu2  ;;  %v2399_v42 = vpop.f32.mrf.mxu3 }
 0x2de   :  { %v2067_v40 = vadd.f32 %v2066_v45, %v5434_v46  ;;  %v2395_v46 = vadd.f32 %v5471_v59, %v2394_v62  ;;  %v2400_v11 = vadd.f32 %v5471_v59, %v2399_v42  ;;  %v2490_v62 = vpack.c.bf16 %v2385_v53, %v2383_v39  ;;  %v3271_v42 = vld [vmem:[#allocation2 + $0x20] sm:$0xf]  ;;  %v3311_v39 = vld [vmem:[#allocation2 + $0x70] sm:$0xf] }
 0x2e0   :  { %v2104_v49 = vmax.f32 %v2067_v40, 0.0  ;;  %v2492_v7 = vpack.c.bf16 %v2395_v46, %v2393_v24  ;;  %v2493_v6 = vpack.c.bf16 %v2400_v11, %v2398_v54  ;;  %v3287_v24 = vld [vmem:[#allocation2 + $0x40] sm:$0xf] }
 0x2e3   :  { %v3451_v33 = vld [vmem:[#allocation3 + $0x70] sm:$0xff] }
 0x2e4   :  { %2441 = vmatmul.bf16.gmra.mxu3 %v3451_v33  ;;  %v3467_v33 = vld [vmem:[#allocation2 + $0x24] sm:$0xf0] }
 0x2e5   :  { %v2068_v38 = vpop.f32.mrf.mxu2 }
 0x2e6   :  { %v2069_v61 = vadd.f32 %v2068_v38, %v5436_v12  ;;  %v3272_v38 = vor.u32 %v3467_v33, %v3271_v42  ;;  %v3335_v42 = vld [vmem:[#allocation2 + $0xa0] sm:$0xf]  ;;  %v3483_v33 = vld [vmem:[#allocation2 + $0xa4] sm:$0xf0] }
 0x2e7   :  { %v2402_v27 = vpop.f32.mrf.mxu3 }
 0x2e8   :  { %v2105_v56 = vmax.f32 %v2069_v61, 0.0  ;;  %v2403_v47 = vadd.f32 %v5471_v59, %v2402_v27 }
 0x2ea   :  { %v3567_v31 = vpack.c.bf16 %v2105_v56, %v2104_v49 }
 0x2ec   :  { %3587 = vst [vmem:[#allocation3 + $0x78] sm:$0xff] %v3567_v31   ;;  %v3279_v31 = vld [vmem:[#allocation2 + $0x30] sm:$0xf] }
 0x2ed   :  { %v2071_v4 = vpop.f32.mrf.mxu2 }
 0x2ee   :  { %v2072_v36 = vadd.f32 %v2071_v4, %v5438_v18  ;;  %v3469_v4 = vld [vmem:[#allocation2 + $0x34] sm:$0xf0] }
 0x2ef   :  { %v2404_v34 = vpop.f32.mrf.mxu3 }
 0x2f0   :  { %v2106_v17 = vmax.f32 %v2072_v36, 0.0  ;;  %v2405_v32 = vadd.f32 %v5471_v59, %v2404_v34 }
 0x2f2   :  { %v2494_v15 = vpack.c.bf16 %v2405_v32, %v2403_v47 }
 0x2f3   :  { %v3452_v51 = vld [vmem:[#allocation3 + $0x78] sm:$0xff] }
 0x2f4   :  { %2446 = vmatmul.bf16.gmra.mxu3 %v3452_v51  ;;  %v3280_v51 = vor.u32 %v3469_v4, %v3279_v31 }
 0x2f5   :  { %v2073_v0 = vpop.f32.mrf.mxu2 }
 0x2f6   :  { %v2074_v12 = vadd.f32 %v2073_v0, %v5440_v21 }
 0x2f7   :  { %v2407_v3 = vpop.f32.mrf.mxu3 }
 0x2f8   :  { %v2107_v22 = vmax.f32 %v2074_v12, 0.0  ;;  %v2408_v44 = vadd.f32 %v5471_v59, %v2407_v3 }
 0x2fa   :  { %v3572_v14 = vpack.c.bf16 %v2107_v22, %v2106_v17  ;;  %v3471_v17 = vld [vmem:[#allocation2 + $0x44] sm:$0xf0] }
 0x2fb   :  { %v3288_v3 = vor.u32 %v3471_v17, %v3287_v24 }
 0x2fc   :  { %3588 = vst [vmem:[#allocation3 + $0x28] sm:$0xff] %v3572_v14  }
 0x2ff   :  { %v2409_v5 = vpop.f32.mrf.mxu3 }
 0x300   :  { %v2410_v57 = vadd.f32 %v5471_v59, %v2409_v5 }
 0x302   :  { %v2495_v48 = vpack.c.bf16 %v2410_v57, %v2408_v44  ;;  %v3475_v44 = vld [vmem:[#allocation2 + $0x64] sm:$0xf0] }
 0x303   :  { %v3453_v19 = vld [vmem:[#allocation3 + $0x28] sm:$0xff] }
 0x304   :  { %2451 = vmatmul.bf16.gmra.mxu3 %v3453_v19 }
 0x307   :  { %v2412_v9 = vpop.f32.mrf.mxu3 }
 0x308   :  { %v2413_v18 = vadd.f32 %v5471_v59, %v2412_v9  ;;  %v3295_v9 = vld [vmem:[#allocation2 + $0x50] sm:$0xf] }
 0x30f   :  { %v2414_v60 = vpop.f32.mrf.mxu3 }
 0x310   :  { %v2415_v43 = vadd.f32 %v5471_v59, %v2414_v60  ;;  %v3473_v60 = vld [vmem:[#allocation2 + $0x54] sm:$0xf0] }
 0x312   :  { %v2496_v21 = vpack.c.bf16 %v2415_v43, %v2413_v18  ;;  %v3296_v43 = vor.u32 %v3473_v60, %v3295_v9  ;;  %v3474_v60 = vld [vmem:[#allocation2 + $0x64] sm:$0xf] }
 0x314   :  { %2665 = vmatpush.bf16.msrb.mxu0 %v2496_v21  ;;  %v3303_v21 = vld [vmem:[#allocation2 + $0x60] sm:$0xf] }
 0x315   :  { %v3304_v47 = vor.u32 %v3475_v44, %v3303_v21 }
 0x317   :  { %v2417_v52 = vpop.f32.mrf.mxu3 }
 0x318   :  { %2666 = vmatpush.bf16.msrb.mxu0 %v2495_v48  ;;  %v5501_v50 = vadd.f32 %v5471_v59, %v2417_v52 }
 0x31c   :  { %2667 = vmatpush.bf16.msrb.mxu0 %v2494_v15 }
 0x31f   :  { %v2419_v30 = vpop.f32.mrf.mxu3 }
 0x320   :  { %2668 = vmatpush.bf16.msrb.mxu0 %v2493_v6  ;;  %v5498_v37 = vadd.f32 %v5471_v59, %v2419_v30 }
 0x322   :  { %v2497_v45 = vpack.c.bf16 %v5498_v37, %v5501_v50  ;;  %v3468_v50 = vld [vmem:[#allocation2 + $0x34] sm:$0xf] }
 0x324   :  { %2669 = vmatpush.bf16.msrb.mxu0 %v2492_v7 }
 0x327   :  { %v2422_v16 = vpop.f32.mrf.mxu3 }
 0x328   :  { %2670 = vmatpush.bf16.msrb.mxu0 %v2491_v13  ;;  %v2423_v49 = vadd.f32 %v5471_v59, %v2422_v16 }
 0x32c   :  { %2671 = vmatpush.bf16.msrb.mxu0 %v2490_v62  ;;  %v3312_v62 = vor.u32 %v3477_v58, %v3311_v39 }
 0x32f   :  { %v2424_v8 = vpop.f32.mrf.mxu3 }
 0x330   :  { %2672 = vmatpush.bf16.msrb.mxu0 %v2489_v25  ;;  %v2425_v61 = vadd.f32 %v5471_v59, %v2424_v8  ;;  %v3319_v25 = vld [vmem:[#allocation2 + $0x80] sm:$0xf] }
 0x331   :  { %v3320_v8 = vor.u32 %v3479_v35, %v3319_v25  ;;  %v3480_v25 = vld [vmem:[#allocation2 + $0x94] sm:$0xf]  ;;  %v3329_v35 = vld [vmem:[#allocation2 + $0x98] sm:$0xf0] }
 0x332   :  { %v2498_v27 = vpack.c.bf16 %v2425_v61, %v2423_v49  ;;  %v3485_v49 = vld [vmem:[#allocation2 + $0xb4] sm:$0xf0] }
 0x333   :  { %2673 = vmatmul.bf16.vlgmr.msrb.gmra.mxu0 %v3256_v29  ;;  %v3464_v29 = vld [vmem:[#allocation2 + $0x14] sm:$0xf] }
 0x337   :  { %v2427_v55 = vpop.f32.mrf.mxu3 }
 0x338   :  { %v2428_v46 = vadd.f32 %v5471_v59, %v2427_v55  ;;  %v3327_v55 = vld [vmem:[#allocation2 + $0x90] sm:$0xf] }
 0x33f   :  { %v2429_v2 = vpop.f32.mrf.mxu3 }
 0x340   :  { %v2430_v36 = vadd.f32 %v5471_v59, %v2429_v2  ;;  %v3328_v2 = vor.u32 %v3481_v10, %v3327_v55 }
 0x342   :  { %v2499_v12 = vpack.c.bf16 %v2430_v36, %v2428_v46  ;;  %v3487_v36 = vld [vmem:[#allocation2 + $0xc4] sm:$0xf0]  ;;  %v3289_v46 = vld [vmem:[#allocation2 + $0x48] sm:$0xf0] }
 0x343   :  { %2678 = vmatmul.bf16.gmra.mxu0 %v3264_v23  ;;  %v3268_v23 = vor.u32 %v3464_v29, %v3265_v28 }
 0x347   :  { %v2432_v1 = vpop.f32.mrf.mxu3 }
 0x348   :  { %v2433_v14 = vadd.f32 %v5471_v59, %v2432_v1  ;;  %v3466_v1 = vld [vmem:[#allocation2 + $0x24] sm:$0xf] }
 0x34f   :  { %v2434_v40 = vpop.f32.mrf.mxu3 }
 0x350   :  { %v2435_v7 = vadd.f32 %v5471_v59, %v2434_v40  ;;  %v3273_v40 = vld [vmem:[#allocation2 + $0x28] sm:$0xf0] }
 0x351   :  { %v3276_v61 = vor.u32 %v3466_v1, %v3273_v40  ;;  %v3482_v1 = vld [vmem:[#allocation2 + $0xa4] sm:$0xf] }
 0x352   :  { %v2500_v19 = vpack.c.bf16 %v2435_v7, %v2433_v14  ;;  %v3489_v7 = vld [vmem:[#allocation2 + $0xd4] sm:$0xf0]  ;;  %v3297_v14 = vld [vmem:[#allocation2 + $0x58] sm:$0xf0] }
 0x353   :  { %2683 = vmatmul.bf16.gmra.mxu0 %v3272_v38  ;;  %v3336_v38 = vor.u32 %v3483_v33, %v3335_v42  ;;  %v3337_v42 = vld [vmem:[#allocation2 + $0xa8] sm:$0xf0] }
 0x357   :  { %v2437_v56 = vpop.f32.mrf.mxu3 }
 0x358   :  { %v2438_v13 = vadd.f32 %v5471_v59, %v2437_v56  ;;  %v3281_v56 = vld [vmem:[#allocation2 + $0x38] sm:$0xf0] }
 0x359   :  { %v3284_v31 = vor.u32 %v3468_v50, %v3281_v56  ;;  %v3484_v56 = vld [vmem:[#allocation2 + $0xb4] sm:$0xf] }
 0x35f   :  { %v2439_v34 = vpop.f32.mrf.mxu3 }
 0x360   :  { %v2440_v41 = vadd.f32 %v5471_v59, %v2439_v34  ;;  %v3470_v34 = vld [vmem:[#allocation2 + $0x44] sm:$0xf] }
 0x361   :  { %v3292_v24 = vor.u32 %v3470_v34, %v3289_v46 }
 0x362   :  { %v2501_v16 = vpack.c.bf16 %v2440_v41, %v2438_v13  ;;  %v3321_v41 = vld [vmem:[#allocation2 + $0x88] sm:$0xf0] }
 0x363   :  { %2688 = vmatmul.bf16.gmra.mxu0 %v3280_v51  ;;  %v3351_v51 = vld [vmem:[#allocation2 + $0xc0] sm:$0xf] }
 0x367   :  { %v2442_v0 = vpop.f32.mrf.mxu3 }
 0x368   :  { %v2443_v63 = vadd.f32 %v5471_v59, %v2442_v0 }
 0x36f   :  { %v2444_v22 = vpop.f32.mrf.mxu3 }
 0x370   :  { %v2445_v6 = vadd.f32 %v5471_v59, %v2444_v22  ;;  %v3472_v22 = vld [vmem:[#allocation2 + $0x54] sm:$0xf] }
 0x372   :  { %v2502_v53 = vpack.c.bf16 %v2445_v6, %v2443_v63  ;;  %v3478_v63 = vld [vmem:[#allocation2 + $0x84] sm:$0xf] }
 0x373   :  { %2693 = vmatmul.bf16.gmra.mxu0 %v3288_v3  ;;  %v3359_v3 = vld [vmem:[#allocation2 + $0xd0] sm:$0xf] }
 0x377   :  { %v2447_v5 = vpop.f32.mrf.mxu3 }
 0x378   :  { %v2448_v54 = vadd.f32 %v5471_v59, %v2447_v5  ;;  %v3360_v5 = vor.u32 %v3489_v7, %v3359_v3 }
 0x37f   :  { %v2449_v18 = vpop.f32.mrf.mxu3 }
 0x380   :  { %v2450_v11 = vadd.f32 %v5471_v59, %v2449_v18  ;;  %v3367_v18 = vld [vmem:[#allocation2 + $0xe0] sm:$0xf] }
 0x382   :  { %v2503_v30 = vpack.c.bf16 %v2450_v11, %v2448_v54  ;;  %v3493_v11 = vld [vmem:[#allocation2 + $0xf4] sm:$0xf0] }
 0x383   :  { %2698 = vmatmul.bf16.gmra.mxu0 %v3296_v43  ;;  %v3491_v43 = vld [vmem:[#allocation2 + $0xe4] sm:$0xf0] }
 0x384   :  { %v3368_v44 = vor.u32 %v3491_v43, %v3367_v18 }
 0x387   :  { %v2452_v57 = vpop.f32.mrf.mxu3 }
 0x388   :  { %v2453_v48 = vadd.f32 %v5471_v59, %v2452_v57  ;;  %v3305_v57 = vld [vmem:[#allocation2 + $0x68] sm:$0xf0] }
 0x38f   :  { %v2454_v32 = vpop.f32.mrf.mxu3 }
 0x390   :  { %v2455_v52 = vadd.f32 %v5471_v59, %v2454_v32  ;;  %v3260_v59 = vor.u32 %v3462_v26, %v3257_v20  ;;  %v3308_v32 = vor.u32 %v3474_v60, %v3305_v57  ;;  %v3488_v57 = vld [vmem:[#allocation2 + $0xd4] sm:$0xf] }
 0x392   :  { %v2504_v15 = vpack.c.bf16 %v2455_v52, %v2453_v48  ;;  %v3476_v52 = vld [vmem:[#allocation2 + $0x74] sm:$0xf] }
 0x393   :  { %2703 = vmatmul.bf16.gmra.mxu0 %v3304_v47  ;;  %v3375_v47 = vld [vmem:[#allocation2 + $0xf0] sm:$0xf] }
 0x394   :  { %2754 = vmatpush.bf16.msrb.mxu1 %v2504_v15  ;;  %v3313_v15 = vld [vmem:[#allocation2 + $0x78] sm:$0xf0]  ;;  %v3376_v54 = vor.u32 %v3493_v11, %v3375_v47 }
 0x395   :  { %v3316_v6 = vor.u32 %v3476_v52, %v3313_v15 }
 0x398   :  { %2755 = vmatpush.bf16.msrb.mxu1 %v2503_v30 }
 0x39c   :  { %2756 = vmatpush.bf16.msrb.mxu1 %v2502_v53 }
 0x3a0   :  { %2757 = vmatpush.bf16.msrb.mxu1 %v2501_v16  ;;  %v3324_v16 = vor.u32 %v3478_v63, %v3321_v41 }
 0x3a3   :  { %2708 = vmatmul.bf16.gmra.mxu0 %v3312_v62 }
 0x3a4   :  { %2758 = vmatpush.bf16.msrb.mxu1 %v2500_v19  ;;  %v3300_v19 = vor.u32 %v3472_v22, %v3297_v14  ;;  %v3353_v22 = vld [vmem:[#allocation2 + $0xc8] sm:$0xf0] }
 0x3a8   :  { %2759 = vmatpush.bf16.msrb.mxu1 %v2499_v12  ;;  %v3352_v12 = vor.u32 %v3487_v36, %v3351_v51 }
 0x3ac   :  { %2760 = vmatpush.bf16.msrb.mxu1 %v2498_v27 }
 0x3b0   :  { %2761 = vmatpush.bf16.msrb.mxu1 %v2497_v45  ;;  %v2674_v37 = vpop.f32.mrf.mxu0  ;;  %v3343_v45 = vld [vmem:[#allocation2 + $0xb0] sm:$0xf] }
 0x3b1   :  { %v3344_v27 = vor.u32 %v3485_v49, %v3343_v45 }
 0x3b3   :  { %2713 = vmatmul.bf16.gmra.mxu0 %v3320_v8  ;;  %2762 = vmatmul.bf16.vlgmr.msrb.gmra.mxu1 %v3260_v59  ;;  %v3332_v59 = vor.u32 %v3480_v25, %v3329_v35  ;;  %v3492_v25 = vld [vmem:[#allocation2 + $0xf4] sm:$0xf]  ;;  %v3377_v35 = vld [vmem:[#allocation2 + $0xf8] sm:$0xf0] }
 0x3b8   :  { %v2676_v4 = vpop.f32.mrf.mxu0 }
 0x3c0   :  { %v2679_v0 = vpop.f32.mrf.mxu0 }
 0x3c3   :  { %2718 = vmatmul.bf16.gmra.mxu0 %v3328_v2  ;;  %2767 = vmatmul.bf16.gmra.mxu1 %v3268_v23 }
 0x3c8   :  { %v2681_v17 = vpop.f32.mrf.mxu0 }
 0x3d0   :  { %v2684_v9 = vpop.f32.mrf.mxu0 }
 0x3d3   :  { %2723 = vmatmul.bf16.gmra.mxu0 %v3336_v38  ;;  %2772 = vmatmul.bf16.gmra.mxu1 %v3276_v61  ;;  %v3340_v38 = vor.u32 %v3482_v1, %v3337_v42 }
 0x3d8   :  { %v2686_v21 = vpop.f32.mrf.mxu0 }
 0x3e0   :  { %v2689_v48 = vpop.f32.mrf.mxu0 }
 0x3e3   :  { %2728 = vmatmul.bf16.gmra.mxu0 %v3344_v27  ;;  %2777 = vmatmul.bf16.gmra.mxu1 %v3284_v31  ;;  %v3345_v27 = vld [vmem:[#allocation2 + $0xb8] sm:$0xf0] }
 0x3e4   :  { %v3348_v51 = vor.u32 %v3484_v56, %v3345_v27 }
 0x3e8   :  { %v2691_v30 = vpop.f32.mrf.mxu0 }
 0x3f0   :  { %v2694_v29 = vpop.f32.mrf.mxu0 }
 0x3f3   :  { %2733 = vmatmul.bf16.gmra.mxu0 %v3352_v12  ;;  %2782 = vmatmul.bf16.gmra.mxu1 %v3292_v24 }
 0x3f8   :  { %v2696_v23 = vpop.f32.mrf.mxu0 }
 0x403   :  { %2738 = vmatmul.bf16.gmra.mxu0 %v3360_v5  ;;  %2787 = vmatmul.bf16.gmra.mxu1 %v3300_v19 }
 0x413   :  { %2743 = vmatmul.bf16.gmra.mxu0 %v3368_v44  ;;  %2792 = vmatmul.bf16.gmra.mxu1 %v3308_v32 }
 0x423   :  { %2748 = vmatmul.bf16.gmra.mxu0 %v3376_v54  ;;  %2797 = vmatmul.bf16.gmra.mxu1 %v3316_v6  ;;  %v3490_v6 = vld [vmem:[#allocation2 + $0xe4] sm:$0xf] }
 0x430   :  { %v2763_v53 = vpop.f32.mrf.mxu1 }
 0x431   :  { %v2764_v13 = vadd.f32 %v2763_v53, %v2674_v37  ;;  %v2699_v37 = vpop.f32.mrf.mxu0 }
 0x433   :  { %v2843_v39 = vmax.f32 %v2764_v13, 0.0  ;;  %2802 = vmatmul.bf16.gmra.mxu1 %v3324_v16 }
 0x435   :  { %2875 = vst [vmem:[#allocation12] sm:$0xff] %v2843_v39 }
 0x438   :  { %v2765_v58 = vpop.f32.mrf.mxu1 }
 0x439   :  { %v2766_v62 = vadd.f32 %v2765_v58, %v2676_v4  ;;  %v2701_v31 = vpop.f32.mrf.mxu0 }
 0x43b   :  { %v2844_v26 = vmax.f32 %v2766_v62, 0.0 }
 0x43d   :  { %2876 = vst [vmem:[#allocation12 + $0x8] sm:$0xff] %v2844_v26 }
 0x440   :  { %v2768_v20 = vpop.f32.mrf.mxu1 }
 0x441   :  { %v2769_v8 = vadd.f32 %v2768_v20, %v2679_v0  ;;  %v2704_v12 = vpop.f32.mrf.mxu0 }
 0x443   :  { %v2845_v55 = vmax.f32 %v2769_v8, 0.0  ;;  %2807 = vmatmul.bf16.gmra.mxu1 %v3332_v59  ;;  %v3380_v59 = vor.u32 %v3492_v25, %v3377_v35 }
 0x445   :  { %2877 = vst [vmem:[#allocation12 + $0x10] sm:$0xff] %v2845_v55 }
 0x448   :  { %v2770_v10 = vpop.f32.mrf.mxu1 }
 0x449   :  { %v2771_v28 = vadd.f32 %v2770_v10, %v2681_v17  ;;  %v3486_v17 = vld [vmem:[#allocation2 + $0xc4] sm:$0xf]  ;;  %v2706_v19 = vpop.f32.mrf.mxu0 }
 0x44a   :  { %v3356_v14 = vor.u32 %v3486_v17, %v3353_v22 }
 0x44b   :  { %v2846_v2 = vmax.f32 %v2771_v28, 0.0 }
 0x44d   :  { %2878 = vst [vmem:[#allocation12 + $0x18] sm:$0xff] %v2846_v2 }
 0x450   :  { %v2773_v33 = vpop.f32.mrf.mxu1 }
 0x451   :  { %v2774_v40 = vadd.f32 %v2773_v33, %v2684_v9  ;;  %v2709_v43 = vpop.f32.mrf.mxu0 }
 0x453   :  { %v2847_v61 = vmax.f32 %v2774_v40, 0.0  ;;  %2812 = vmatmul.bf16.gmra.mxu1 %v3340_v38 }
 0x455   :  { %2879 = vst [vmem:[#allocation12 + $0x20] sm:$0xff] %v2847_v61 }
 0x458   :  { %v2775_v50 = vpop.f32.mrf.mxu1 }
 0x459   :  { %v2776_v45 = vadd.f32 %v2775_v50, %v2686_v21  ;;  %v3361_v21 = vld [vmem:[#allocation2 + $0xd8] sm:$0xf0]  ;;  %v2711_v47 = vpop.f32.mrf.mxu0 }
 0x45b   :  { %v2848_v49 = vmax.f32 %v2776_v45, 0.0 }
 0x45d   :  { %2880 = vst [vmem:[#allocation12 + $0x28] sm:$0xff] %v2848_v49 }
 0x460   :  { %v2778_v4 = vpop.f32.mrf.mxu1 }
 0x461   :  { %v2779_v34 = vadd.f32 %v2778_v4, %v2689_v48  ;;  %v3364_v48 = vor.u32 %v3488_v57, %v3361_v21  ;;  %v2714_v13 = vpop.f32.mrf.mxu0 }
 0x463   :  { %v2849_v36 = vmax.f32 %v2779_v34, 0.0  ;;  %2817 = vmatmul.bf16.gmra.mxu1 %v3348_v51 }
 0x465   :  { %2881 = vst [vmem:[#allocation12 + $0x30] sm:$0xff] %v2849_v36 }
 0x468   :  { %v2780_v46 = vpop.f32.mrf.mxu1 }
 0x469   :  { %v2781_v0 = vadd.f32 %v2780_v46, %v2691_v30  ;;  %v3369_v30 = vld [vmem:[#allocation2 + $0xe8] sm:$0xf0]  ;;  %v2716_v26 = vpop.f32.mrf.mxu0 }
 0x46a   :  { %v3372_v53 = vor.u32 %v3490_v6, %v3369_v30 }
 0x46b   :  { %v2850_v24 = vmax.f32 %v2781_v0, 0.0 }
 0x46d   :  { %2882 = vst [vmem:[#allocation12 + $0x38] sm:$0xff] %v2850_v24 }
 0x470   :  { %v2783_v3 = vpop.f32.mrf.mxu1 }
 0x471   :  { %v2784_v7 = vadd.f32 %v2783_v3, %v2694_v29  ;;  %v2719_v55 = vpop.f32.mrf.mxu0 }
 0x473   :  { %v2851_v5 = vmax.f32 %v2784_v7, 0.0  ;;  %2822 = vmatmul.bf16.gmra.mxu1 %v3356_v14 }
 0x475   :  { %2883 = vst [vmem:[#allocation12 + $0x40] sm:$0xff] %v2851_v5 }
 0x478   :  { %v2785_v9 = vpop.f32.mrf.mxu1 }
 0x479   :  { %v2786_v60 = vadd.f32 %v2785_v9, %v2696_v23  ;;  %v2721_v23 = vpop.f32.mrf.mxu0 }
 0x47b   :  { %v2852_v18 = vmax.f32 %v2786_v60, 0.0 }
 0x47d   :  { %2884 = vst [vmem:[#allocation12 + $0x48] sm:$0xff] %v2852_v18 }
 0x480   :  { %v2788_v44 = vpop.f32.mrf.mxu1 }
 0x481   :  { %v2789_v32 = vadd.f32 %v2788_v44, %v2699_v37  ;;  %v2724_v61 = vpop.f32.mrf.mxu0 }
 0x483   :  { %v2853_v52 = vmax.f32 %v2789_v32, 0.0  ;;  %2827 = vmatmul.bf16.gmra.mxu1 %v3364_v48 }
 0x485   :  { %2885 = vst [vmem:[#allocation12 + $0x50] sm:$0xff] %v2853_v52 }
 0x488   :  { %v2790_v11 = vpop.f32.mrf.mxu1 }
 0x489   :  { %v2791_v15 = vadd.f32 %v2790_v11, %v2701_v31  ;;  %v2726_v56 = vpop.f32.mrf.mxu0 }
 0x48b   :  { %v2854_v54 = vmax.f32 %v2791_v15, 0.0 }
 0x48d   :  { %2886 = vst [vmem:[#allocation12 + $0x58] sm:$0xff] %v2854_v54 }
 0x490   :  { %v2793_v63 = vpop.f32.mrf.mxu1 }
 0x491   :  { %v2794_v41 = vadd.f32 %v2793_v63, %v2704_v12  ;;  %v2729_v34 = vpop.f32.mrf.mxu0 }
 0x493   :  { %v2855_v16 = vmax.f32 %v2794_v41, 0.0  ;;  %2832 = vmatmul.bf16.gmra.mxu1 %v3372_v53 }
 0x495   :  { %2887 = vst [vmem:[#allocation12 + $0x60] sm:$0xff] %v2855_v16 }
 0x498   :  { %v2795_v39 = vpop.f32.mrf.mxu1 }
 0x499   :  { %v2796_v58 = vadd.f32 %v2795_v39, %v2706_v19  ;;  %v2731_v0 = vpop.f32.mrf.mxu0 }
 0x49b   :  { %v2856_v62 = vmax.f32 %v2796_v58, 0.0 }
 0x49d   :  { %2888 = vst [vmem:[#allocation12 + $0x68] sm:$0xff] %v2856_v62 }
 0x4a0   :  { %v2798_v20 = vpop.f32.mrf.mxu1 }
 0x4a1   :  { %v2799_v8 = vadd.f32 %v2798_v20, %v2709_v43  ;;  %v2734_v7 = vpop.f32.mrf.mxu0 }
 0x4a3   :  { %v2857_v29 = vmax.f32 %v2799_v8, 0.0  ;;  %2837 = vmatmul.bf16.gmra.mxu1 %v3380_v59 }
 0x4a5   :  { %2889 = vst [vmem:[#allocation12 + $0x70] sm:$0xff] %v2857_v29 }
 0x4a8   :  { %v2800_v10 = vpop.f32.mrf.mxu1 }
 0x4a9   :  { %v2801_v28 = vadd.f32 %v2800_v10, %v2711_v47  ;;  %v2736_v60 = vpop.f32.mrf.mxu0 }
 0x4ab   :  { %v2858_v2 = vmax.f32 %v2801_v28, 0.0 }
 0x4ad   :  { %2890 = vst [vmem:[#allocation12 + $0x78] sm:$0xff] %v2858_v2 }
 0x4b0   :  { %v2803_v1 = vpop.f32.mrf.mxu1 }
 0x4b1   :  { %v2804_v42 = vadd.f32 %v2803_v1, %v2714_v13  ;;  %v2739_v21 = vpop.f32.mrf.mxu0 }
 0x4b3   :  { %v2859_v33 = vmax.f32 %v2804_v42, 0.0 }
 0x4b5   :  { %2891 = vst [vmem:[#allocation12 + $0x80] sm:$0xff] %v2859_v33 }
 0x4b8   :  { %v2805_v40 = vpop.f32.mrf.mxu1 }
 0x4b9   :  { %v2806_v38 = vadd.f32 %v2805_v40, %v2716_v26  ;;  %v2741_v52 = vpop.f32.mrf.mxu0 }
 0x4bb   :  { %v2860_v37 = vmax.f32 %v2806_v38, 0.0 }
 0x4bd   :  { %2892 = vst [vmem:[#allocation12 + $0x88] sm:$0xff] %v2860_v37 }
 0x4c0   :  { %v2808_v50 = vpop.f32.mrf.mxu1 }
 0x4c1   :  { %v2809_v45 = vadd.f32 %v2808_v50, %v2719_v55  ;;  %v2744_v30 = vpop.f32.mrf.mxu0 }
 0x4c3   :  { %v2861_v49 = vmax.f32 %v2809_v45, 0.0 }
 0x4c5   :  { %2893 = vst [vmem:[#allocation12 + $0x90] sm:$0xff] %v2861_v49 }
 0x4c8   :  { %v2810_v27 = vpop.f32.mrf.mxu1 }
 0x4c9   :  { %v2811_v31 = vadd.f32 %v2810_v27, %v2721_v23  ;;  %v2746_v16 = vpop.f32.mrf.mxu0 }
 0x4cb   :  { %v2862_v4 = vmax.f32 %v2811_v31, 0.0 }
 0x4cd   :  { %2894 = vst [vmem:[#allocation12 + $0x98] sm:$0xff] %v2862_v4 }
 0x4d0   :  { %v2813_v51 = vpop.f32.mrf.mxu1 }
 0x4d1   :  { %v2814_v36 = vadd.f32 %v2813_v51, %v2724_v61  ;;  %v2749_v26 = vpop.f32.mrf.mxu0 }
 0x4d3   :  { %v2863_v46 = vmax.f32 %v2814_v36, 0.0 }
 0x4d5   :  { %2895 = vst [vmem:[#allocation12 + $0xa0] sm:$0xff] %v2863_v46 }
 0x4d8   :  { %v2815_v12 = vpop.f32.mrf.mxu1 }
 0x4d9   :  { %v2816_v24 = vadd.f32 %v2815_v12, %v2726_v56  ;;  %v2751_v8 = vpop.f32.mrf.mxu0 }
 0x4db   :  { %v2864_v17 = vmax.f32 %v2816_v24, 0.0 }
 0x4dd   :  { %2896 = vst [vmem:[#allocation12 + $0xa8] sm:$0xff] %v2864_v17 }
 0x4e0   :  { %v2818_v22 = vpop.f32.mrf.mxu1 }
 0x4e1   :  { %v2819_v3 = vadd.f32 %v2818_v22, %v2729_v34 }
 0x4e3   :  { %v2865_v14 = vmax.f32 %v2819_v3, 0.0 }
 0x4e5   :  { %2897 = vst [vmem:[#allocation12 + $0xb0] sm:$0xff] %v2865_v14 }
 0x4e8   :  { %v2820_v5 = vpop.f32.mrf.mxu1 }
 0x4e9   :  { %v2821_v19 = vadd.f32 %v2820_v5, %v2731_v0 }
 0x4eb   :  { %v2866_v9 = vmax.f32 %v2821_v19, 0.0 }
 0x4ed   :  { %2898 = vst [vmem:[#allocation12 + $0xb8] sm:$0xff] %v2866_v9 }
 0x4f0   :  { %v2823_v18 = vpop.f32.mrf.mxu1 }
 0x4f1   :  { %v2824_v43 = vadd.f32 %v2823_v18, %v2734_v7 }
 0x4f3   :  { %v2867_v57 = vmax.f32 %v2824_v43, 0.0 }
 0x4f5   :  { %2899 = vst [vmem:[#allocation12 + $0xc0] sm:$0xff] %v2867_v57 }
 0x4f8   :  { %v2825_v44 = vpop.f32.mrf.mxu1 }
 0x4f9   :  { %v2826_v32 = vadd.f32 %v2825_v44, %v2736_v60 }
 0x4fb   :  { %v2868_v48 = vmax.f32 %v2826_v32, 0.0 }
 0x4fd   :  { %2900 = vst [vmem:[#allocation12 + $0xc8] sm:$0xff] %v2868_v48 }
 0x500   :  { %v2828_v47 = vpop.f32.mrf.mxu1 }
 0x501   :  { %v2829_v11 = vadd.f32 %v2828_v47, %v2739_v21 }
 0x503   :  { %v2869_v15 = vmax.f32 %v2829_v11, 0.0 }
 0x505   :  { %2901 = vst [vmem:[#allocation12 + $0xd0] sm:$0xff] %v2869_v15 }
 0x508   :  { %v2830_v54 = vpop.f32.mrf.mxu1 }
 0x509   :  { %v2831_v6 = vadd.f32 %v2830_v54, %v2741_v52 }
 0x50b   :  { %v2870_v63 = vmax.f32 %v2831_v6, 0.0 }
 0x50d   :  { %2902 = vst [vmem:[#allocation12 + $0xd8] sm:$0xff] %v2870_v63 }
 0x510   :  { %v2833_v41 = vpop.f32.mrf.mxu1 }
 0x511   :  { %v2834_v53 = vadd.f32 %v2833_v41, %v2744_v30 }
 0x513   :  { %v2871_v13 = vmax.f32 %v2834_v53, 0.0 }
 0x515   :  { %2903 = vst [vmem:[#allocation12 + $0xe0] sm:$0xff] %v2871_v13 }
 0x518   :  { %v2835_v39 = vpop.f32.mrf.mxu1 }
 0x519   :  { %v2836_v58 = vadd.f32 %v2835_v39, %v2746_v16 }
 0x51b   :  { %v2872_v62 = vmax.f32 %v2836_v58, 0.0 }
 0x51d   :  { %2904 = vst [vmem:[#allocation12 + $0xe8] sm:$0xff] %v2872_v62 }
 0x520   :  { %v2838_v25 = vpop.f32.mrf.mxu1 }
 0x521   :  { %v2839_v35 = vadd.f32 %v2838_v25, %v2749_v26 }
 0x523   :  { %v2873_v20 = vmax.f32 %v2839_v35, 0.0 }
 0x525   :  { %2905 = vst [vmem:[#allocation12 + $0xf0] sm:$0xff] %v2873_v20 }
 0x528   :  { %v2840_v59 = vpop.f32.mrf.mxu1 }
 0x529   :  { %v2841_v29 = vadd.f32 %v2840_v59, %v2751_v8 }
 0x52b   :  { %v2874_v55 = vmax.f32 %v2841_v29, 0.0 }
 0x52d   :  { %2906 = vst [vmem:[#allocation12 + $0xf8] sm:$0xff] %v2874_v55 }
 0x52e   :  { %2919 = dma.vmem_to_hbm [thread:$0]  %s2912_s18, 4096, %s2914_s21, [#allocation8], %s3848_s22, %s3848_s22, %s3849_s23  }
 0x52f   :  { %3838 = dma.done.wait [#allocation8], 4096  }
 0x530   :  { %3839 = vsyncadd [#allocation8], 4294963200 }
 0x531   :  { %2924 = vsyncpa [#allocation7], 1 }
 0x532   :  { %2925 = vsyncpa [#allocation10], 1 }
 0x533   :  { %2926 = vsyncpa [#allocation8], 1 }
 0x534   :  { %2927 = vsyncmov [#allocation5] }
 0x537   :  { %s2928_s24 = vpop.sfrf %2927 }
 0x538   :  { %p3381_p0 = scmp.ne.s32.totalorder %s2928_s24, 0 }
 0x53a   :  { %2932 = shalt.err (%p3381_p0)  }

</bundles_post_ra>
